<compile_context>
chip_gen: v7x
topology: tpu7x:2x2x1
jax: 0.10.0
libtpu: 0.0.40
codegen_flags: <defaults>
</compile_context>

<pallas_src>
import numpy as np

import jax
import jax.numpy as jnp
from jax import lax
from jax.experimental import pallas as pl
from jax.experimental.pallas import tpu as pltpu


# ----------------------------------------------------------------------------
# Fused Pallas kernel: whole AENet forward = 6 chained GEMM + bias (+ ReLU)
# ----------------------------------------------------------------------------
def _aenet_fused_kernel(x_ref,
                        m1_ref, b1_ref, m2_ref, b2_ref, m3_ref, b3_ref,
                        m4_ref, b4_ref, m5_ref, b5_ref, m6_ref, b6_ref,
                        o_ref):
    def dense(h, m_ref, b_ref, relu):
        # MXU GEMM with bf16 operands, f32 accumulate; bias + ReLU fused in f32.
        acc = jnp.dot(h.astype(jnp.bfloat16), m_ref[...],
                      preferred_element_type=jnp.float32)
        acc = acc + b_ref[...]                     # (1, P) lane-dense bias row
        if relu:
            acc = jnp.maximum(acc, 0.0)
        return acc

    h = x_ref[...]                                 # (N, 3*H*W) f32, stays in VMEM
    h = dense(h, m1_ref, b1_ref, True)             # encoder conv 1
    h = dense(h, m2_ref, b2_ref, True)             # encoder conv 2
    h = dense(h, m3_ref, b3_ref, True)             # encoder conv 3
    h = dense(h, m4_ref, b4_ref, True)             # decoder conv-transpose 1
    h = dense(h, m5_ref, b5_ref, True)             # decoder conv-transpose 2
    o_ref[...] = dense(h, m6_ref, b6_ref, False)   # decoder conv-transpose 3


def aenet_forward(x, fused_ops):
    """x: (N, 3, H, W) f32 -> (N, 3, H, W) f32. fused_ops: (M1, b1, ..., M6, b6)."""
    n, c, h, w = x.shape
    x2 = x.reshape(n, c * h * w)                   # row-major (c, y, x) flattening
    vmem = pl.BlockSpec(memory_space=pltpu.MemorySpace.VMEM)
    out2 = pl.pallas_call(
        _aenet_fused_kernel,
        out_shape=jax.ShapeDtypeStruct((n, c * h * w), jnp.float32),
        in_specs=[vmem] * (1 + len(fused_ops)),
        out_specs=vmem,
    )(x2, *fused_ops)
    return out2.reshape(n, c, h, w)


# ----------------------------------------------------------------------------
# Init-time (host-side) folding of conv layers into dense operators
# ----------------------------------------------------------------------------
def _conv2d_operator(w, h, wd):
    """Conv2d(k=4, s=2, p=1): dense operator (Cin*h*wd, Cout*(h//2)*(wd//2))."""
    cout, cin, kh, kw = w.shape
    ho, wo = h // 2, wd // 2
    m = np.zeros((cin, h, wd, cout, ho, wo), np.float32)
    for yo in range(ho):
        for ky in range(kh):
            y = 2 * yo + ky - 1
            if not 0 <= y < h:
                continue
            for xo in range(wo):
                for kx in range(kw):
                    x = 2 * xo + kx - 1
                    if not 0 <= x < wd:
                        continue
                    m[:, y, x, :, yo, xo] = w[:, :, ky, kx].T
    return m.reshape(cin * h * wd, cout * ho * wo)


def _conv_transpose2d_operator(w, h, wd):
    """ConvTranspose2d(k=4, s=2, p=1): dense operator (Cin*h*wd, Cout*2h*2wd)."""
    cin, cout, kh, kw = w.shape
    ho, wo = 2 * h, 2 * wd
    m = np.zeros((cin, h, wd, cout, ho, wo), np.float32)
    for iy in range(h):
        for ky in range(kh):
            oy = 2 * iy + ky - 1                   # oy = 2*iy + ky - padding
            if not 0 <= oy < ho:
                continue
            for ix in range(wd):
                for kx in range(kw):
                    ox = 2 * ix + kx - 1
                    if not 0 <= ox < wo:
                        continue
                    m[:, iy, ix, :, oy, ox] = w[:, :, ky, kx]
    return m.reshape(cin * h * wd, cout * ho * wo)


def build_fused_operators(params, h, w):
    """Fold every layer into (bf16 dense operator, lane-dense f32 bias row).

    Runs once at init time (numpy, host side); the jitted forward then contains
    nothing but a single pallas_call.
    """
    fused = []
    for name, transpose in (("e1", False), ("e2", False), ("e3", False),
                            ("d1", True), ("d2", True), ("d3", True)):
        wgt = np.asarray(params[name + "w"], np.float32)
        b = np.asarray(params[name + "b"], np.float32)
        if transpose:
            m = _conv_transpose2d_operator(wgt, h, w)
            h, w = 2 * h, 2 * w
        else:
            m = _conv2d_operator(wgt, h, w)
            h, w = h // 2, w // 2
        bias_row = np.repeat(b, h * w)[None, :]     # (1, Cout*Ho*Wo), lane-dense
        fused.append(jnp.asarray(m, jnp.bfloat16))  # pre-cast to bf16 once
        fused.append(jnp.asarray(bias_row, jnp.float32))
    return tuple(fused)


def init_params(key):
    shapes = {
        "e1w": (12, 3, 4, 4), "e1b": (12,),
        "e2w": (24, 12, 4, 4), "e2b": (24,),
        "e3w": (48, 24, 4, 4), "e3b": (48,),
        # ConvTranspose2d weights are (Cin, Cout, kh, kw)
        "d1w": (48, 24, 4, 4), "d1b": (24,),
        "d2w": (24, 12, 4, 4), "d2b": (12,),
        "d3w": (12, 3, 4, 4), "d3b": (3,),
    }
    params = {}
    keys = jax.random.split(key, len(shapes))
    for k_, (name, shp) in zip(keys, sorted(shapes.items())):
        params[name] = 0.1 * jax.random.normal(k_, shp, jnp.float32)
    return params


# ----------------------------------------------------------------------------
# Pure-XLA f32 reference (for the in-script correctness check only)
# ----------------------------------------------------------------------------
def _reference_forward(x, params):
    dn = ("NCHW", "OIHW", "NCHW")

    def conv(h, w, b):
        out = lax.conv_general_dilated(h, w, (2, 2), [(1, 1), (1, 1)],
                                       dimension_numbers=dn)
        return out + b[None, :, None, None]

    def convT(h, w, b):
        wt = jnp.transpose(w, (1, 0, 2, 3))[:, :, ::-1, ::-1]
        out = lax.conv_general_dilated(h, wt, (1, 1), [(2, 2), (2, 2)],
                                       lhs_dilation=(2, 2), dimension_numbers=dn)
        return out + b[None, :, None, None]

    h = jax.nn.relu(conv(x, params["e1w"], params["e1b"]))
    h = jax.nn.relu(conv(h, params["e2w"], params["e2b"]))
    h = jax.nn.relu(conv(h, params["e3w"], params["e3b"]))
    h = jax.nn.relu(convT(h, params["d1w"], params["d1b"]))
    h = jax.nn.relu(convT(h, params["d2w"], params["d2b"]))
    h = convT(h, params["d3w"], params["d3b"])
    return h


if __name__ == "__main__":
    key = jax.random.PRNGKey(0)
    pkey, xkey = jax.random.split(key)
    params = init_params(pkey)

    N, C, H, W = 2, 3, 16, 16
    x = jax.random.normal(xkey, (N, C, H, W), jnp.float32)

    fused_ops = build_fused_operators(params, H, W)     # one-time init-time fold

    fwd = jax.jit(aenet_forward)
    y = jax.block_until_ready(fwd(x, fused_ops))

    assert y.shape == x.shape, (y.shape, x.shape)
    assert y.dtype == jnp.float32
    assert bool(jnp.isfinite(y).all())

    # Correctness vs pure-XLA f32 conv reference (bf16 MXU operands -> loose tol).
    y_ref = jax.block_until_ready(jax.jit(_reference_forward)(x, params))
    np.testing.assert_allclose(np.asarray(y), np.asarray(y_ref),
                               rtol=5e-2, atol=5e-2)

    print("KERNEL_OK")
</pallas_src>

<mosaic_0001>
module attributes {stable_mosaic.version = 11 : i64} {
  func.func @_aenet_fused_kernel(%arg0: memref<2x768xf32, #tpu.memory_space<vmem>>, %arg1: memref<768x768xbf16, #tpu.memory_space<vmem>>, %arg2: memref<1x768xf32, #tpu.memory_space<vmem>>, %arg3: memref<768x384xbf16, #tpu.memory_space<vmem>>, %arg4: memref<1x384xf32, #tpu.memory_space<vmem>>, %arg5: memref<384x192xbf16, #tpu.memory_space<vmem>>, %arg6: memref<1x192xf32, #tpu.memory_space<vmem>>, %arg7: memref<192x384xbf16, #tpu.memory_space<vmem>>, %arg8: memref<1x384xf32, #tpu.memory_space<vmem>>, %arg9: memref<384x768xbf16, #tpu.memory_space<vmem>>, %arg10: memref<1x768xf32, #tpu.memory_space<vmem>>, %arg11: memref<768x768xbf16, #tpu.memory_space<vmem>>, %arg12: memref<1x768xf32, #tpu.memory_space<vmem>>, %arg13: memref<2x768xf32, #tpu.memory_space<vmem>>) attributes {dimension_semantics = [], scalar_prefetch = 0 : i64, scratch_operands = 0 : i64, tpu.core_type = #tpu.core_type<tc>} {
    %c0 = arith.constant 0 : index
    %c0_0 = arith.constant 0 : index
    %0 = vector.load %arg0[%c0, %c0_0] : memref<2x768xf32, #tpu.memory_space<vmem>>, vector<2x768xf32>
    %1 = arith.truncf %0 : vector<2x768xf32> to vector<2x768xbf16>
    %c0_1 = arith.constant 0 : index
    %c0_2 = arith.constant 0 : index
    %2 = vector.load %arg1[%c0_1, %c0_2] : memref<768x768xbf16, #tpu.memory_space<vmem>>, vector<768x768xbf16>
    %cst = arith.constant dense<0.000000e+00> : vector<2x768xf32>
    %3 = tpu.matmul %1, %2, %cst {dimension_numbers = #tpu.dot_dimension_numbers<[1], [0], [0], [1], [0, 0, 1, 1], [], []>} : vector<2x768xbf16>, vector<768x768xbf16>, vector<2x768xf32> -> vector<2x768xf32>
    %c0_3 = arith.constant 0 : index
    %c0_4 = arith.constant 0 : index
    %4 = vector.load %arg2[%c0_3, %c0_4] : memref<1x768xf32, #tpu.memory_space<vmem>>, vector<1x768xf32>
    %5 = vector.broadcast %4 : vector<1x768xf32> to vector<2x768xf32>
    %6 = arith.addf %3, %5 : vector<2x768xf32>
    %cst_5 = arith.constant 0.000000e+00 : f32
    %7 = vector.broadcast %cst_5 : f32 to vector<2x768xf32>
    %8 = arith.maximumf %6, %7 : vector<2x768xf32>
    %9 = arith.truncf %8 : vector<2x768xf32> to vector<2x768xbf16>
    %c0_6 = arith.constant 0 : index
    %c0_7 = arith.constant 0 : index
    %10 = vector.load %arg3[%c0_6, %c0_7] : memref<768x384xbf16, #tpu.memory_space<vmem>>, vector<768x384xbf16>
    %cst_8 = arith.constant dense<0.000000e+00> : vector<2x384xf32>
    %11 = tpu.matmul %9, %10, %cst_8 {dimension_numbers = #tpu.dot_dimension_numbers<[1], [0], [0], [1], [0, 0, 1, 1], [], []>} : vector<2x768xbf16>, vector<768x384xbf16>, vector<2x384xf32> -> vector<2x384xf32>
    %c0_9 = arith.constant 0 : index
    %c0_10 = arith.constant 0 : index
    %12 = vector.load %arg4[%c0_9, %c0_10] : memref<1x384xf32, #tpu.memory_space<vmem>>, vector<1x384xf32>
    %13 = vector.broadcast %12 : vector<1x384xf32> to vector<2x384xf32>
    %14 = arith.addf %11, %13 : vector<2x384xf32>
    %cst_11 = arith.constant 0.000000e+00 : f32
    %15 = vector.broadcast %cst_11 : f32 to vector<2x384xf32>
    %16 = arith.maximumf %14, %15 : vector<2x384xf32>
    %17 = arith.truncf %16 : vector<2x384xf32> to vector<2x384xbf16>
    %c0_12 = arith.constant 0 : index
    %c0_13 = arith.constant 0 : index
    %18 = vector.load %arg5[%c0_12, %c0_13] : memref<384x192xbf16, #tpu.memory_space<vmem>>, vector<384x192xbf16>
    %cst_14 = arith.constant dense<0.000000e+00> : vector<2x192xf32>
    %19 = tpu.matmul %17, %18, %cst_14 {dimension_numbers = #tpu.dot_dimension_numbers<[1], [0], [0], [1], [0, 0, 1, 1], [], []>} : vector<2x384xbf16>, vector<384x192xbf16>, vector<2x192xf32> -> vector<2x192xf32>
    %c0_15 = arith.constant 0 : index
    %c0_16 = arith.constant 0 : index
    %20 = vector.load %arg6[%c0_15, %c0_16] : memref<1x192xf32, #tpu.memory_space<vmem>>, vector<1x192xf32>
    %21 = vector.broadcast %20 : vector<1x192xf32> to vector<2x192xf32>
    %22 = arith.addf %19, %21 : vector<2x192xf32>
    %cst_17 = arith.constant 0.000000e+00 : f32
    %23 = vector.broadcast %cst_17 : f32 to vector<2x192xf32>
    %24 = arith.maximumf %22, %23 : vector<2x192xf32>
    %25 = arith.truncf %24 : vector<2x192xf32> to vector<2x192xbf16>
    %c0_18 = arith.constant 0 : index
    %c0_19 = arith.constant 0 : index
    %26 = vector.load %arg7[%c0_18, %c0_19] : memref<192x384xbf16, #tpu.memory_space<vmem>>, vector<192x384xbf16>
    %cst_20 = arith.constant dense<0.000000e+00> : vector<2x384xf32>
    %27 = tpu.matmul %25, %26, %cst_20 {dimension_numbers = #tpu.dot_dimension_numbers<[1], [0], [0], [1], [0, 0, 1, 1], [], []>} : vector<2x192xbf16>, vector<192x384xbf16>, vector<2x384xf32> -> vector<2x384xf32>
    %c0_21 = arith.constant 0 : index
    %c0_22 = arith.constant 0 : index
    %28 = vector.load %arg8[%c0_21, %c0_22] : memref<1x384xf32, #tpu.memory_space<vmem>>, vector<1x384xf32>
    %29 = vector.broadcast %28 : vector<1x384xf32> to vector<2x384xf32>
    %30 = arith.addf %27, %29 : vector<2x384xf32>
    %cst_23 = arith.constant 0.000000e+00 : f32
    %31 = vector.broadcast %cst_23 : f32 to vector<2x384xf32>
    %32 = arith.maximumf %30, %31 : vector<2x384xf32>
    %33 = arith.truncf %32 : vector<2x384xf32> to vector<2x384xbf16>
    %c0_24 = arith.constant 0 : index
    %c0_25 = arith.constant 0 : index
    %34 = vector.load %arg9[%c0_24, %c0_25] : memref<384x768xbf16, #tpu.memory_space<vmem>>, vector<384x768xbf16>
    %cst_26 = arith.constant dense<0.000000e+00> : vector<2x768xf32>
    %35 = tpu.matmul %33, %34, %cst_26 {dimension_numbers = #tpu.dot_dimension_numbers<[1], [0], [0], [1], [0, 0, 1, 1], [], []>} : vector<2x384xbf16>, vector<384x768xbf16>, vector<2x768xf32> -> vector<2x768xf32>
    %c0_27 = arith.constant 0 : index
    %c0_28 = arith.constant 0 : index
    %36 = vector.load %arg10[%c0_27, %c0_28] : memref<1x768xf32, #tpu.memory_space<vmem>>, vector<1x768xf32>
    %37 = vector.broadcast %36 : vector<1x768xf32> to vector<2x768xf32>
    %38 = arith.addf %35, %37 : vector<2x768xf32>
    %cst_29 = arith.constant 0.000000e+00 : f32
    %39 = vector.broadcast %cst_29 : f32 to vector<2x768xf32>
    %40 = arith.maximumf %38, %39 : vector<2x768xf32>
    %41 = arith.truncf %40 : vector<2x768xf32> to vector<2x768xbf16>
    %c0_30 = arith.constant 0 : index
    %c0_31 = arith.constant 0 : index
    %42 = vector.load %arg11[%c0_30, %c0_31] : memref<768x768xbf16, #tpu.memory_space<vmem>>, vector<768x768xbf16>
    %cst_32 = arith.constant dense<0.000000e+00> : vector<2x768xf32>
    %43 = tpu.matmul %41, %42, %cst_32 {dimension_numbers = #tpu.dot_dimension_numbers<[1], [0], [0], [1], [0, 0, 1, 1], [], []>} : vector<2x768xbf16>, vector<768x768xbf16>, vector<2x768xf32> -> vector<2x768xf32>
    %c0_33 = arith.constant 0 : index
    %c0_34 = arith.constant 0 : index
    %44 = vector.load %arg12[%c0_33, %c0_34] : memref<1x768xf32, #tpu.memory_space<vmem>>, vector<1x768xf32>
    %45 = vector.broadcast %44 : vector<1x768xf32> to vector<2x768xf32>
    %46 = arith.addf %43, %45 : vector<2x768xf32>
    %c0_35 = arith.constant 0 : index
    %c0_36 = arith.constant 0 : index
    %47 = vector.load %arg13[%c0_35, %c0_36] : memref<2x768xf32, #tpu.memory_space<vmem>>, vector<2x768xf32>
    tpu.vector_store %arg13[%c0_35, %c0_36], %46 {strides = array<i32>} : memref<2x768xf32, #tpu.memory_space<vmem>>, vector<2x768xf32>,
    return
  }
}

</mosaic_0001>

<bundles_post_ra>
// kernel: aenet_forward.1
= control target key start
LH: loop header
LB: loop body
LE: loop exit
PB: predicated region body
PF: predicated region fallthrough
CT: control target
= control target key end

     0   :  { %18 = vsyncpa [#allocation3], 0  ;;  %s11009_s0 = inlined_call_operand.vmem [shape: f32[2,768], index: 0, kind: input, shape index: {}]   ;;  %s11010_s1 = inlined_call_operand.hbm [shape: bf16[768,768], index: 1, kind: input, shape index: {}]   ;;  %s11011_s2 = inlined_call_operand.hbm [shape: f32[1,768], index: 2, kind: input, shape index: {}]   ;;  %s11012_s3 = inlined_call_operand.hbm [shape: bf16[768,384], index: 3, kind: input, shape index: {}]   ;;  %s11013_s4 = inlined_call_operand.hbm [shape: f32[1,384], index: 4, kind: input, shape index: {}]   ;;  %s11014_s5 = inlined_call_operand.vmem [shape: bf16[384,192], index: 5, kind: input, shape index: {}]   ;;  %s11015_s6 = inlined_call_operand.hbm [shape: f32[1,192], index: 6, kind: input, shape index: {}]   ;;  %s11016_s7 = inlined_call_operand.hbm [shape: bf16[192,384], index: 7, kind: input, shape index: {}]   ;;  %s11017_s8 = inlined_call_operand.hbm [shape: f32[1,384], index: 8, kind: input, shape index: {}]   ;;  %s11018_s9 = inlined_call_operand.hbm [shape: bf16[384,768], index: 9, kind: input, shape index: {}]   ;;  %s11019_s10 = inlined_call_operand.hbm [shape: f32[1,768], index: 10, kind: input, shape index: {}]   ;;  %s11020_s11 = inlined_call_operand.hbm [shape: bf16[768,768], index: 11, kind: input, shape index: {}]   ;;  %s11021_s12 = inlined_call_operand.hbm [shape: f32[1,768], index: 12, kind: input, shape index: {}]   ;;  %s11022_s13 = inlined_call_operand.vmem [shape: f32[2,768], index: 13, kind: output, shape index: {}]  }
   0x1   :  { %19 = vsyncpa [#allocation5], 0 }
   0x2   :  { %20 = vsyncpa [#allocation8], 0 }
   0x3   :  { %21 = vsyncpa [#allocation11], 0 }
   0x4   :  { %22 = vsyncpa [#allocation14], 0 }
   0x5   :  { %23 = vsyncpa [#allocation17], 0  ;;  %s10427_s25 = smov [#allocation4]   ;;  %s10428_s27 = smov [#allocation7]  }
   0x6   :  { %s44_s26 = sshll.u32 %s10427_s25, 4  ;;  %s66_s28 = sshll.u32 %s10428_s27, 4  ;;  %s45_s26 = int_to_ptr.vmem [resolvable:$true] %s44_s26  ;;  %s67_s28 = int_to_ptr.vmem [resolvable:$true] %s66_s28 }
   0x7   :  { %s10173_s14 = scalar_lea.hbm %s11011_s2, 96 }
   0x8   :  { %p10174_p0 = scmp.ne.s32.totalorder %s11011_s2, %s10173_s14  ;;  %p10177_p1 = scmp.lt.u32.totalorder %s10173_s14, %s11011_s2 }
   0xa   :  { %p10179_p2 = pnand %p10177_p1, %p10174_p0 }
   0xc   :  { %10182 = shalt.err (!%p10179_p2)
}
   0xd   :  { %s10183_s19 = scalar_lea.vmem %s45_s26, 96  ;;  %p10188_p4 = scmp.lt.s32.totalorder %s45_s26, %s45_s26 }
   0xe   :  { %p10184_p3 = scmp.ne.s32.totalorder %s45_s26, %s10183_s19  ;;  %p10189_p5 = scmp.lt.s32.totalorder %s10183_s19, %s10183_s19 }
  0x10   :  { %p10190_p6 = por %p10189_p5, %p10188_p4 }
  0x12   :  { %p10191_p7 = pnand %p10190_p6, %p10184_p3 }
  0x14   :  { %10194 = shalt.err (!%p10191_p7)
}
  0x15   :  { %47 = dma.hbm_to_vmem [thread:$0]  %s11011_s2, 96, %s45_s26, [#allocation5]  }
  0x16   :  { %s10195_s24 = scalar_lea.hbm %s11013_s4, 48 }
  0x17   :  { %p10196_p8 = scmp.ne.s32.totalorder %s11013_s4, %s10195_s24  ;;  %p10199_p9 = scmp.lt.u32.totalorder %s10195_s24, %s11013_s4 }
  0x19   :  { %p10201_p10 = pnand %p10199_p9, %p10196_p8 }
  0x1b   :  { %10204 = shalt.err (!%p10201_p10)
}
  0x1c   :  { %s10205_s14 = scalar_lea.vmem %s67_s28, 48  ;;  %s10209_s15 = scalar_lea.vmem %s67_s28, 64 }
  0x1d   :  { %p10206_p11 = scmp.ne.s32.totalorder %s67_s28, %s10205_s14  ;;  %p10210_p12 = scmp.lt.s32.totalorder %s67_s28, %s67_s28 }
  0x1e   :  { %p10211_p13 = scmp.lt.s32.totalorder %s10209_s15, %s10205_s14 }
  0x20   :  { %p10212_p0 = por %p10211_p13, %p10210_p12 }
  0x22   :  { %p10213_p1 = pnand %p10212_p0, %p10206_p11 }
  0x24   :  { %10216 = shalt.err (!%p10213_p1)
}
  0x25   :  { %69 = dma.hbm_to_vmem [thread:$0]  %s11013_s4, 48, %s67_s28, [#allocation8]  }
  0x26   :  { %s10429_s16 = smov [#allocation10]   ;;  %s10217_s20 = scalar_lea.hbm %s11016_s7, 4608 }
  0x27   :  { %s87_s17 = sshll.u32 %s10429_s16, 4  ;;  %p10218_p2 = scmp.ne.s32.totalorder %s11016_s7, %s10217_s20  ;;  %s88_s17 = int_to_ptr.vmem [resolvable:$true] %s87_s17 }
  0x28   :  { %p10221_p3 = scmp.lt.u32.totalorder %s10217_s20, %s11016_s7 }
  0x2a   :  { %p10223_p4 = pnand %p10221_p3, %p10218_p2 }
  0x2c   :  { %10226 = shalt.err (!%p10223_p4)
}
  0x2d   :  { %s10227_s25 = scalar_lea.vmem %s88_s17, 4608  ;;  %p10232_p6 = scmp.lt.s32.totalorder %s88_s17, %s88_s17 }
  0x2e   :  { %p10228_p5 = scmp.ne.s32.totalorder %s88_s17, %s10227_s25  ;;  %p10233_p7 = scmp.lt.s32.totalorder %s10227_s25, %s10227_s25 }
  0x30   :  { %p10234_p8 = por %p10233_p7, %p10232_p6 }
  0x32   :  { %p10235_p9 = pnand %p10234_p8, %p10228_p5 }
  0x34   :  { %10238 = shalt.err (!%p10235_p9)
}
  0x35   :  { %s10430_s4 = smov 192   ;;  %s10431_s28 = smov 12  }
  0x36   :  { %93 = dma.hbm_to_vmem [thread:$0]  %s11016_s7, 4608, %s88_s17, [#allocation11], %s10430_s4, %s10430_s4, %s10431_s28  }
  0x37   :  { %s10432_s30 = smov [#allocation13]   ;;  %s10433_s15 = smov [#allocation16]  }
  0x38   :  { %s109_s14 = sshll.u32 %s10432_s30, 4  ;;  %s131_s2 = sshll.u32 %s10433_s15, 4  ;;  %s110_s14 = int_to_ptr.vmem [resolvable:$true] %s109_s14  ;;  %s132_s2 = int_to_ptr.vmem [resolvable:$true] %s131_s2 }
  0x39   :  { %s10239_s18 = scalar_lea.hbm %s11018_s9, 18432 }
  0x3a   :  { %p10240_p10 = scmp.ne.s32.totalorder %s11018_s9, %s10239_s18  ;;  %p10243_p11 = scmp.lt.u32.totalorder %s10239_s18, %s11018_s9 }
  0x3c   :  { %p10245_p12 = pnand %p10243_p11, %p10240_p10 }
  0x3e   :  { %10248 = shalt.err (!%p10245_p12)
}
  0x3f   :  { %s10249_s7 = scalar_lea.vmem %s110_s14, 18432  ;;  %p10254_p0 = scmp.lt.s32.totalorder %s110_s14, %s110_s14 }
  0x40   :  { %p10250_p13 = scmp.ne.s32.totalorder %s110_s14, %s10249_s7  ;;  %p10255_p1 = scmp.lt.s32.totalorder %s10249_s7, %s10249_s7 }
  0x42   :  { %p10256_p2 = por %p10255_p1, %p10254_p0 }
  0x44   :  { %p10257_p3 = pnand %p10256_p2, %p10250_p13 }
  0x46   :  { %10260 = shalt.err (!%p10257_p3)
}
  0x47   :  { %s10434_s17 = smov 384   ;;  %s10435_s23 = smov 24  }
  0x48   :  { %115 = dma.hbm_to_vmem [thread:$0]  %s11018_s9, 18432, %s110_s14, [#allocation14], %s10434_s17, %s10434_s17, %s10435_s23  }
  0x49   :  { %s10261_s30 = scalar_lea.hbm %s11020_s11, 36864 }
  0x4a   :  { %p10262_p4 = scmp.ne.s32.totalorder %s11020_s11, %s10261_s30  ;;  %p10265_p5 = scmp.lt.u32.totalorder %s10261_s30, %s11020_s11 }
  0x4c   :  { %p10267_p6 = pnand %p10265_p5, %p10262_p4 }
  0x4e   :  { %10270 = shalt.err (!%p10267_p6)
}
  0x4f   :  { %s10271_s19 = scalar_lea.vmem %s132_s2, 36864  ;;  %p10276_p8 = scmp.lt.s32.totalorder %s132_s2, %s132_s2 }
  0x50   :  { %p10272_p7 = scmp.ne.s32.totalorder %s132_s2, %s10271_s19  ;;  %p10277_p9 = scmp.lt.s32.totalorder %s10271_s19, %s10271_s19 }
  0x52   :  { %p10278_p10 = por %p10277_p9, %p10276_p8 }
  0x54   :  { %p10279_p11 = pnand %p10278_p10, %p10272_p7 }
  0x56   :  { %10282 = shalt.err (!%p10279_p11)
}
  0x57   :  { %137 = dma.hbm_to_vmem [thread:$0]  %s11020_s11, 36864, %s132_s2, [#allocation17], %s10434_s17, %s10434_s17, %s10435_s23  }
  0x58   :  { %s10436_s20 = smov [#allocation2]   ;;  %s10437_s22 = smov [#allocation6]  }
  0x59   :  { %s31_s21 = sshll.u32 %s10436_s20, 4  ;;  %s53_s7 = sshll.u32 %s10437_s22, 4  ;;  %s32_s21 = int_to_ptr.vmem [resolvable:$true] %s31_s21  ;;  %s54_s7 = int_to_ptr.vmem [resolvable:$true] %s53_s7 }
  0x5a   :  { %s10283_s27 = scalar_lea.hbm %s11010_s1, 36864 }
  0x5b   :  { %p10284_p12 = scmp.ne.s32.totalorder %s11010_s1, %s10283_s27  ;;  %p10287_p13 = scmp.lt.u32.totalorder %s10283_s27, %s11010_s1 }
  0x5d   :  { %p10289_p0 = pnand %p10287_p13, %p10284_p12 }
  0x5f   :  { %10292 = shalt.err (!%p10289_p0)
}
  0x60   :  { %s10293_s11 = scalar_lea.vmem %s32_s21, 36864  ;;  %p10298_p2 = scmp.lt.s32.totalorder %s32_s21, %s32_s21 }
  0x61   :  { %p10294_p1 = scmp.ne.s32.totalorder %s32_s21, %s10293_s11  ;;  %p10299_p3 = scmp.lt.s32.totalorder %s10293_s11, %s10293_s11 }
  0x63   :  { %p10300_p4 = por %p10299_p3, %p10298_p2 }
  0x65   :  { %p10301_p5 = pnand %p10300_p4, %p10294_p1 }
  0x67   :  { %10304 = shalt.err (!%p10301_p5)
}
  0x68   :  { %37 = dma.hbm_to_vmem [thread:$0]  %s11010_s1, 36864, %s32_s21, [#allocation3], %s10434_s17, %s10434_s17, %s10435_s23  }
  0x69   :  { %s10305_s9 = scalar_lea.hbm %s11012_s3, 18432 }
  0x6a   :  { %p10306_p6 = scmp.ne.s32.totalorder %s11012_s3, %s10305_s9  ;;  %p10309_p7 = scmp.lt.u32.totalorder %s10305_s9, %s11012_s3 }
  0x6c   :  { %p10311_p8 = pnand %p10309_p7, %p10306_p6 }
  0x6e   :  { %10314 = shalt.err (!%p10311_p8)
}
  0x6f   :  { %s10315_s25 = scalar_lea.vmem %s54_s7, 18432  ;;  %p10320_p10 = scmp.lt.s32.totalorder %s54_s7, %s54_s7 }
  0x70   :  { %p10316_p9 = scmp.ne.s32.totalorder %s54_s7, %s10315_s25  ;;  %p10321_p11 = scmp.lt.s32.totalorder %s10315_s25, %s10315_s25 }
  0x72   :  { %p10322_p12 = por %p10321_p11, %p10320_p10 }
  0x74   :  { %p10323_p13 = pnand %p10322_p12, %p10316_p9 }
  0x76   :  { %10326 = shalt.err (!%p10323_p13)
}
  0x77   :  { %59 = dma.hbm_to_vmem [thread:$0]  %s11012_s3, 18432, %s54_s7, [#allocation5], %s10430_s4, %s10430_s4, %s10431_s28  }
  0x78   :  { %s10438_s23 = smov [#allocation9]   ;;  %s10439_s27 = smov [#allocation12]  }
  0x79   :  { %s78_s21 = sshll.u32 %s10438_s23, 4  ;;  %s100_s29 = sshll.u32 %s10439_s27, 4  ;;  %s79_s21 = int_to_ptr.vmem [resolvable:$true] %s78_s21  ;;  %s101_s29 = int_to_ptr.vmem [resolvable:$true] %s100_s29 }
  0x7a   :  { %s10327_s26 = scalar_lea.hbm %s11015_s6, 32 }
  0x7b   :  { %p10328_p0 = scmp.ne.s32.totalorder %s11015_s6, %s10327_s26  ;;  %p10331_p1 = scmp.lt.u32.totalorder %s10327_s26, %s11015_s6 }
  0x7d   :  { %p10333_p2 = pnand %p10331_p1, %p10328_p0 }
  0x7f   :  { %10336 = shalt.err (!%p10333_p2)
}
  0x80   :  { %s10337_s3 = scalar_lea.vmem %s79_s21, 32  ;;  %p10342_p4 = scmp.lt.s32.totalorder %s79_s21, %s79_s21 }
  0x81   :  { %p10338_p3 = scmp.ne.s32.totalorder %s79_s21, %s10337_s3  ;;  %p10343_p5 = scmp.lt.s32.totalorder %s10337_s3, %s10337_s3 }
  0x83   :  { %p10344_p6 = por %p10343_p5, %p10342_p4 }
  0x85   :  { %p10345_p7 = pnand %p10344_p6, %p10338_p3 }
  0x87   :  { %10348 = shalt.err (!%p10345_p7)
}
  0x88   :  { %81 = dma.hbm_to_vmem [thread:$0]  %s11015_s6, 32, %s79_s21, [#allocation8]  }
  0x89   :  { %s10349_s9 = scalar_lea.hbm %s11017_s8, 48 }
  0x8a   :  { %p10350_p8 = scmp.ne.s32.totalorder %s11017_s8, %s10349_s9  ;;  %p10353_p9 = scmp.lt.u32.totalorder %s10349_s9, %s11017_s8 }
  0x8c   :  { %p10355_p10 = pnand %p10353_p9, %p10350_p8 }
  0x8e   :  { %10358 = shalt.err (!%p10355_p10)
}
  0x8f   :  { %s10359_s25 = scalar_lea.vmem %s101_s29, 48  ;;  %s10363_s1 = scalar_lea.vmem %s101_s29, 64 }
  0x90   :  { %p10360_p11 = scmp.ne.s32.totalorder %s101_s29, %s10359_s25  ;;  %p10364_p12 = scmp.lt.s32.totalorder %s101_s29, %s101_s29 }
  0x91   :  { %p10365_p13 = scmp.lt.s32.totalorder %s10363_s1, %s10359_s25 }
  0x93   :  { %p10366_p0 = por %p10365_p13, %p10364_p12 }
  0x95   :  { %p10367_p1 = pnand %p10366_p0, %p10360_p11 }
  0x97   :  { %10370 = shalt.err (!%p10367_p1)
}
  0x98   :  { %103 = dma.hbm_to_vmem [thread:$0]  %s11017_s8, 48, %s101_s29, [#allocation11]  }
  0x99   :  { %s10440_s23 = smov [#allocation15]   ;;  %s10441_s27 = smov [#allocation18]  }
  0x9a   :  { %s122_s21 = sshll.u32 %s10440_s23, 4  ;;  %s144_s30 = sshll.u32 %s10441_s27, 4  ;;  %s123_s21 = int_to_ptr.vmem [resolvable:$true] %s122_s21  ;;  %s145_s30 = int_to_ptr.vmem [resolvable:$true] %s144_s30 }
  0x9b   :  { %s10371_s11 = scalar_lea.hbm %s11019_s10, 96 }
  0x9c   :  { %p10372_p2 = scmp.ne.s32.totalorder %s11019_s10, %s10371_s11  ;;  %p10375_p3 = scmp.lt.u32.totalorder %s10371_s11, %s11019_s10 }
  0x9e   :  { %p10377_p4 = pnand %p10375_p3, %p10372_p2 }
  0xa0   :  { %10380 = shalt.err (!%p10377_p4)
}
  0xa1   :  { %s10381_s8 = scalar_lea.vmem %s123_s21, 96  ;;  %p10386_p6 = scmp.lt.s32.totalorder %s123_s21, %s123_s21 }
  0xa2   :  { %p10382_p5 = scmp.ne.s32.totalorder %s123_s21, %s10381_s8  ;;  %p10387_p7 = scmp.lt.s32.totalorder %s10381_s8, %s10381_s8 }
  0xa4   :  { %p10388_p8 = por %p10387_p7, %p10386_p6 }
  0xa6   :  { %p10389_p9 = pnand %p10388_p8, %p10382_p5 }
  0xa8   :  { %10392 = shalt.err (!%p10389_p9)
}
  0xa9   :  { %125 = dma.hbm_to_vmem [thread:$0]  %s11019_s10, 96, %s123_s21, [#allocation14]  }
  0xaa   :  { %s10393_s19 = scalar_lea.hbm %s11021_s12, 96 }
  0xab   :  { %p10394_p10 = scmp.ne.s32.totalorder %s11021_s12, %s10393_s19  ;;  %p10397_p11 = scmp.lt.u32.totalorder %s10393_s19, %s11021_s12 }
  0xad   :  { %p10399_p12 = pnand %p10397_p11, %p10394_p10 }
  0xaf   :  { %10402 = shalt.err (!%p10399_p12)
}
  0xb0   :  { %s10403_s24 = scalar_lea.vmem %s145_s30, 96  ;;  %p10408_p0 = scmp.lt.s32.totalorder %s145_s30, %s145_s30 }
  0xb1   :  { %p10404_p13 = scmp.ne.s32.totalorder %s145_s30, %s10403_s24  ;;  %p10409_p1 = scmp.lt.s32.totalorder %s10403_s24, %s10403_s24 }
  0xb3   :  { %p10410_p2 = por %p10409_p1, %p10408_p0 }
  0xb5   :  { %p10411_p3 = pnand %p10410_p2, %p10404_p13 }
  0xb7   :  { %10414 = shalt.err (!%p10411_p3)
}
  0xb8   :  { %147 = dma.hbm_to_vmem [thread:$0]  %s11021_s12, 96, %s145_s30, [#allocation17]  }
  0xb9   :  { %10415 = dma.done.wait [#allocation3], 36864  }
  0xba   :  { %10416 = vsyncadd [#allocation3], 4294930432 }
  0xbb   :  { %10417 = dma.done.wait [#allocation5], 18528  }
  0xbc   :  { %10418 = vsyncadd [#allocation5], 4294948768 }
  0xbd   :  { %10419 = dma.done.wait [#allocation8], 80  }
  0xbe   :  { %10420 = vsyncadd [#allocation8], 4294967216 }
  0xbf   :  { %10421 = dma.done.wait [#allocation11], 4656  }
  0xc0   :  { %10422 = vsyncadd [#allocation11], 4294962640 }
  0xc1   :  { %10423 = dma.done.wait [#allocation14], 18528  }
  0xc2   :  { %10424 = vsyncadd [#allocation14], 4294948768 }
  0xc3   :  { %10425 = dma.done.wait [#allocation17], 36960  }
  0xc4   :  { %10426 = vsyncadd [#allocation17], 4294930336  ;;  %v8779_v0 = vld [vmem:[#allocation2 + $0x4] ss:$24 sps:$4 sm:$0xff]   ;;  %v8783_v2 = vld [vmem:[#allocation2] ss:$24 sps:$4 sm:$0xff]   ;;  %v190_v38 = vlaneseq }
  0xc5   :  { %v8781_v1 = vld [vmem:[#allocation2 + $0x304] ss:$24 sps:$4 sm:$0xff]   ;;  %1983 = vmatprep.subr.bf16.mxu1 %v8779_v0  ;;  %v8784_v3 = vld [vmem:[#allocation2 + $0x300] ss:$24 sps:$4 sm:$0xff]   ;;  %v8785_v4 = vld [vmem:[#allocation2 + $0x34] ss:$24 sps:$4 sm:$0xff]  }
  0xc6   :  { %2024 = vmatprep.subr.bf16.mxu0 %v8781_v1  ;;  %1984 = vmatpush1.bf16.msra.mxu1 %v8783_v2  ;;  %v8787_v5 = vld [vmem:[#allocation2 + $0x334] ss:$24 sps:$4 sm:$0xff]   ;;  %v8789_v6 = vld [vmem:[#allocation2 + $0x30] ss:$24 sps:$4 sm:$0xff]   ;;  %v8791_v8 = vld [vmem:[#allocation2 + $0x64] ss:$24 sps:$4 sm:$0xff]  }
  0xc7   :  { %2025 = vmatpush1.bf16.msra.mxu0 %v8784_v3  ;;  %1985 = vmatprep.subr.bf16.mxu1 %v8785_v4  ;;  %v8790_v7 = vld [vmem:[#allocation2 + $0x330] ss:$24 sps:$4 sm:$0xff]   ;;  %v8793_v9 = vld [vmem:[#allocation2 + $0x364] ss:$24 sps:$4 sm:$0xff]   ;;  %v8795_v10 = vld [vmem:[#allocation2 + $0x60] ss:$24 sps:$4 sm:$0xff]  }
  0xc8   :  { %2026 = vmatprep.subr.bf16.mxu0 %v8787_v5  ;;  %v8796_v11 = vld [vmem:[#allocation2 + $0x360] ss:$24 sps:$4 sm:$0xff]   ;;  %v8797_v12 = vld [vmem:[#allocation2 + $0x94] ss:$24 sps:$4 sm:$0xff]   ;;  %v8801_v14 = vld [vmem:[#allocation2 + $0x90] ss:$24 sps:$4 sm:$0xff]  }
  0xc9   :  { %v8799_v13 = vld [vmem:[#allocation2 + $0x394] ss:$24 sps:$4 sm:$0xff]   ;;  %v8802_v15 = vld [vmem:[#allocation2 + $0x390] ss:$24 sps:$4 sm:$0xff]   ;;  %v8803_v16 = vld [vmem:[#allocation2 + $0xc4] ss:$24 sps:$4 sm:$0xff]  }
  0xca   :  { %1986 = vmatpush1.bf16.msra.mxu1 %v8789_v6  ;;  %v8805_v17 = vld [vmem:[#allocation2 + $0x3c4] ss:$24 sps:$4 sm:$0xff]   ;;  %v8807_v18 = vld [vmem:[#allocation2 + $0xc0] ss:$24 sps:$4 sm:$0xff]   ;;  %v8809_v20 = vld [vmem:[#allocation2 + $0xf4] ss:$24 sps:$4 sm:$0xff]  }
  0xcb   :  { %2027 = vmatpush1.bf16.msra.mxu0 %v8790_v7  ;;  %1987 = vmatprep.subr.bf16.mxu1 %v8791_v8  ;;  %v8808_v19 = vld [vmem:[#allocation2 + $0x3c0] ss:$24 sps:$4 sm:$0xff]   ;;  %v8811_v21 = vld [vmem:[#allocation2 + $0x3f4] ss:$24 sps:$4 sm:$0xff]   ;;  %v8813_v22 = vld [vmem:[#allocation2 + $0xf0] ss:$24 sps:$4 sm:$0xff]  }
  0xcc   :  { %2028 = vmatprep.subr.bf16.mxu0 %v8793_v9  ;;  %v8814_v23 = vld [vmem:[#allocation2 + $0x3f0] ss:$24 sps:$4 sm:$0xff]   ;;  %v8815_v24 = vld [vmem:[#allocation2 + $0x124] ss:$24 sps:$4 sm:$0xff]   ;;  %v8819_v26 = vld [vmem:[#allocation2 + $0x120] ss:$24 sps:$4 sm:$0xff]  }
  0xcd   :  { %v8817_v25 = vld [vmem:[#allocation2 + $0x424] ss:$24 sps:$4 sm:$0xff]   ;;  %v8820_v27 = vld [vmem:[#allocation2 + $0x420] ss:$24 sps:$4 sm:$0xff]   ;;  %v8821_v28 = vld [vmem:[#allocation2 + $0x154] ss:$24 sps:$4 sm:$0xff]  }
  0xce   :  { %1988 = vmatpush1.bf16.msra.mxu1 %v8795_v10  ;;  %v8823_v29 = vld [vmem:[#allocation2 + $0x454] ss:$24 sps:$4 sm:$0xff]   ;;  %v8825_v30 = vld [vmem:[#allocation2 + $0x150] ss:$24 sps:$4 sm:$0xff]   ;;  %v8827_v32 = vld [vmem:[#allocation2 + $0x184] ss:$24 sps:$4 sm:$0xff]  }
  0xcf   :  { %2029 = vmatpush1.bf16.msra.mxu0 %v8796_v11  ;;  %1989 = vmatprep.subr.bf16.mxu1 %v8797_v12  ;;  %v8826_v31 = vld [vmem:[#allocation2 + $0x450] ss:$24 sps:$4 sm:$0xff]   ;;  %v8829_v33 = vld [vmem:[#allocation2 + $0x484] ss:$24 sps:$4 sm:$0xff]   ;;  %v8831_v34 = vld [vmem:[#allocation2 + $0x180] ss:$24 sps:$4 sm:$0xff]  }
  0xd0   :  { %2030 = vmatprep.subr.bf16.mxu0 %v8799_v13  ;;  %v8832_v35 = vld [vmem:[#allocation2 + $0x480] ss:$24 sps:$4 sm:$0xff]   ;;  %v10442_v36 = vmov 1983009808   ;;  %v8833_v39 = vld [vmem:[#allocation2 + $0x1b4] ss:$24 sps:$4 sm:$0xff]  }
  0xd1   :  { %v188_v37 = vunpack.c.l.s4 %v10442_v36  ;;  %v8835_v40 = vld [vmem:[#allocation2 + $0x4b4] ss:$24 sps:$4 sm:$0xff]   ;;  %v8837_v41 = vld [vmem:[#allocation2 + $0x1b0] ss:$24 sps:$4 sm:$0xff]   ;;  %v10661_v43 = vshrl.u32 %v190_v38, 7  ;;  %v182_v52 = vld [vmem:[%s11009_s0] sm:$0xff] }
  0xd2   :  { %1990 = vmatpush1.bf16.msra.mxu1 %v8801_v14  ;;  %v8838_v44 = vld [vmem:[#allocation2 + $0x4b0] ss:$24 sps:$4 sm:$0xff]   ;;  %v8839_v45 = vld [vmem:[#allocation2 + $0x1e4] ss:$24 sps:$4 sm:$0xff]   ;;  %v8843_v47 = vld [vmem:[#allocation2 + $0x1e0] ss:$24 sps:$4 sm:$0xff]   ;;  %v186_v55 = vcombine.high %v182_v52, %v182_v52 }
  0xd3   :  { %2031 = vmatpush1.bf16.msra.mxu0 %v8802_v15  ;;  %1991 = vmatprep.subr.bf16.mxu1 %v8803_v16  ;;  %v189_v42 = vunpack.c.0.s8 %v188_v37  ;;  %v8841_v46 = vld [vmem:[#allocation2 + $0x4e4] ss:$24 sps:$4 sm:$0xff]   ;;  %v8844_v48 = vld [vmem:[#allocation2 + $0x4e0] ss:$24 sps:$4 sm:$0xff]   ;;  %v8845_v50 = vld [vmem:[#allocation2 + $0x214] ss:$24 sps:$4 sm:$0xff]  }
  0xd4   :  { %2032 = vmatprep.subr.bf16.mxu0 %v8805_v17  ;;  %v8847_v51 = vld [vmem:[#allocation2 + $0x514] ss:$24 sps:$4 sm:$0xff]   ;;  %v8849_v53 = vld [vmem:[#allocation2 + $0x210] ss:$24 sps:$4 sm:$0xff]   ;;  %v8851_v57 = vld [vmem:[#allocation2 + $0x244] ss:$24 sps:$4 sm:$0xff]  }
  0xd5   :  { %v10664_v49 = vsub.s32 %v189_v42, %v10661_v43  ;;  %v8850_v56 = vld [vmem:[#allocation2 + $0x510] ss:$24 sps:$4 sm:$0xff]   ;;  %v8853_v58 = vld [vmem:[#allocation2 + $0x544] ss:$24 sps:$4 sm:$0xff]   ;;  %v8855_v61 = vld [vmem:[#allocation2 + $0x240] ss:$24 sps:$4 sm:$0xff]  }
  0xd6   :  { %1992 = vmatpush1.bf16.msra.mxu1 %v8807_v18  ;;  %v8856_v0 = vld [vmem:[#allocation2 + $0x540] ss:$24 sps:$4 sm:$0xff]   ;;  %v8857_v1 = vld [vmem:[#allocation2 + $0x274] ss:$24 sps:$4 sm:$0xff]   ;;  %v8861_v4 = vld [vmem:[#allocation2 + $0x270] ss:$24 sps:$4 sm:$0xff]  }
  0xd7   :  { %2033 = vmatpush1.bf16.msra.mxu0 %v8808_v19  ;;  %1993 = vmatprep.subr.bf16.mxu1 %v8809_v20  ;;  %v193_v54 = vrot.slane %v182_v52, %v10664_v49  ;;  %v200_v60 = vrot.slane %v186_v55, %v10664_v49  ;;  %v8859_v2 = vld [vmem:[#allocation2 + $0x574] ss:$24 sps:$4 sm:$0xff]   ;;  %v8862_v5 = vld [vmem:[#allocation2 + $0x570] ss:$24 sps:$4 sm:$0xff]   ;;  %v8863_v6 = vld [vmem:[#allocation2 + $0x2a4] ss:$24 sps:$4 sm:$0xff]  }
  0xd8   :  { %2034 = vmatprep.subr.bf16.mxu0 %v8811_v21  ;;  %v8865_v7 = vld [vmem:[#allocation2 + $0x5a4] ss:$24 sps:$4 sm:$0xff]   ;;  %v8867_v8 = vld [vmem:[#allocation2 + $0x2a0] ss:$24 sps:$4 sm:$0xff]   ;;  %v8869_v10 = vld [vmem:[#allocation2 + $0x2d4] ss:$24 sps:$4 sm:$0xff]  }
  0xd9   :  { %v201_v59 = vcombine.high %v193_v54, %v193_v54  ;;  %v202_v63 = vcombine.high %v200_v60, %v200_v60  ;;  %v8868_v9 = vld [vmem:[#allocation2 + $0x5a0] ss:$24 sps:$4 sm:$0xff]   ;;  %v8871_v11 = vld [vmem:[#allocation2 + $0x5d4] ss:$24 sps:$4 sm:$0xff]   ;;  %v8873_v12 = vld [vmem:[#allocation2 + $0x2d0] ss:$24 sps:$4 sm:$0xff]   ;;  %v10677_v16 = vpack.c.bf16 %v193_v54, %v193_v54  ;;  %v10679_v18 = vpack.c.bf16 %v200_v60, %v200_v60 }
  0xda   :  { %1994 = vmatpush1.bf16.msra.mxu1 %v8813_v22  ;;  %v8874_v13 = vld [vmem:[#allocation2 + $0x5d0] ss:$24 sps:$4 sm:$0xff]   ;;  %v8878_v14 = vld [vmem:[#allocation2 + $0x604] ss:$24 sps:$4 sm:$0xff]   ;;  %v8876_v17 = vld [vmem:[#allocation2 + $0x600] ss:$24 sps:$4 sm:$0xff]  }
  0xdb   :  { %2035 = vmatpush1.bf16.msra.mxu0 %v8814_v23  ;;  %1995 = vmatprep.subr.bf16.mxu1 %v8815_v24  ;;  %v10671_v62 = vpack.c.bf16 %v201_v59, %v201_v59  ;;  %v10673_v3 = vpack.c.bf16 %v202_v63, %v202_v63  ;;  %v8881_v15 = vld [vmem:[#allocation2 + $0xc] ss:$24 sps:$4 sm:$0xff]   ;;  %v8879_v19 = vld [vmem:[#allocation2 + $0x8] ss:$24 sps:$4 sm:$0xff]   ;;  %v8887_v21 = vld [vmem:[#allocation2 + $0x3c] ss:$24 sps:$4 sm:$0xff]  }
  0xdc   :  { %2036 = vmatprep.subr.bf16.mxu0 %v8817_v25  ;;  %v8884_v20 = vld [vmem:[#allocation2 + $0x634] ss:$24 sps:$4 sm:$0xff]   ;;  %v8882_v22 = vld [vmem:[#allocation2 + $0x630] ss:$24 sps:$4 sm:$0xff]   ;;  %v8890_v24 = vld [vmem:[#allocation2 + $0x664] ss:$24 sps:$4 sm:$0xff]  }
  0xdd   :  { %2015 = vmatprep.mubr.bf16.mxu1 %v10671_v62  ;;  %2056 = vmatprep.mubr.bf16.mxu0 %v10673_v3  ;;  %v8885_v23 = vld [vmem:[#allocation2 + $0x38] ss:$24 sps:$4 sm:$0xff]   ;;  %v8893_v25 = vld [vmem:[#allocation2 + $0x6c] ss:$24 sps:$4 sm:$0xff]   ;;  %v8911_v37 = vld [vmem:[#allocation2 + $0xfc] ss:$24 sps:$4 sm:$0xff]  }
  0xde   :  { %1996 = vmatpush1.bf16.msra.mxu1 %v8819_v26  ;;  %v8888_v26 = vld [vmem:[#allocation2 + $0x660] ss:$24 sps:$4 sm:$0xff]   ;;  %v8908_v36 = vld [vmem:[#allocation2 + $0x6f4] ss:$24 sps:$4 sm:$0xff]   ;;  %v8906_v38 = vld [vmem:[#allocation2 + $0x6f0] ss:$24 sps:$4 sm:$0xff]  }
  0xdf   :  { %2037 = vmatpush1.bf16.msra.mxu0 %v8820_v27  ;;  %1997 = vmatprep.subr.bf16.mxu1 %v8821_v28  ;;  %v8891_v27 = vld [vmem:[#allocation2 + $0x68] ss:$24 sps:$4 sm:$0xff]   ;;  %v8896_v28 = vld [vmem:[#allocation2 + $0x694] ss:$24 sps:$4 sm:$0xff]   ;;  %v8921_v52 = vld [vmem:[#allocation2 + $0x158] ss:$24 sps:$4 sm:$0xff]  }
  0xe0   :  { %2038 = vmatprep.subr.bf16.mxu0 %v8823_v29  ;;  %v8899_v29 = vld [vmem:[#allocation2 + $0x9c] ss:$24 sps:$4 sm:$0xff]   ;;  %v10687_v42 = vld.sshfl [vmem:[%s11009_s0 + $0x8] sm:$0x33 pattern:$0x76325410] }
  0xe1   :  { %v8929_v54 = vld [vmem:[#allocation2 + $0x18c] ss:$24 sps:$4 sm:$0xff]   ;;  %v8924_v55 = vld [vmem:[#allocation2 + $0x780] ss:$24 sps:$4 sm:$0xff]   ;;  %v8930_v59 = vld [vmem:[#allocation2 + $0x7b0] ss:$24 sps:$4 sm:$0xff]  }
  0xe2   :  { %1998 = vmatpush1.bf16.msra.mxu1 %v8825_v30  ;;  %v8894_v30 = vld [vmem:[#allocation2 + $0x690] ss:$24 sps:$4 sm:$0xff]   ;;  %v8941_v63 = vld [vmem:[#allocation2 + $0x1ec] ss:$24 sps:$4 sm:$0xff]   ;;  %vm4233_vm0 = vcmask 523264  }
  0xe3   :  { %2039 = vmatpush1.bf16.msra.mxu0 %v8826_v31  ;;  %1999 = vmatprep.subr.bf16.mxu1 %v8827_v32  ;;  %v8897_v31 = vld [vmem:[#allocation2 + $0x98] ss:$24 sps:$4 sm:$0xff]   ;;  %v8902_v32 = vld [vmem:[#allocation2 + $0x6c4] ss:$24 sps:$4 sm:$0xff]  }
  0xe4   :  { %2040 = vmatprep.subr.bf16.mxu0 %v8829_v33  ;;  %v8905_v33 = vld [vmem:[#allocation2 + $0xcc] ss:$24 sps:$4 sm:$0xff]   ;;  %v8933_v60 = vld [vmem:[#allocation2 + $0x1b8] ss:$24 sps:$4 sm:$0xff]  }
  0xe6   :  { %2000 = vmatpush1.bf16.msra.mxu1 %v8831_v34  ;;  %v8900_v34 = vld [vmem:[#allocation2 + $0x6c0] ss:$24 sps:$4 sm:$0xff]  }
  0xe7   :  { %2041 = vmatpush1.bf16.msra.mxu0 %v8832_v35  ;;  %2001 = vmatprep.subr.bf16.mxu1 %v8833_v39  ;;  %v8903_v35 = vld [vmem:[#allocation2 + $0xc8] ss:$24 sps:$4 sm:$0xff]   ;;  %v8909_v39 = vld [vmem:[#allocation2 + $0xf8] ss:$24 sps:$4 sm:$0xff]  }
  0xe8   :  { %2042 = vmatprep.subr.bf16.mxu0 %v8835_v40  ;;  %v8914_v40 = vld [vmem:[#allocation2 + $0x724] ss:$24 sps:$4 sm:$0xff]  }
  0xea   :  { %2002 = vmatpush1.bf16.msra.mxu1 %v8837_v41  ;;  %v8917_v41 = vld [vmem:[#allocation2 + $0x12c] ss:$24 sps:$4 sm:$0xff]  }
  0xeb   :  { %2043 = vmatpush1.bf16.msra.mxu0 %v8838_v44  ;;  %2003 = vmatprep.subr.bf16.mxu1 %v8839_v45  ;;  %v210_v44 = vcombine.high %v10687_v42, %v10687_v42  ;;  %v8912_v45 = vld [vmem:[#allocation2 + $0x720] ss:$24 sps:$4 sm:$0xff]  }
  0xec   :  { %2044 = vmatprep.subr.bf16.mxu0 %v8841_v46  ;;  %v8915_v46 = vld [vmem:[#allocation2 + $0x128] ss:$24 sps:$4 sm:$0xff]  }
  0xee   :  { %2004 = vmatpush1.bf16.msra.mxu1 %v8843_v47  ;;  %v8920_v47 = vld [vmem:[#allocation2 + $0x754] ss:$24 sps:$4 sm:$0xff]  }
  0xef   :  { %2045 = vmatpush1.bf16.msra.mxu0 %v8844_v48  ;;  %2005 = vmatprep.subr.bf16.mxu1 %v8845_v50  ;;  %v8923_v48 = vld [vmem:[#allocation2 + $0x15c] ss:$24 sps:$4 sm:$0xff]   ;;  %v10691_v50 = vpack.c.bf16 %v210_v44, %v210_v44 }
  0xf0   :  { %2046 = vmatprep.subr.bf16.mxu0 %v8847_v51  ;;  %v8918_v51 = vld [vmem:[#allocation2 + $0x750] ss:$24 sps:$4 sm:$0xff]   ;;  %v9001_v44 = vld [vmem:[#allocation2 + $0xd4] ss:$24 sps:$4 sm:$0xff]  }
  0xf2   :  { %2006 = vmatpush1.bf16.msra.mxu1 %v8849_v53  ;;  %v8926_v53 = vld [vmem:[#allocation2 + $0x784] ss:$24 sps:$4 sm:$0xff]  }
  0xf3   :  { %2047 = vmatpush1.bf16.msra.mxu0 %v8850_v56  ;;  %2007 = vmatprep.subr.bf16.mxu1 %v8851_v57  ;;  %v8927_v56 = vld [vmem:[#allocation2 + $0x188] ss:$24 sps:$4 sm:$0xff]   ;;  %v8932_v57 = vld [vmem:[#allocation2 + $0x7b4] ss:$24 sps:$4 sm:$0xff]  }
  0xf4   :  { %2048 = vmatprep.subr.bf16.mxu0 %v8853_v58  ;;  %v8935_v58 = vld [vmem:[#allocation2 + $0x1bc] ss:$24 sps:$4 sm:$0xff]  }
  0xf6   :  { %2008 = vmatpush1.bf16.msra.mxu1 %v8855_v61  ;;  %v8938_v61 = vld [vmem:[#allocation2 + $0x7e4] ss:$24 sps:$4 sm:$0xff]  }
  0xf7   :  { %2049 = vmatpush1.bf16.msra.mxu0 %v8856_v0  ;;  %2009 = vmatprep.subr.bf16.mxu1 %v8857_v1  ;;  %v8936_v0 = vld [vmem:[#allocation2 + $0x7e0] ss:$24 sps:$4 sm:$0xff]  }
  0xf8   :  { %2050 = vmatprep.subr.bf16.mxu0 %v8859_v2  ;;  %v8939_v1 = vld [vmem:[#allocation2 + $0x1e8] ss:$24 sps:$4 sm:$0xff]   ;;  %v8944_v2 = vld [vmem:[#allocation2 + $0x814] ss:$24 sps:$4 sm:$0xff]  }
  0xfa   :  { %2010 = vmatpush1.bf16.msra.mxu1 %v8861_v4  ;;  %v8947_v4 = vld [vmem:[#allocation2 + $0x21c] ss:$24 sps:$4 sm:$0xff]  }
  0xfb   :  { %2051 = vmatpush1.bf16.msra.mxu0 %v8862_v5  ;;  %2011 = vmatprep.subr.bf16.mxu1 %v8863_v6  ;;  %v8942_v5 = vld [vmem:[#allocation2 + $0x810] ss:$24 sps:$4 sm:$0xff]  }
  0xfc   :  { %2052 = vmatprep.subr.bf16.mxu0 %v8865_v7  ;;  %v8945_v6 = vld [vmem:[#allocation2 + $0x218] ss:$24 sps:$4 sm:$0xff]   ;;  %v8950_v7 = vld [vmem:[#allocation2 + $0x844] ss:$24 sps:$4 sm:$0xff]  }
  0xfe   :  { %2012 = vmatpush1.bf16.msra.mxu1 %v8867_v8  ;;  %v8953_v8 = vld [vmem:[#allocation2 + $0x24c] ss:$24 sps:$4 sm:$0xff]  }
  0xff   :  { %2053 = vmatpush1.bf16.msra.mxu0 %v8868_v9  ;;  %2013 = vmatprep.subr.bf16.mxu1 %v8869_v10  ;;  %v8948_v9 = vld [vmem:[#allocation2 + $0x840] ss:$24 sps:$4 sm:$0xff]  }
 0x100   :  { %2054 = vmatprep.subr.bf16.mxu0 %v8871_v11  ;;  %v8951_v10 = vld [vmem:[#allocation2 + $0x248] ss:$24 sps:$4 sm:$0xff]   ;;  %v8956_v11 = vld [vmem:[#allocation2 + $0x874] ss:$24 sps:$4 sm:$0xff]  }
 0x102   :  { %2014 = vmatpush1.bf16.msra.mxu1 %v8873_v12  ;;  %v8959_v12 = vld [vmem:[#allocation2 + $0x27c] ss:$24 sps:$4 sm:$0xff]  }
 0x103   :  { %2055 = vmatpush1.bf16.msra.mxu0 %v8874_v13  ;;  %2106 = vmatprep.subr.bf16.mxu1 %v8881_v15  ;;  %v8954_v13 = vld [vmem:[#allocation2 + $0x870] ss:$24 sps:$4 sm:$0xff]   ;;  %v8962_v15 = vld [vmem:[#allocation2 + $0x8a4] ss:$24 sps:$4 sm:$0xff]  }
 0x104   :  { %2065 = vmatprep.subr.bf16.mxu0 %v8878_v14  ;;  %v8957_v14 = vld [vmem:[#allocation2 + $0x278] ss:$24 sps:$4 sm:$0xff]  }
 0x105   :  { %2016 = vmatmul.mubr.bf16.vlgmr.msra.gmra.mrb[0].mxu1 %v10677_v16 }
 0x106   :  { %2057 = vmatmul.mubr.bf16.vlgmr.msra.gmra.mrb[0].mxu0 %v10679_v18  ;;  %2107 = vmatpush1.bf16.msra.mxu1 %v8879_v19  ;;  %v8960_v19 = vld [vmem:[#allocation2 + $0x8a0] ss:$24 sps:$4 sm:$0xff]  }
 0x107   :  { %2066 = vmatpush1.bf16.msra.mxu0 %v8876_v17  ;;  %2108 = vmatprep.subr.bf16.mxu1 %v8887_v21  ;;  %v8965_v17 = vld [vmem:[#allocation2 + $0x2ac] ss:$24 sps:$4 sm:$0xff]  }
 0x108   :  { %2067 = vmatprep.subr.bf16.mxu0 %v8884_v20  ;;  %2138 = vmatprep.mubr.bf16.mxu1 %v10671_v62  ;;  %v8963_v20 = vld [vmem:[#allocation2 + $0x2a8] ss:$24 sps:$4 sm:$0xff]   ;;  %v8968_v21 = vld [vmem:[#allocation2 + $0x8d4] ss:$24 sps:$4 sm:$0xff]  }
 0x109   :  { %2097 = vmatprep.mubr.bf16.mxu0 %v10691_v50 }
 0x10a   :  { %2109 = vmatpush1.bf16.msra.mxu1 %v8885_v23  ;;  %v8966_v23 = vld [vmem:[#allocation2 + $0x8d0] ss:$24 sps:$4 sm:$0xff]  }
 0x10b   :  { %2068 = vmatpush1.bf16.msra.mxu0 %v8882_v22  ;;  %2110 = vmatprep.subr.bf16.mxu1 %v8893_v25  ;;  %v8971_v22 = vld [vmem:[#allocation2 + $0x2dc] ss:$24 sps:$4 sm:$0xff]   ;;  %v8974_v25 = vld [vmem:[#allocation2 + $0x30c] ss:$24 sps:$4 sm:$0xff]  }
 0x10c   :  { %2069 = vmatprep.subr.bf16.mxu0 %v8890_v24  ;;  %v8969_v24 = vld [vmem:[#allocation2 + $0x2d8] ss:$24 sps:$4 sm:$0xff]  }
 0x10e   :  { %2111 = vmatpush1.bf16.msra.mxu1 %v8891_v27  ;;  %v10696_v27 = vpack.c.bf16 %v10687_v42, %v10687_v42  ;;  %v8998_v42 = vld [vmem:[#allocation2 + $0x3cc] ss:$24 sps:$4 sm:$0xff]  }
 0x10f   :  { %2070 = vmatpush1.bf16.msra.mxu0 %v8888_v26  ;;  %2112 = vmatprep.subr.bf16.mxu1 %v8899_v29  ;;  %v8977_v26 = vld [vmem:[#allocation2 + $0x14] ss:$24 sps:$4 sm:$0xff]   ;;  %v8975_v29 = vld [vmem:[#allocation2 + $0x10] ss:$24 sps:$4 sm:$0xff]  }
 0x110   :  { %2071 = vmatprep.subr.bf16.mxu0 %v8896_v28  ;;  %v8972_v28 = vld [vmem:[#allocation2 + $0x308] ss:$24 sps:$4 sm:$0xff]  }
 0x112   :  { %2113 = vmatpush1.bf16.msra.mxu1 %v8897_v31  ;;  %v8983_v31 = vld [vmem:[#allocation2 + $0x44] ss:$24 sps:$4 sm:$0xff]  }
 0x113   :  { %2072 = vmatpush1.bf16.msra.mxu0 %v8894_v30  ;;  %2114 = vmatprep.subr.bf16.mxu1 %v8905_v33  ;;  %v8980_v30 = vld [vmem:[#allocation2 + $0x33c] ss:$24 sps:$4 sm:$0xff]   ;;  %v8981_v33 = vld [vmem:[#allocation2 + $0x40] ss:$24 sps:$4 sm:$0xff]  }
 0x114   :  { %2073 = vmatprep.subr.bf16.mxu0 %v8902_v32  ;;  %v8978_v32 = vld [vmem:[#allocation2 + $0x338] ss:$24 sps:$4 sm:$0xff]  }
 0x116   :  { %2115 = vmatpush1.bf16.msra.mxu1 %v8903_v35  ;;  %v8989_v35 = vld [vmem:[#allocation2 + $0x74] ss:$24 sps:$4 sm:$0xff]  }
 0x117   :  { %2074 = vmatpush1.bf16.msra.mxu0 %v8900_v34  ;;  %2116 = vmatprep.subr.bf16.mxu1 %v8911_v37  ;;  %v8986_v34 = vld [vmem:[#allocation2 + $0x36c] ss:$24 sps:$4 sm:$0xff]   ;;  %v8987_v37 = vld [vmem:[#allocation2 + $0x70] ss:$24 sps:$4 sm:$0xff]  }
 0x118   :  { %2075 = vmatprep.subr.bf16.mxu0 %v8908_v36  ;;  %v8984_v36 = vld [vmem:[#allocation2 + $0x368] ss:$24 sps:$4 sm:$0xff]  }
 0x11a   :  { %2117 = vmatpush1.bf16.msra.mxu1 %v8909_v39  ;;  %v8995_v39 = vld [vmem:[#allocation2 + $0xa4] ss:$24 sps:$4 sm:$0xff]  }
 0x11b   :  { %2076 = vmatpush1.bf16.msra.mxu0 %v8906_v38  ;;  %2118 = vmatprep.subr.bf16.mxu1 %v8917_v41  ;;  %v8992_v38 = vld [vmem:[#allocation2 + $0x39c] ss:$24 sps:$4 sm:$0xff]   ;;  %v8993_v41 = vld [vmem:[#allocation2 + $0xa0] ss:$24 sps:$4 sm:$0xff]  }
 0x11c   :  { %2077 = vmatprep.subr.bf16.mxu0 %v8914_v40  ;;  %v8990_v40 = vld [vmem:[#allocation2 + $0x398] ss:$24 sps:$4 sm:$0xff]  }
 0x11e   :  { %2119 = vmatpush1.bf16.msra.mxu1 %v8915_v46  ;;  %v9004_v46 = vld [vmem:[#allocation2 + $0x3fc] ss:$24 sps:$4 sm:$0xff]  }
 0x11f   :  { %2078 = vmatpush1.bf16.msra.mxu0 %v8912_v45  ;;  %2120 = vmatprep.subr.bf16.mxu1 %v8923_v48  ;;  %v8996_v45 = vld [vmem:[#allocation2 + $0x3c8] ss:$24 sps:$4 sm:$0xff]   ;;  %v9002_v48 = vld [vmem:[#allocation2 + $0x3f8] ss:$24 sps:$4 sm:$0xff]  }
 0x120   :  { %2079 = vmatprep.subr.bf16.mxu0 %v8920_v47  ;;  %v9007_v47 = vld [vmem:[#allocation2 + $0x104] ss:$24 sps:$4 sm:$0xff]  }
 0x122   :  { %2121 = vmatpush1.bf16.msra.mxu1 %v8921_v52  ;;  %v9010_v52 = vld [vmem:[#allocation2 + $0x42c] ss:$24 sps:$4 sm:$0xff]  }
 0x123   :  { %2080 = vmatpush1.bf16.msra.mxu0 %v8918_v51  ;;  %2122 = vmatprep.subr.bf16.mxu1 %v8929_v54  ;;  %v9005_v51 = vld [vmem:[#allocation2 + $0x100] ss:$24 sps:$4 sm:$0xff]  }
 0x124   :  { %2081 = vmatprep.subr.bf16.mxu0 %v8926_v53  ;;  %v9013_v53 = vld [vmem:[#allocation2 + $0x134] ss:$24 sps:$4 sm:$0xff]   ;;  %v9008_v54 = vld [vmem:[#allocation2 + $0x428] ss:$24 sps:$4 sm:$0xff]  }
 0x126   :  { %2123 = vmatpush1.bf16.msra.mxu1 %v8927_v56  ;;  %v9016_v56 = vld [vmem:[#allocation2 + $0x45c] ss:$24 sps:$4 sm:$0xff]  }
 0x127   :  { %2082 = vmatpush1.bf16.msra.mxu0 %v8924_v55  ;;  %2124 = vmatprep.subr.bf16.mxu1 %v8935_v58  ;;  %v9011_v55 = vld [vmem:[#allocation2 + $0x130] ss:$24 sps:$4 sm:$0xff]  }
 0x128   :  { %2083 = vmatprep.subr.bf16.mxu0 %v8932_v57  ;;  %v9019_v57 = vld [vmem:[#allocation2 + $0x164] ss:$24 sps:$4 sm:$0xff]   ;;  %v9014_v58 = vld [vmem:[#allocation2 + $0x458] ss:$24 sps:$4 sm:$0xff]  }
 0x12a   :  { %2125 = vmatpush1.bf16.msra.mxu1 %v8933_v60  ;;  %v9022_v60 = vld [vmem:[#allocation2 + $0x48c] ss:$24 sps:$4 sm:$0xff]  }
 0x12b   :  { %2084 = vmatpush1.bf16.msra.mxu0 %v8930_v59  ;;  %2126 = vmatprep.subr.bf16.mxu1 %v8941_v63  ;;  %v9017_v59 = vld [vmem:[#allocation2 + $0x160] ss:$24 sps:$4 sm:$0xff]  }
 0x12c   :  { %2085 = vmatprep.subr.bf16.mxu0 %v8938_v61  ;;  %v9025_v61 = vld [vmem:[#allocation2 + $0x194] ss:$24 sps:$4 sm:$0xff]   ;;  %v9020_v63 = vld [vmem:[#allocation2 + $0x488] ss:$24 sps:$4 sm:$0xff]  }
 0x12e   :  { %2127 = vmatpush1.bf16.msra.mxu1 %v8939_v1  ;;  %v9028_v1 = vld [vmem:[#allocation2 + $0x4bc] ss:$24 sps:$4 sm:$0xff]  }
 0x12f   :  { %2086 = vmatpush1.bf16.msra.mxu0 %v8936_v0  ;;  %2128 = vmatprep.subr.bf16.mxu1 %v8947_v4  ;;  %v9023_v0 = vld [vmem:[#allocation2 + $0x190] ss:$24 sps:$4 sm:$0xff]  }
 0x130   :  { %2087 = vmatprep.subr.bf16.mxu0 %v8944_v2  ;;  %v9031_v2 = vld [vmem:[#allocation2 + $0x1c4] ss:$24 sps:$4 sm:$0xff]   ;;  %v9026_v4 = vld [vmem:[#allocation2 + $0x4b8] ss:$24 sps:$4 sm:$0xff]  }
 0x132   :  { %2129 = vmatpush1.bf16.msra.mxu1 %v8945_v6  ;;  %v9034_v6 = vld [vmem:[#allocation2 + $0x4ec] ss:$24 sps:$4 sm:$0xff]  }
 0x133   :  { %2088 = vmatpush1.bf16.msra.mxu0 %v8942_v5  ;;  %2130 = vmatprep.subr.bf16.mxu1 %v8953_v8  ;;  %v9029_v5 = vld [vmem:[#allocation2 + $0x1c0] ss:$24 sps:$4 sm:$0xff]  }
 0x134   :  { %2089 = vmatprep.subr.bf16.mxu0 %v8950_v7  ;;  %v9037_v7 = vld [vmem:[#allocation2 + $0x1f4] ss:$24 sps:$4 sm:$0xff]   ;;  %v9032_v8 = vld [vmem:[#allocation2 + $0x4e8] ss:$24 sps:$4 sm:$0xff]  }
 0x136   :  { %2131 = vmatpush1.bf16.msra.mxu1 %v8951_v10  ;;  %v9040_v10 = vld [vmem:[#allocation2 + $0x51c] ss:$24 sps:$4 sm:$0xff]  }
 0x137   :  { %2090 = vmatpush1.bf16.msra.mxu0 %v8948_v9  ;;  %2132 = vmatprep.subr.bf16.mxu1 %v8959_v12  ;;  %v9035_v9 = vld [vmem:[#allocation2 + $0x1f0] ss:$24 sps:$4 sm:$0xff]  }
 0x138   :  { %2091 = vmatprep.subr.bf16.mxu0 %v8956_v11  ;;  %v9043_v11 = vld [vmem:[#allocation2 + $0x224] ss:$24 sps:$4 sm:$0xff]   ;;  %v9038_v12 = vld [vmem:[#allocation2 + $0x518] ss:$24 sps:$4 sm:$0xff]  }
 0x13a   :  { %2133 = vmatpush1.bf16.msra.mxu1 %v8957_v14  ;;  %v9046_v14 = vld [vmem:[#allocation2 + $0x54c] ss:$24 sps:$4 sm:$0xff]  }
 0x13b   :  { %2092 = vmatpush1.bf16.msra.mxu0 %v8954_v13  ;;  %2134 = vmatprep.subr.bf16.mxu1 %v8965_v17  ;;  %v9041_v13 = vld [vmem:[#allocation2 + $0x220] ss:$24 sps:$4 sm:$0xff]  }
 0x13c   :  { %2093 = vmatprep.subr.bf16.mxu0 %v8962_v15  ;;  %v9049_v15 = vld [vmem:[#allocation2 + $0x254] ss:$24 sps:$4 sm:$0xff]   ;;  %v9044_v17 = vld [vmem:[#allocation2 + $0x548] ss:$24 sps:$4 sm:$0xff]  }
 0x13e   :  { %2135 = vmatpush1.bf16.msra.mxu1 %v8963_v20  ;;  %v9052_v20 = vld [vmem:[#allocation2 + $0x57c] ss:$24 sps:$4 sm:$0xff]  }
 0x13f   :  { %2094 = vmatpush1.bf16.msra.mxu0 %v8960_v19  ;;  %2136 = vmatprep.subr.bf16.mxu1 %v8971_v22  ;;  %v9047_v19 = vld [vmem:[#allocation2 + $0x250] ss:$24 sps:$4 sm:$0xff]  }
 0x140   :  { %2095 = vmatprep.subr.bf16.mxu0 %v8968_v21  ;;  %v9055_v21 = vld [vmem:[#allocation2 + $0x284] ss:$24 sps:$4 sm:$0xff]   ;;  %v9050_v22 = vld [vmem:[#allocation2 + $0x578] ss:$24 sps:$4 sm:$0xff]  }
 0x142   :  { %2137 = vmatpush1.bf16.msra.mxu1 %v8969_v24  ;;  %v9058_v24 = vld [vmem:[#allocation2 + $0x5ac] ss:$24 sps:$4 sm:$0xff]  }
 0x143   :  { %2096 = vmatpush1.bf16.msra.mxu0 %v8966_v23  ;;  %2147 = vmatprep.subr.bf16.mxu1 %v8974_v25  ;;  %v9053_v23 = vld [vmem:[#allocation2 + $0x280] ss:$24 sps:$4 sm:$0xff]   ;;  %v9061_v25 = vld [vmem:[#allocation2 + $0x2b4] ss:$24 sps:$4 sm:$0xff]  }
 0x144   :  { %2229 = vmatprep.subr.bf16.mxu0 %v8977_v26  ;;  %v9056_v26 = vld [vmem:[#allocation2 + $0x5a8] ss:$24 sps:$4 sm:$0xff]  }
 0x145   :  { %2139 = vmatmul.mubr.bf16.vlgmr.msra.gmra.mrb[4].mxu1 %v10677_v16 }
 0x146   :  { %2098 = vmatmul.mubr.bf16.vlgmr.msra.gmra.mrb[0].mxu0 %v10696_v27  ;;  %2148 = vmatpush1.bf16.msra.mxu1 %v8972_v28  ;;  %v9059_v28 = vld [vmem:[#allocation2 + $0x2b0] ss:$24 sps:$4 sm:$0xff]  }
 0x147   :  { %2230 = vmatpush1.bf16.msra.mxu0 %v8975_v29  ;;  %2149 = vmatprep.subr.bf16.mxu1 %v8980_v30  ;;  %v9064_v29 = vld [vmem:[#allocation2 + $0x5dc] ss:$24 sps:$4 sm:$0xff]  }
 0x148   :  { %2231 = vmatprep.subr.bf16.mxu0 %v8983_v31  ;;  %2179 = vmatprep.mubr.bf16.mxu1 %v10673_v3  ;;  %v9067_v30 = vld [vmem:[#allocation2 + $0x2e4] ss:$24 sps:$4 sm:$0xff]   ;;  %v9062_v31 = vld [vmem:[#allocation2 + $0x5d8] ss:$24 sps:$4 sm:$0xff]  }
 0x149   :  { %2261 = vmatprep.mubr.bf16.mxu0 %v10671_v62  ;;  %v8999_v62 = vld [vmem:[#allocation2 + $0xd0] ss:$24 sps:$4 sm:$0xff]  }
 0x14a   :  { %2150 = vmatpush1.bf16.msra.mxu1 %v8978_v32  ;;  %v9065_v32 = vld [vmem:[#allocation2 + $0x2e0] ss:$24 sps:$4 sm:$0xff]  }
 0x14b   :  { %2232 = vmatpush1.bf16.msra.mxu0 %v8981_v33  ;;  %2151 = vmatprep.subr.bf16.mxu1 %v8986_v34  ;;  %v9070_v33 = vld [vmem:[#allocation2 + $0x60c] ss:$24 sps:$4 sm:$0xff]  }
 0x14c   :  { %2233 = vmatprep.subr.bf16.mxu0 %v8989_v35  ;;  %v9073_v34 = vld [vmem:[#allocation2 + $0x314] ss:$24 sps:$4 sm:$0xff]   ;;  %v9068_v35 = vld [vmem:[#allocation2 + $0x608] ss:$24 sps:$4 sm:$0xff]  }
 0x14e   :  { %2152 = vmatpush1.bf16.msra.mxu1 %v8984_v36  ;;  %v9071_v36 = vld [vmem:[#allocation2 + $0x310] ss:$24 sps:$4 sm:$0xff]  }
 0x14f   :  { %2234 = vmatpush1.bf16.msra.mxu0 %v8987_v37  ;;  %2153 = vmatprep.subr.bf16.mxu1 %v8992_v38  ;;  %v9076_v37 = vld [vmem:[#allocation2 + $0x63c] ss:$24 sps:$4 sm:$0xff]  }
 0x150   :  { %2235 = vmatprep.subr.bf16.mxu0 %v8995_v39  ;;  %v9079_v38 = vld [vmem:[#allocation2 + $0x344] ss:$24 sps:$4 sm:$0xff]   ;;  %v9074_v39 = vld [vmem:[#allocation2 + $0x638] ss:$24 sps:$4 sm:$0xff]  }
 0x152   :  { %2154 = vmatpush1.bf16.msra.mxu1 %v8990_v40  ;;  %v9077_v40 = vld [vmem:[#allocation2 + $0x340] ss:$24 sps:$4 sm:$0xff]  }
 0x153   :  { %2236 = vmatpush1.bf16.msra.mxu0 %v8993_v41  ;;  %2155 = vmatprep.subr.bf16.mxu1 %v8998_v42  ;;  %v9082_v41 = vld [vmem:[#allocation2 + $0x66c] ss:$24 sps:$4 sm:$0xff]  }
 0x154   :  { %2237 = vmatprep.subr.bf16.mxu0 %v9001_v44  ;;  %v9085_v42 = vld [vmem:[#allocation2 + $0x374] ss:$24 sps:$4 sm:$0xff]   ;;  %v9080_v44 = vld [vmem:[#allocation2 + $0x668] ss:$24 sps:$4 sm:$0xff]  }
 0x156   :  { %2156 = vmatpush1.bf16.msra.mxu1 %v8996_v45  ;;  %v9083_v45 = vld [vmem:[#allocation2 + $0x370] ss:$24 sps:$4 sm:$0xff]  }
 0x157   :  { %2238 = vmatpush1.bf16.msra.mxu0 %v8999_v62  ;;  %2157 = vmatprep.subr.bf16.mxu1 %v9004_v46  ;;  %v9088_v62 = vld [vmem:[#allocation2 + $0x69c] ss:$24 sps:$4 sm:$0xff]   ;;  %v9086_v46 = vld [vmem:[#allocation2 + $0x698] ss:$24 sps:$4 sm:$0xff]  }
 0x158   :  { %2239 = vmatprep.subr.bf16.mxu0 %v9007_v47  ;;  %v9089_v47 = vld [vmem:[#allocation2 + $0x3a0] ss:$24 sps:$4 sm:$0xff]  }
 0x15a   :  { %2158 = vmatpush1.bf16.msra.mxu1 %v9002_v48  ;;  %v9094_v48 = vld [vmem:[#allocation2 + $0x6cc] ss:$24 sps:$4 sm:$0xff]  }
 0x15b   :  { %2240 = vmatpush1.bf16.msra.mxu0 %v9005_v51  ;;  %2159 = vmatprep.subr.bf16.mxu1 %v9010_v52  ;;  %v9097_v51 = vld [vmem:[#allocation2 + $0x3d4] ss:$24 sps:$4 sm:$0xff]   ;;  %v9092_v52 = vld [vmem:[#allocation2 + $0x6c8] ss:$24 sps:$4 sm:$0xff]  }
 0x15c   :  { %2241 = vmatprep.subr.bf16.mxu0 %v9013_v53  ;;  %v9100_v53 = vld [vmem:[#allocation2 + $0x6fc] ss:$24 sps:$4 sm:$0xff]  }
 0x15e   :  { %2160 = vmatpush1.bf16.msra.mxu1 %v9008_v54  ;;  %v9103_v54 = vld [vmem:[#allocation2 + $0x404] ss:$24 sps:$4 sm:$0xff]  }
 0x15f   :  { %2242 = vmatpush1.bf16.msra.mxu0 %v9011_v55  ;;  %2161 = vmatprep.subr.bf16.mxu1 %v9016_v56  ;;  %v9098_v55 = vld [vmem:[#allocation2 + $0x6f8] ss:$24 sps:$4 sm:$0xff]  }
 0x160   :  { %2243 = vmatprep.subr.bf16.mxu0 %v9019_v57  ;;  %v9101_v56 = vld [vmem:[#allocation2 + $0x400] ss:$24 sps:$4 sm:$0xff]   ;;  %v9106_v57 = vld [vmem:[#allocation2 + $0x72c] ss:$24 sps:$4 sm:$0xff]  }
 0x162   :  { %2162 = vmatpush1.bf16.msra.mxu1 %v9014_v58  ;;  %v9109_v58 = vld [vmem:[#allocation2 + $0x434] ss:$24 sps:$4 sm:$0xff]  }
 0x163   :  { %2244 = vmatpush1.bf16.msra.mxu0 %v9017_v59  ;;  %2163 = vmatprep.subr.bf16.mxu1 %v9022_v60  ;;  %v9104_v59 = vld [vmem:[#allocation2 + $0x728] ss:$24 sps:$4 sm:$0xff]  }
 0x164   :  { %2245 = vmatprep.subr.bf16.mxu0 %v9025_v61  ;;  %v9107_v60 = vld [vmem:[#allocation2 + $0x430] ss:$24 sps:$4 sm:$0xff]   ;;  %v9112_v61 = vld [vmem:[#allocation2 + $0x75c] ss:$24 sps:$4 sm:$0xff]  }
 0x166   :  { %2164 = vmatpush1.bf16.msra.mxu1 %v9020_v63  ;;  %v9115_v63 = vld [vmem:[#allocation2 + $0x464] ss:$24 sps:$4 sm:$0xff]  }
 0x167   :  { %2246 = vmatpush1.bf16.msra.mxu0 %v9023_v0  ;;  %2165 = vmatprep.subr.bf16.mxu1 %v9028_v1  ;;  %v9110_v0 = vld [vmem:[#allocation2 + $0x758] ss:$24 sps:$4 sm:$0xff]  }
 0x168   :  { %2247 = vmatprep.subr.bf16.mxu0 %v9031_v2  ;;  %v9113_v1 = vld [vmem:[#allocation2 + $0x460] ss:$24 sps:$4 sm:$0xff]   ;;  %v9118_v2 = vld [vmem:[#allocation2 + $0x78c] ss:$24 sps:$4 sm:$0xff]  }
 0x16a   :  { %2166 = vmatpush1.bf16.msra.mxu1 %v9026_v4  ;;  %v9121_v4 = vld [vmem:[#allocation2 + $0x494] ss:$24 sps:$4 sm:$0xff]  }
 0x16b   :  { %2248 = vmatpush1.bf16.msra.mxu0 %v9029_v5  ;;  %2167 = vmatprep.subr.bf16.mxu1 %v9034_v6  ;;  %v9116_v5 = vld [vmem:[#allocation2 + $0x788] ss:$24 sps:$4 sm:$0xff]  }
 0x16c   :  { %2249 = vmatprep.subr.bf16.mxu0 %v9037_v7  ;;  %v9119_v6 = vld [vmem:[#allocation2 + $0x490] ss:$24 sps:$4 sm:$0xff]   ;;  %v9124_v7 = vld [vmem:[#allocation2 + $0x7bc] ss:$24 sps:$4 sm:$0xff]  }
 0x16e   :  { %2168 = vmatpush1.bf16.msra.mxu1 %v9032_v8  ;;  %v9127_v8 = vld [vmem:[#allocation2 + $0x4c4] ss:$24 sps:$4 sm:$0xff]  }
 0x16f   :  { %2250 = vmatpush1.bf16.msra.mxu0 %v9035_v9  ;;  %2169 = vmatprep.subr.bf16.mxu1 %v9040_v10  ;;  %v9122_v9 = vld [vmem:[#allocation2 + $0x7b8] ss:$24 sps:$4 sm:$0xff]  }
 0x170   :  { %2251 = vmatprep.subr.bf16.mxu0 %v9043_v11  ;;  %v9125_v10 = vld [vmem:[#allocation2 + $0x4c0] ss:$24 sps:$4 sm:$0xff]   ;;  %v9130_v11 = vld [vmem:[#allocation2 + $0x7ec] ss:$24 sps:$4 sm:$0xff]  }
 0x172   :  { %2170 = vmatpush1.bf16.msra.mxu1 %v9038_v12  ;;  %v9133_v12 = vld [vmem:[#allocation2 + $0x4f4] ss:$24 sps:$4 sm:$0xff]  }
 0x173   :  { %2252 = vmatpush1.bf16.msra.mxu0 %v9041_v13  ;;  %2171 = vmatprep.subr.bf16.mxu1 %v9046_v14  ;;  %v9128_v13 = vld [vmem:[#allocation2 + $0x7e8] ss:$24 sps:$4 sm:$0xff]  }
 0x174   :  { %2253 = vmatprep.subr.bf16.mxu0 %v9049_v15  ;;  %v9131_v14 = vld [vmem:[#allocation2 + $0x4f0] ss:$24 sps:$4 sm:$0xff]   ;;  %v9136_v15 = vld [vmem:[#allocation2 + $0x81c] ss:$24 sps:$4 sm:$0xff]  }
 0x176   :  { %2172 = vmatpush1.bf16.msra.mxu1 %v9044_v17  ;;  %v9139_v17 = vld [vmem:[#allocation2 + $0x524] ss:$24 sps:$4 sm:$0xff]  }
 0x177   :  { %2254 = vmatpush1.bf16.msra.mxu0 %v9047_v19  ;;  %2173 = vmatprep.subr.bf16.mxu1 %v9052_v20  ;;  %v9134_v19 = vld [vmem:[#allocation2 + $0x818] ss:$24 sps:$4 sm:$0xff]  }
 0x178   :  { %2255 = vmatprep.subr.bf16.mxu0 %v9055_v21  ;;  %v9137_v20 = vld [vmem:[#allocation2 + $0x520] ss:$24 sps:$4 sm:$0xff]   ;;  %v9142_v21 = vld [vmem:[#allocation2 + $0x84c] ss:$24 sps:$4 sm:$0xff]  }
 0x17a   :  { %2174 = vmatpush1.bf16.msra.mxu1 %v9050_v22  ;;  %v9145_v22 = vld [vmem:[#allocation2 + $0x554] ss:$24 sps:$4 sm:$0xff]  }
 0x17b   :  { %2256 = vmatpush1.bf16.msra.mxu0 %v9053_v23  ;;  %2175 = vmatprep.subr.bf16.mxu1 %v9058_v24  ;;  %v9140_v23 = vld [vmem:[#allocation2 + $0x848] ss:$24 sps:$4 sm:$0xff]  }
 0x17c   :  { %2257 = vmatprep.subr.bf16.mxu0 %v9061_v25  ;;  %v9143_v24 = vld [vmem:[#allocation2 + $0x550] ss:$24 sps:$4 sm:$0xff]   ;;  %v9148_v25 = vld [vmem:[#allocation2 + $0x87c] ss:$24 sps:$4 sm:$0xff]  }
 0x17e   :  { %2176 = vmatpush1.bf16.msra.mxu1 %v9056_v26  ;;  %v9151_v26 = vld [vmem:[#allocation2 + $0x584] ss:$24 sps:$4 sm:$0xff]  }
 0x17f   :  { %2258 = vmatpush1.bf16.msra.mxu0 %v9059_v28  ;;  %2177 = vmatprep.subr.bf16.mxu1 %v9064_v29  ;;  %v9146_v28 = vld [vmem:[#allocation2 + $0x878] ss:$24 sps:$4 sm:$0xff]  }
 0x180   :  { %2259 = vmatprep.subr.bf16.mxu0 %v9067_v30  ;;  %v9149_v29 = vld [vmem:[#allocation2 + $0x580] ss:$24 sps:$4 sm:$0xff]   ;;  %v9154_v30 = vld [vmem:[#allocation2 + $0x8ac] ss:$24 sps:$4 sm:$0xff]  }
 0x182   :  { %2178 = vmatpush1.bf16.msra.mxu1 %v9062_v31  ;;  %v9157_v31 = vld [vmem:[#allocation2 + $0x5b4] ss:$24 sps:$4 sm:$0xff]  }
 0x183   :  { %2260 = vmatpush1.bf16.msra.mxu0 %v9065_v32  ;;  %2188 = vmatprep.subr.bf16.mxu1 %v9070_v33  ;;  %v9152_v32 = vld [vmem:[#allocation2 + $0x8a8] ss:$24 sps:$4 sm:$0xff]  }
 0x184   :  { %2270 = vmatprep.subr.bf16.mxu0 %v9073_v34  ;;  %v9155_v33 = vld [vmem:[#allocation2 + $0x5b0] ss:$24 sps:$4 sm:$0xff]   ;;  %v9160_v34 = vld [vmem:[#allocation2 + $0x8dc] ss:$24 sps:$4 sm:$0xff]  }
 0x185   :  { %2180 = vmatmul.mubr.bf16.vlgmr.msra.gmra.mrb[4].mxu1 %v10679_v18 }
 0x186   :  { %2262 = vmatmul.mubr.bf16.vlgmr.msra.gmra.mrb[4].mxu0 %v10677_v16  ;;  %2189 = vmatpush1.bf16.msra.mxu1 %v9068_v35  ;;  %v9091_v16 = vld [vmem:[#allocation2 + $0x3a4] ss:$24 sps:$4 sm:$0xff]  }
 0x187   :  { %2271 = vmatpush1.bf16.msra.mxu0 %v9071_v36  ;;  %2190 = vmatprep.subr.bf16.mxu1 %v9076_v37  ;;  %v9163_v35 = vld [vmem:[#allocation2 + $0x5e4] ss:$24 sps:$4 sm:$0xff]   ;;  %v9158_v36 = vld [vmem:[#allocation2 + $0x8d8] ss:$24 sps:$4 sm:$0xff]  }
 0x188   :  { %2272 = vmatprep.subr.bf16.mxu0 %v9079_v38  ;;  %2220 = vmatprep.mubr.bf16.mxu1 %v10691_v50  ;;  %v9161_v37 = vld [vmem:[#allocation2 + $0x5e0] ss:$24 sps:$4 sm:$0xff]   ;;  %v9166_v38 = vld [vmem:[#allocation2 + $0x614] ss:$24 sps:$4 sm:$0xff]  }
 0x189   :  { %2302 = vmatprep.mubr.bf16.mxu0 %v10673_v3  ;;  %v9095_v3 = vld [vmem:[#allocation2 + $0x3d0] ss:$24 sps:$4 sm:$0xff]  }
 0x18a   :  { %2191 = vmatpush1.bf16.msra.mxu1 %v9074_v39  ;;  %v9190_v39 = vld [vmem:[#allocation6 + $0x4] ss:$12 sps:$4 sm:$0xff]  }
 0x18b   :  { %2273 = vmatpush1.bf16.msra.mxu0 %v9077_v40  ;;  %2192 = vmatprep.subr.bf16.mxu1 %v9082_v41  ;;  %v9164_v40 = vld [vmem:[#allocation2 + $0x610] ss:$24 sps:$4 sm:$0xff]   ;;  %v9169_v41 = vld [vmem:[#allocation2 + $0x644] ss:$24 sps:$4 sm:$0xff]  }
 0x18c   :  { %2274 = vmatprep.subr.bf16.mxu0 %v9085_v42  ;;  %v9188_v42 = vld [vmem:[#allocation6] ss:$12 sps:$4 sm:$0xff]  }
 0x18e   :  { %2193 = vmatpush1.bf16.msra.mxu1 %v9080_v44  ;;  %v9196_v44 = vld [vmem:[#allocation6 + $0x1c] ss:$12 sps:$4 sm:$0xff]  }
 0x18f   :  { %2275 = vmatpush1.bf16.msra.mxu0 %v9083_v45  ;;  %2194 = vmatprep.subr.bf16.mxu1 %v9088_v62  ;;  %v9167_v45 = vld [vmem:[#allocation2 + $0x640] ss:$24 sps:$4 sm:$0xff]   ;;  %v9172_v62 = vld [vmem:[#allocation2 + $0x674] ss:$24 sps:$4 sm:$0xff]  }
 0x190   :  { %2276 = vmatprep.subr.bf16.mxu0 %v9091_v16  ;;  %v9194_v16 = vld [vmem:[#allocation6 + $0x18] ss:$12 sps:$4 sm:$0xff]  }
 0x192   :  { %2195 = vmatpush1.bf16.msra.mxu1 %v9086_v46  ;;  %v9202_v46 = vld [vmem:[#allocation6 + $0x34] ss:$12 sps:$4 sm:$0xff]  }
 0x193   :  { %2277 = vmatpush1.bf16.msra.mxu0 %v9089_v47  ;;  %2196 = vmatprep.subr.bf16.mxu1 %v9094_v48  ;;  %v9170_v47 = vld [vmem:[#allocation2 + $0x670] ss:$24 sps:$4 sm:$0xff]   ;;  %v9175_v48 = vld [vmem:[#allocation2 + $0x6a4] ss:$24 sps:$4 sm:$0xff]  }
 0x194   :  { %2278 = vmatprep.subr.bf16.mxu0 %v9097_v51  ;;  %v9200_v51 = vld [vmem:[#allocation6 + $0x30] ss:$12 sps:$4 sm:$0xff]  }
 0x196   :  { %2197 = vmatpush1.bf16.msra.mxu1 %v9092_v52  ;;  %v9208_v52 = vld [vmem:[#allocation6 + $0x4c] ss:$12 sps:$4 sm:$0xff]  }
 0x197   :  { %2279 = vmatpush1.bf16.msra.mxu0 %v9095_v3  ;;  %2198 = vmatprep.subr.bf16.mxu1 %v9100_v53  ;;  %v9173_v3 = vld [vmem:[#allocation2 + $0x6a0] ss:$24 sps:$4 sm:$0xff]   ;;  %v9178_v53 = vld [vmem:[#allocation2 + $0x6d4] ss:$24 sps:$4 sm:$0xff]  }
 0x198   :  { %2280 = vmatprep.subr.bf16.mxu0 %v9103_v54  ;;  %v9214_v54 = vld [vmem:[#allocation6 + $0x64] ss:$12 sps:$4 sm:$0xff]  }
 0x19a   :  { %2199 = vmatpush1.bf16.msra.mxu1 %v9098_v55  ;;  %v9176_v55 = vld [vmem:[#allocation2 + $0x6d0] ss:$24 sps:$4 sm:$0xff]  }
 0x19b   :  { %2281 = vmatpush1.bf16.msra.mxu0 %v9101_v56  ;;  %2200 = vmatprep.subr.bf16.mxu1 %v9106_v57  ;;  %v9181_v56 = vld [vmem:[#allocation2 + $0x704] ss:$24 sps:$4 sm:$0xff]  }
 0x19c   :  { %2282 = vmatprep.subr.bf16.mxu0 %v9109_v58  ;;  %v9220_v57 = vld [vmem:[#allocation6 + $0x7c] ss:$12 sps:$4 sm:$0xff]  }
 0x19d   :  { %v9179_v58 = vld [vmem:[#allocation2 + $0x700] ss:$24 sps:$4 sm:$0xff]  }
 0x19e   :  { %2201 = vmatpush1.bf16.msra.mxu1 %v9104_v59  ;;  %v9218_v59 = vld [vmem:[#allocation6 + $0x78] ss:$12 sps:$4 sm:$0xff]  }
 0x19f   :  { %2283 = vmatpush1.bf16.msra.mxu0 %v9107_v60  ;;  %2202 = vmatprep.subr.bf16.mxu1 %v9112_v61  ;;  %v9184_v60 = vld [vmem:[#allocation2 + $0x734] ss:$24 sps:$4 sm:$0xff]   ;;  %v9226_v61 = vld [vmem:[#allocation6 + $0x94] ss:$12 sps:$4 sm:$0xff]  }
 0x1a0   :  { %2284 = vmatprep.subr.bf16.mxu0 %v9115_v63 }
 0x1a2   :  { %2203 = vmatpush1.bf16.msra.mxu1 %v9110_v0  ;;  %v9182_v0 = vld [vmem:[#allocation2 + $0x730] ss:$24 sps:$4 sm:$0xff]  }
 0x1a3   :  { %2285 = vmatpush1.bf16.msra.mxu0 %v9113_v1  ;;  %2204 = vmatprep.subr.bf16.mxu1 %v9118_v2  ;;  %v9224_v1 = vld [vmem:[#allocation6 + $0x90] ss:$12 sps:$4 sm:$0xff]  }
 0x1a4   :  { %2286 = vmatprep.subr.bf16.mxu0 %v9121_v4  ;;  %v9187_v4 = vld [vmem:[#allocation2 + $0x764] ss:$24 sps:$4 sm:$0xff]  }
 0x1a6   :  { %2205 = vmatpush1.bf16.msra.mxu1 %v9116_v5  ;;  %v9232_v5 = vld [vmem:[#allocation6 + $0xac] ss:$12 sps:$4 sm:$0xff]  }
 0x1a7   :  { %2287 = vmatpush1.bf16.msra.mxu0 %v9119_v6  ;;  %2206 = vmatprep.subr.bf16.mxu1 %v9124_v7 }
 0x1a8   :  { %2288 = vmatprep.subr.bf16.mxu0 %v9127_v8  ;;  %v9185_v8 = vld [vmem:[#allocation2 + $0x760] ss:$24 sps:$4 sm:$0xff]  }
 0x1aa   :  { %2207 = vmatpush1.bf16.msra.mxu1 %v9122_v9  ;;  %v9230_v9 = vld [vmem:[#allocation6 + $0xa8] ss:$12 sps:$4 sm:$0xff]  }
 0x1ab   :  { %2289 = vmatpush1.bf16.msra.mxu0 %v9125_v10  ;;  %2208 = vmatprep.subr.bf16.mxu1 %v9130_v11  ;;  %v9193_v10 = vld [vmem:[#allocation2 + $0x794] ss:$24 sps:$4 sm:$0xff]  }
 0x1ac   :  { %2290 = vmatprep.subr.bf16.mxu0 %v9133_v12  ;;  %v9238_v11 = vld [vmem:[#allocation6 + $0xc4] ss:$12 sps:$4 sm:$0xff]  }
 0x1ad   :  { %v9191_v12 = vld [vmem:[#allocation2 + $0x790] ss:$24 sps:$4 sm:$0xff]  }
 0x1ae   :  { %2209 = vmatpush1.bf16.msra.mxu1 %v9128_v13  ;;  %v9236_v13 = vld [vmem:[#allocation6 + $0xc0] ss:$12 sps:$4 sm:$0xff]  }
 0x1af   :  { %2291 = vmatpush1.bf16.msra.mxu0 %v9131_v14  ;;  %2210 = vmatprep.subr.bf16.mxu1 %v9136_v15  ;;  %v9199_v14 = vld [vmem:[#allocation2 + $0x7c4] ss:$24 sps:$4 sm:$0xff]  }
 0x1b0   :  { %2292 = vmatprep.subr.bf16.mxu0 %v9139_v17  ;;  %v9241_v15 = vld [vmem:[#allocation6 + $0xdc] ss:$12 sps:$4 sm:$0xff]  }
 0x1b1   :  { %v9197_v17 = vld [vmem:[#allocation2 + $0x7c0] ss:$24 sps:$4 sm:$0xff]  }
 0x1b2   :  { %2211 = vmatpush1.bf16.msra.mxu1 %v9134_v19  ;;  %v9239_v19 = vld [vmem:[#allocation6 + $0xd8] ss:$12 sps:$4 sm:$0xff]  }
 0x1b3   :  { %2293 = vmatpush1.bf16.msra.mxu0 %v9137_v20  ;;  %2212 = vmatprep.subr.bf16.mxu1 %v9142_v21  ;;  %v9205_v20 = vld [vmem:[#allocation2 + $0x7f4] ss:$24 sps:$4 sm:$0xff]   ;;  %v9246_v21 = vld [vmem:[#allocation6 + $0xf4] ss:$12 sps:$4 sm:$0xff]  }
 0x1b4   :  { %2294 = vmatprep.subr.bf16.mxu0 %v9145_v22  ;;  %v9203_v22 = vld [vmem:[#allocation2 + $0x7f0] ss:$24 sps:$4 sm:$0xff]  }
 0x1b6   :  { %2213 = vmatpush1.bf16.msra.mxu1 %v9140_v23  ;;  %v9244_v23 = vld [vmem:[#allocation6 + $0xf0] ss:$12 sps:$4 sm:$0xff]  }
 0x1b7   :  { %2295 = vmatpush1.bf16.msra.mxu0 %v9143_v24  ;;  %2214 = vmatprep.subr.bf16.mxu1 %v9148_v25  ;;  %v9211_v24 = vld [vmem:[#allocation2 + $0x824] ss:$24 sps:$4 sm:$0xff]  }
 0x1b8   :  { %2296 = vmatprep.subr.bf16.mxu0 %v9151_v26  ;;  %v9251_v25 = vld [vmem:[#allocation6 + $0x10c] ss:$12 sps:$4 sm:$0xff]  }
 0x1b9   :  { %v9209_v26 = vld [vmem:[#allocation2 + $0x820] ss:$24 sps:$4 sm:$0xff]  }
 0x1ba   :  { %2215 = vmatpush1.bf16.msra.mxu1 %v9146_v28  ;;  %v9249_v28 = vld [vmem:[#allocation6 + $0x108] ss:$12 sps:$4 sm:$0xff]  }
 0x1bb   :  { %2297 = vmatpush1.bf16.msra.mxu0 %v9149_v29  ;;  %2216 = vmatprep.subr.bf16.mxu1 %v9154_v30  ;;  %v9217_v29 = vld [vmem:[#allocation2 + $0x854] ss:$24 sps:$4 sm:$0xff]  }
 0x1bc   :  { %2298 = vmatprep.subr.bf16.mxu0 %v9157_v31  ;;  %v9256_v30 = vld [vmem:[#allocation6 + $0x124] ss:$12 sps:$4 sm:$0xff]  }
 0x1bd   :  { %v9215_v31 = vld [vmem:[#allocation2 + $0x850] ss:$24 sps:$4 sm:$0xff]  }
 0x1be   :  { %2217 = vmatpush1.bf16.msra.mxu1 %v9152_v32  ;;  %v9254_v32 = vld [vmem:[#allocation6 + $0x120] ss:$12 sps:$4 sm:$0xff]  }
 0x1bf   :  { %2299 = vmatpush1.bf16.msra.mxu0 %v9155_v33  ;;  %2218 = vmatprep.subr.bf16.mxu1 %v9160_v34  ;;  %v9223_v33 = vld [vmem:[#allocation2 + $0x884] ss:$24 sps:$4 sm:$0xff]  }
 0x1c0   :  { %2300 = vmatprep.subr.bf16.mxu0 %v9163_v35  ;;  %v9261_v34 = vld [vmem:[#allocation6 + $0x13c] ss:$12 sps:$4 sm:$0xff]  }
 0x1c1   :  { %v9221_v35 = vld [vmem:[#allocation2 + $0x880] ss:$24 sps:$4 sm:$0xff]  }
 0x1c2   :  { %2219 = vmatpush1.bf16.msra.mxu1 %v9158_v36  ;;  %v9259_v36 = vld [vmem:[#allocation6 + $0x138] ss:$12 sps:$4 sm:$0xff]  }
 0x1c3   :  { %2301 = vmatpush1.bf16.msra.mxu0 %v9161_v37  ;;  %3341 = vmatprep.subr.bf16.mxu1 %v9190_v39  ;;  %v9229_v37 = vld [vmem:[#allocation2 + $0x8b4] ss:$24 sps:$4 sm:$0xff]   ;;  %v9227_v39 = vld [vmem:[#allocation2 + $0x8b0] ss:$24 sps:$4 sm:$0xff]  }
 0x1c4   :  { %2311 = vmatprep.subr.bf16.mxu0 %v9166_v38  ;;  %v9266_v38 = vld [vmem:[#allocation6 + $0x154] ss:$12 sps:$4 sm:$0xff]  }
 0x1c5   :  { %2221 = vmatmul.mubr.bf16.vlgmr.msra.gmra.mrb[4].mxu1 %v10696_v27 }
 0x1c6   :  { %2303 = vmatmul.mubr.bf16.vlgmr.msra.gmra.mrb[4].mxu0 %v10679_v18  ;;  %3342 = vmatpush1.bf16.msra.mxu1 %v9188_v42  ;;  %v9206_v18 = vld [vmem:[#allocation6 + $0x48] ss:$12 sps:$4 sm:$0xff]   ;;  %v9271_v42 = vld [vmem:[#allocation6 + $0x16c] ss:$12 sps:$4 sm:$0xff]  }
 0x1c7   :  { %2312 = vmatpush1.bf16.msra.mxu0 %v9164_v40  ;;  %3343 = vmatprep.subr.bf16.mxu1 %v9196_v44  ;;  %v9264_v40 = vld [vmem:[#allocation6 + $0x150] ss:$12 sps:$4 sm:$0xff]  }
 0x1c8   :  { %2313 = vmatprep.subr.bf16.mxu0 %v9169_v41  ;;  %2343 = vmatprep.mubr.bf16.mxu0 %v10691_v50  ;;  %v9212_v50 = vld [vmem:[#allocation6 + $0x60] ss:$12 sps:$4 sm:$0xff]   ;;  %v9233_v44 = vld [vmem:[#allocation2 + $0x8e0] ss:$24 sps:$4 sm:$0xff]  }
 0x1c9   :  { %v9235_v41 = vld [vmem:[#allocation2 + $0x8e4] ss:$24 sps:$4 sm:$0xff]  }
 0x1ca   :  { %3344 = vmatpush1.bf16.msra.mxu1 %v9194_v16  ;;  %v9278_v16 = vld [vmem:[#allocation6 + $0x184] ss:$12 sps:$4 sm:$0xff]  }
 0x1cb   :  { %2314 = vmatpush1.bf16.msra.mxu0 %v9167_v45  ;;  %3345 = vmatprep.subr.bf16.mxu1 %v9202_v46  ;;  %v9269_v45 = vld [vmem:[#allocation6 + $0x168] ss:$12 sps:$4 sm:$0xff]  }
 0x1cc   :  { %2315 = vmatprep.subr.bf16.mxu0 %v9172_v62  ;;  %v9242_v62 = vld [vmem:[#allocation6 + $0xc8] ss:$12 sps:$4 sm:$0xff]  }
 0x1cd   :  { %v9243_v46 = vld [vmem:[#allocation6 + $0x8] ss:$12 sps:$4 sm:$0xff]  }
 0x1ce   :  { %3346 = vmatpush1.bf16.msra.mxu1 %v9200_v51  ;;  %v9252_v51 = vld [vmem:[#allocation6 + $0xf8] ss:$12 sps:$4 sm:$0xff]  }
 0x1cf   :  { %2316 = vmatpush1.bf16.msra.mxu0 %v9170_v47  ;;  %3347 = vmatprep.subr.bf16.mxu1 %v9208_v52  ;;  %v9247_v47 = vld [vmem:[#allocation6 + $0xe0] ss:$12 sps:$4 sm:$0xff]   ;;  %v9253_v52 = vld [vmem:[#allocation6 + $0x38] ss:$12 sps:$4 sm:$0xff]  }
 0x1d0   :  { %2317 = vmatprep.subr.bf16.mxu0 %v9175_v48  ;;  %v9248_v48 = vld [vmem:[#allocation6 + $0x20] ss:$12 sps:$4 sm:$0xff]  }
 0x1d2   :  { %3348 = vmatpush1.bf16.msra.mxu1 %v9206_v18  ;;  %v9262_v18 = vld [vmem:[#allocation6 + $0x128] ss:$12 sps:$4 sm:$0xff]  }
 0x1d3   :  { %2318 = vmatpush1.bf16.msra.mxu0 %v9173_v3  ;;  %3349 = vmatprep.subr.bf16.mxu1 %v9214_v54  ;;  %v9257_v3 = vld [vmem:[#allocation6 + $0x110] ss:$12 sps:$4 sm:$0xff]  }
 0x1d4   :  { %2319 = vmatprep.subr.bf16.mxu0 %v9178_v53  ;;  %v9258_v53 = vld [vmem:[#allocation6 + $0x50] ss:$12 sps:$4 sm:$0xff]  }
 0x1d5   :  { %v10714_v54 = vld [vmem:[#allocation4] sm:$0x3f] }
 0x1d6   :  { %3350 = vmatpush1.bf16.msra.mxu1 %v9212_v50  ;;  %v9267_v50 = vld [vmem:[#allocation6 + $0x140] ss:$12 sps:$4 sm:$0xff]  }
 0x1d7   :  { %2320 = vmatpush1.bf16.msra.mxu0 %v9176_v55  ;;  %3351 = vmatprep.subr.bf16.mxu1 %v9220_v57  ;;  %v10717_v55 = vsub.s32 0, %v10661_v43 }
 0x1d8   :  { %2321 = vmatprep.subr.bf16.mxu0 %v9181_v56  ;;  %v10709_v63 = vpop.f32.mrb[0].mxu1  ;;  %v10720_v56 = vsub.s32 1, %v10661_v43 }
 0x1d9   :  { %v10711_v2 = vpop.f32.mrb[1].mxu1  ;;  %v516_v57 = vrot.slane %v10714_v54, %v10717_v55 }
 0x1da   :  { %v2021_v6 = vpop.f32.mrb[2].mxu1  ;;  %3352 = vmatpush1.bf16.msra.mxu1 %v9218_v59  ;;  %v9268_v59 = vld [vmem:[#allocation6 + $0x80] ss:$12 sps:$4 sm:$0xff]  }
 0x1db   :  { %2322 = vmatpush1.bf16.msra.mxu0 %v9179_v58  ;;  %v2022_v7 = vpop.f32.mrb[3].mxu1  ;;  %3353 = vmatprep.subr.bf16.mxu1 %v9226_v61  ;;  %v520_v58 = vrot.slane %v10714_v54, %v10720_v56  ;;  %v9272_v61 = vld [vmem:[#allocation6 + $0x158] ss:$12 sps:$4 sm:$0xff]  }
 0x1dc   :  { %2323 = vmatprep.subr.bf16.mxu0 %v9184_v60  ;;  %v2018_v60 = vadd.f32 %v10709_v63, %v516_v57  ;;  %v9276_v63 = vld [vmem:[#allocation6 + $0x180] ss:$12 sps:$4 sm:$0xff]  }
 0x1dd   :  { %v9377_v57 = vld [vmem:[#allocation6 + $0x380] ss:$12 sps:$4 sm:$0xff]  }
 0x1de   :  { %3354 = vmatpush1.bf16.msra.mxu1 %v9224_v1 }
 0x1df   :  { %2324 = vmatpush1.bf16.msra.mxu0 %v9182_v0  ;;  %3355 = vmatprep.subr.bf16.mxu1 %v9232_v5  ;;  %v2020_v0 = vadd.f32 %v10711_v2, %v520_v58  ;;  %v9279_v2 = vld [vmem:[#allocation6 + $0x198] ss:$12 sps:$4 sm:$0xff]  }
 0x1e0   :  { %2325 = vmatprep.subr.bf16.mxu0 %v9187_v4  ;;  %v9323_v58 = vld [vmem:[#allocation6 + $0x2ec] ss:$12 sps:$4 sm:$0xff]  }
 0x1e2   :  { %3356 = vmatpush1.bf16.msra.mxu1 %v9230_v9 }
 0x1e3   :  { %2326 = vmatpush1.bf16.msra.mxu0 %v9185_v8  ;;  %3357 = vmatprep.subr.bf16.mxu1 %v9238_v11  ;;  %v9273_v8 = vld [vmem:[#allocation6 + $0x98] ss:$12 sps:$4 sm:$0xff]   ;;  %v9274_v11 = vld [vmem:[#allocation6 + $0x170] ss:$12 sps:$4 sm:$0xff]  }
 0x1e4   :  { %2327 = vmatprep.subr.bf16.mxu0 %v9193_v10 }
 0x1e6   :  { %3358 = vmatpush1.bf16.msra.mxu1 %v9236_v13  ;;  %v9275_v13 = vld [vmem:[#allocation6 + $0xb0] ss:$12 sps:$4 sm:$0xff]  }
 0x1e7   :  { %2328 = vmatpush1.bf16.msra.mxu0 %v9191_v12  ;;  %3359 = vmatprep.subr.bf16.mxu1 %v9241_v15 }
 0x1e8   :  { %2329 = vmatprep.subr.bf16.mxu0 %v9199_v14 }
 0x1ea   :  { %3360 = vmatpush1.bf16.msra.mxu1 %v9239_v19  ;;  %v9284_v19 = vld [vmem:[#allocation6 + $0x1b4] ss:$12 sps:$4 sm:$0xff]  }
 0x1eb   :  { %2330 = vmatpush1.bf16.msra.mxu0 %v9197_v17  ;;  %3361 = vmatprep.subr.bf16.mxu1 %v9246_v21  ;;  %v9281_v17 = vld [vmem:[#allocation6 + $0x19c] ss:$12 sps:$4 sm:$0xff]   ;;  %v9287_v21 = vld [vmem:[#allocation6 + $0x1cc] ss:$12 sps:$4 sm:$0xff]  }
 0x1ec   :  { %2331 = vmatprep.subr.bf16.mxu0 %v9205_v20  ;;  %v9282_v20 = vld [vmem:[#allocation6 + $0x1b0] ss:$12 sps:$4 sm:$0xff]  }
 0x1ee   :  { %3362 = vmatpush1.bf16.msra.mxu1 %v9244_v23  ;;  %v9290_v23 = vld [vmem:[#allocation6 + $0x1e4] ss:$12 sps:$4 sm:$0xff]  }
 0x1ef   :  { %2332 = vmatpush1.bf16.msra.mxu0 %v9203_v22  ;;  %3363 = vmatprep.subr.bf16.mxu1 %v9251_v25  ;;  %v9285_v22 = vld [vmem:[#allocation6 + $0x1c8] ss:$12 sps:$4 sm:$0xff]  }
 0x1f0   :  { %2333 = vmatprep.subr.bf16.mxu0 %v9211_v24  ;;  %v9288_v24 = vld [vmem:[#allocation6 + $0x1e0] ss:$12 sps:$4 sm:$0xff]   ;;  %v9293_v25 = vld [vmem:[#allocation6 + $0x1fc] ss:$12 sps:$4 sm:$0xff]  }
 0x1f2   :  { %3364 = vmatpush1.bf16.msra.mxu1 %v9249_v28  ;;  %v9296_v28 = vld [vmem:[#allocation6 + $0x214] ss:$12 sps:$4 sm:$0xff]  }
 0x1f3   :  { %2334 = vmatpush1.bf16.msra.mxu0 %v9209_v26  ;;  %3365 = vmatprep.subr.bf16.mxu1 %v9256_v30  ;;  %v9291_v26 = vld [vmem:[#allocation6 + $0x1f8] ss:$12 sps:$4 sm:$0xff]  }
 0x1f4   :  { %2335 = vmatprep.subr.bf16.mxu0 %v9217_v29  ;;  %v9294_v29 = vld [vmem:[#allocation6 + $0x210] ss:$12 sps:$4 sm:$0xff]   ;;  %v9299_v30 = vld [vmem:[#allocation6 + $0x22c] ss:$12 sps:$4 sm:$0xff]  }
 0x1f6   :  { %3366 = vmatpush1.bf16.msra.mxu1 %v9254_v32  ;;  %v9302_v32 = vld [vmem:[#allocation6 + $0x244] ss:$12 sps:$4 sm:$0xff]  }
 0x1f7   :  { %2336 = vmatpush1.bf16.msra.mxu0 %v9215_v31  ;;  %3367 = vmatprep.subr.bf16.mxu1 %v9261_v34  ;;  %v9297_v31 = vld [vmem:[#allocation6 + $0x228] ss:$12 sps:$4 sm:$0xff]  }
 0x1f8   :  { %2337 = vmatprep.subr.bf16.mxu0 %v9223_v33  ;;  %v9300_v33 = vld [vmem:[#allocation6 + $0x240] ss:$12 sps:$4 sm:$0xff]   ;;  %v9305_v34 = vld [vmem:[#allocation6 + $0x25c] ss:$12 sps:$4 sm:$0xff]  }
 0x1fa   :  { %3368 = vmatpush1.bf16.msra.mxu1 %v9259_v36  ;;  %v9352_v36 = vld [vmem:[#allocation6 + $0x308] ss:$12 sps:$4 sm:$0xff]  }
 0x1fb   :  { %2338 = vmatpush1.bf16.msra.mxu0 %v9221_v35  ;;  %3369 = vmatprep.subr.bf16.mxu1 %v9266_v38  ;;  %v9351_v35 = vld [vmem:[#allocation6 + $0x3c8] ss:$12 sps:$4 sm:$0xff]  }
 0x1fc   :  { %2339 = vmatprep.subr.bf16.mxu0 %v9229_v37  ;;  %v9303_v37 = vld [vmem:[#allocation6 + $0x258] ss:$12 sps:$4 sm:$0xff]   ;;  %v9308_v38 = vld [vmem:[#allocation6 + $0x274] ss:$12 sps:$4 sm:$0xff]  }
 0x1fe   :  { %3370 = vmatpush1.bf16.msra.mxu1 %v9264_v40  ;;  %v9357_v40 = vld [vmem:[#allocation6 + $0x320] ss:$12 sps:$4 sm:$0xff]  }
 0x1ff   :  { %2340 = vmatpush1.bf16.msra.mxu0 %v9227_v39  ;;  %3371 = vmatprep.subr.bf16.mxu1 %v9271_v42  ;;  %v9356_v39 = vld [vmem:[#allocation6 + $0x3e0] ss:$12 sps:$4 sm:$0xff]  }
 0x200   :  { %2341 = vmatprep.subr.bf16.mxu0 %v9235_v41  ;;  %v9306_v41 = vld [vmem:[#allocation6 + $0x270] ss:$12 sps:$4 sm:$0xff]   ;;  %v9311_v42 = vld [vmem:[#allocation6 + $0x28c] ss:$12 sps:$4 sm:$0xff]  }
 0x202   :  { %3372 = vmatpush1.bf16.msra.mxu1 %v9269_v45  ;;  %v9362_v45 = vld [vmem:[#allocation6 + $0x338] ss:$12 sps:$4 sm:$0xff]  }
 0x203   :  { %2342 = vmatpush1.bf16.msra.mxu0 %v9233_v44  ;;  %3382 = vmatprep.subr.bf16.mxu1 %v9278_v16  ;;  %v9361_v44 = vld [vmem:[#allocation6 + $0x3f8] ss:$12 sps:$4 sm:$0xff]  }
 0x204   :  { %8604 = vmatprep.subr.bf16.mxu0 %v9242_v62  ;;  %v9309_v62 = vld [vmem:[#allocation6 + $0x288] ss:$12 sps:$4 sm:$0xff]   ;;  %v9314_v16 = vld [vmem:[#allocation6 + $0x2a4] ss:$12 sps:$4 sm:$0xff]  }
 0x206   :  { %2344 = vmatmul.mubr.bf16.vlgmr.msra.gmra.mrb[4].mxu0 %v10696_v27  ;;  %v9263_v27 = vld [vmem:[#allocation6 + $0x68] ss:$12 sps:$4 sm:$0xff]  }
 0x207   :  { %8605 = vmatpush3.bf16.msra.mxu0 %v9243_v46  ;;  %v9366_v46 = vld [vmem:[#allocation6 + $0x410] ss:$12 sps:$4 sm:$0xff]  }
 0x208   :  { %8606 = vmatprep.subr.bf16.mxu0 %v9247_v47  ;;  %v9367_v47 = vld [vmem:[#allocation6 + $0x350] ss:$12 sps:$4 sm:$0xff]  }
 0x20b   :  { %8607 = vmatpush3.bf16.msra.mxu0 %v9248_v48  ;;  %v9312_v48 = vld [vmem:[#allocation6 + $0x2a0] ss:$12 sps:$4 sm:$0xff]  }
 0x20c   :  { %8608 = vmatprep.subr.bf16.mxu0 %v9252_v51  ;;  %v9317_v51 = vld [vmem:[#allocation6 + $0x2bc] ss:$12 sps:$4 sm:$0xff]  }
 0x20f   :  { %8609 = vmatpush3.bf16.msra.mxu0 %v9253_v52  ;;  %v9371_v52 = vld [vmem:[#allocation6 + $0x428] ss:$12 sps:$4 sm:$0xff]  }
 0x210   :  { %8610 = vmatprep.subr.bf16.mxu0 %v9257_v3  ;;  %v9372_v3 = vld [vmem:[#allocation6 + $0x368] ss:$12 sps:$4 sm:$0xff]  }
 0x213   :  { %8611 = vmatpush3.bf16.msra.mxu0 %v9258_v53  ;;  %v9315_v53 = vld [vmem:[#allocation6 + $0x2b8] ss:$12 sps:$4 sm:$0xff]  }
 0x214   :  { %8612 = vmatprep.subr.bf16.mxu0 %v9262_v18  ;;  %v9320_v18 = vld [vmem:[#allocation6 + $0x2d4] ss:$12 sps:$4 sm:$0xff]  }
 0x217   :  { %8613 = vmatpush3.bf16.msra.mxu0 %v9263_v27  ;;  %v9318_v27 = vld [vmem:[#allocation6 + $0x2d0] ss:$12 sps:$4 sm:$0xff]  }
 0x218   :  { %8614 = vmatprep.subr.bf16.mxu0 %v9267_v50  ;;  %v9376_v50 = vld [vmem:[#allocation6 + $0x440] ss:$12 sps:$4 sm:$0xff]  }
 0x219   :  { %v2099_v1 = vpop.f32.mrb[0].mxu0 }
 0x21a   :  { %v8671_v4 = vadd.f32 %v2099_v1, %v2018_v60  ;;  %v2101_v5 = vpop.f32.mrb[1].mxu0  ;;  %v9381_v60 = vld [vmem:[#allocation6 + $0x458] ss:$12 sps:$4 sm:$0xff]   ;;  %v9386_v1 = vld [vmem:[#allocation6 + $0x470] ss:$12 sps:$4 sm:$0xff]  }
 0x21b   :  { %v8673_v6 = vadd.f32 %v2101_v5, %v2020_v0  ;;  %v2103_v7 = vpop.f32.mrb[2].mxu0  ;;  %8615 = vmatpush3.bf16.msra.mxu0 %v9268_v59  ;;  %v9321_v59 = vld [vmem:[#allocation6 + $0x2e8] ss:$12 sps:$4 sm:$0xff]   ;;  %v9326_v0 = vld [vmem:[#allocation6 + $0x304] ss:$12 sps:$4 sm:$0xff]   ;;  %v10729_v5 = vsub.s32 2, %v10661_v43 }
 0x21c   :  { %v2352_v9 = vmax.f32 %v8671_v4, 0.0  ;;  %v2104_v10 = vpop.f32.mrb[3].mxu0  ;;  %8616 = vmatprep.subr.bf16.mxu0 %v9272_v61  ;;  %v9382_v61 = vld [vmem:[#allocation6 + $0x398] ss:$12 sps:$4 sm:$0xff]   ;;  %v9387_v4 = vld [vmem:[#allocation6 + $0x3b0] ss:$12 sps:$4 sm:$0xff]  }
 0x21d   :  { %v2353_v12 = vmax.f32 %v8673_v6, 0.0  ;;  %v10732_v6 = vsub.s32 3, %v10661_v43  ;;  %v524_v7 = vrot.slane %v10714_v54, %v10729_v5 }
 0x21e   :  { %v2358_v15 = vpack.c.bf16 %v2352_v9, %v2352_v9 }
 0x21f   :  { %v2359_v14 = vpack.c.bf16 %v2353_v12, %v2353_v12  ;;  %8617 = vmatpush3.bf16.msra.mxu0 %v9273_v8  ;;  %v528_v8 = vrot.slane %v10714_v54, %v10732_v6  ;;  %v9327_v54 = vld [vmem:[#allocation6 + $0x318] ss:$12 sps:$4 sm:$0xff]  }
 0x220   :  { %8618 = vmatprep.subr.bf16.mxu0 %v9274_v11 }
 0x221   :  { %3373 = vmatprep.mubr.bf16.mxu1 %v2359_v14  ;;  %3496 = vmatprep.mubr.bf16.mxu0 %v2359_v14 }
 0x222   :  { %3374 = vmatmul.mubr.bf16.vlgmr.msra.gmra.mrb[8].mxu1 %v2358_v15 }
 0x223   :  { %8619 = vmatpush3.bf16.msra.mxu0 %v9275_v13  ;;  %3383 = vmatpush1.bf16.msra.mxu1 %v9276_v63 }
 0x224   :  { %3384 = vmatprep.subr.bf16.mxu1 %v9281_v17  ;;  %8648 = vmatprep.subr.bf16.mxu0 %v9351_v35  ;;  %v9348_v35 = vld [vmem:[#allocation6 + $0x3c0] ss:$12 sps:$4 sm:$0xff]  }
 0x226   :  { %3497 = vmatmul.mubr.bf16.vlgmr.msra.gmra.mrb[8].mxu0 %v2358_v15 }
 0x227   :  { %3385 = vmatpush1.bf16.msra.mxu1 %v9279_v2  ;;  %8649 = vmatpush3.bf16.msra.mxu0 %v9352_v36  ;;  %v9324_v2 = vld [vmem:[#allocation6 + $0x300] ss:$12 sps:$4 sm:$0xff]   ;;  %v9355_v36 = vld [vmem:[#allocation6 + $0x3dc] ss:$12 sps:$4 sm:$0xff]  }
 0x228   :  { %3386 = vmatprep.subr.bf16.mxu1 %v9284_v19  ;;  %8650 = vmatprep.subr.bf16.mxu0 %v9356_v39  ;;  %v9329_v19 = vld [vmem:[#allocation6 + $0x31c] ss:$12 sps:$4 sm:$0xff]  }
 0x229   :  { %v9358_v39 = vld [vmem:[#allocation6 + $0x3f0] ss:$12 sps:$4 sm:$0xff]  }
 0x22b   :  { %3387 = vmatpush1.bf16.msra.mxu1 %v9282_v20  ;;  %8651 = vmatpush3.bf16.msra.mxu0 %v9357_v40  ;;  %v9365_v40 = vld [vmem:[#allocation6 + $0x40c] ss:$12 sps:$4 sm:$0xff]  }
 0x22c   :  { %3388 = vmatprep.subr.bf16.mxu1 %v9287_v21  ;;  %8652 = vmatprep.subr.bf16.mxu0 %v9361_v44  ;;  %v9332_v21 = vld [vmem:[#allocation6 + $0x334] ss:$12 sps:$4 sm:$0xff]  }
 0x22d   :  { %v9368_v44 = vld [vmem:[#allocation6 + $0x420] ss:$12 sps:$4 sm:$0xff]  }
 0x22f   :  { %3389 = vmatpush1.bf16.msra.mxu1 %v9285_v22  ;;  %8653 = vmatpush3.bf16.msra.mxu0 %v9362_v45  ;;  %v9330_v22 = vld [vmem:[#allocation6 + $0x330] ss:$12 sps:$4 sm:$0xff]  }
 0x230   :  { %3390 = vmatprep.subr.bf16.mxu1 %v9290_v23  ;;  %8654 = vmatprep.subr.bf16.mxu0 %v9366_v46  ;;  %v9335_v23 = vld [vmem:[#allocation6 + $0x34c] ss:$12 sps:$4 sm:$0xff]   ;;  %v9375_v45 = vld [vmem:[#allocation6 + $0x43c] ss:$12 sps:$4 sm:$0xff]   ;;  %v10748_v46 = vsub.s32 5, %v10661_v43 }
 0x233   :  { %3391 = vmatpush1.bf16.msra.mxu1 %v9288_v24  ;;  %8655 = vmatpush3.bf16.msra.mxu0 %v9367_v47  ;;  %v9333_v24 = vld [vmem:[#allocation6 + $0x348] ss:$12 sps:$4 sm:$0xff]  }
 0x234   :  { %3392 = vmatprep.subr.bf16.mxu1 %v9293_v25  ;;  %8656 = vmatprep.subr.bf16.mxu0 %v9371_v52  ;;  %v9338_v25 = vld [vmem:[#allocation6 + $0x364] ss:$12 sps:$4 sm:$0xff]   ;;  %v9380_v47 = vld [vmem:[#allocation6 + $0x454] ss:$12 sps:$4 sm:$0xff]  }
 0x235   :  { %v9378_v52 = vld [vmem:[#allocation6 + $0x450] ss:$12 sps:$4 sm:$0xff]  }
 0x237   :  { %3393 = vmatpush1.bf16.msra.mxu1 %v9291_v26  ;;  %8657 = vmatpush3.bf16.msra.mxu0 %v9372_v3  ;;  %v9336_v26 = vld [vmem:[#allocation6 + $0x360] ss:$12 sps:$4 sm:$0xff]  }
 0x238   :  { %3394 = vmatprep.subr.bf16.mxu1 %v9296_v28  ;;  %8658 = vmatprep.subr.bf16.mxu0 %v9376_v50  ;;  %v9341_v28 = vld [vmem:[#allocation6 + $0x37c] ss:$12 sps:$4 sm:$0xff]  }
 0x23b   :  { %3395 = vmatpush1.bf16.msra.mxu1 %v9294_v29  ;;  %8659 = vmatpush3.bf16.msra.mxu0 %v9377_v57  ;;  %v9339_v29 = vld [vmem:[#allocation6 + $0x378] ss:$12 sps:$4 sm:$0xff]  }
 0x23c   :  { %3396 = vmatprep.subr.bf16.mxu1 %v9299_v30  ;;  %8660 = vmatprep.subr.bf16.mxu0 %v9381_v60  ;;  %v9344_v30 = vld [vmem:[#allocation6 + $0x394] ss:$12 sps:$4 sm:$0xff]  }
 0x23f   :  { %3397 = vmatpush1.bf16.msra.mxu1 %v9297_v31  ;;  %8661 = vmatpush3.bf16.msra.mxu0 %v9382_v61  ;;  %v9342_v31 = vld [vmem:[#allocation6 + $0x390] ss:$12 sps:$4 sm:$0xff]   ;;  %v9388_v61 = vld [vmem:[#allocation6 + $0x248] ss:$12 sps:$4 sm:$0xff]  }
 0x240   :  { %3398 = vmatprep.subr.bf16.mxu1 %v9302_v32  ;;  %8662 = vmatprep.subr.bf16.mxu0 %v9386_v1  ;;  %v9347_v32 = vld [vmem:[#allocation6 + $0x3ac] ss:$12 sps:$4 sm:$0xff]  }
 0x243   :  { %3399 = vmatpush1.bf16.msra.mxu1 %v9300_v33  ;;  %8663 = vmatpush3.bf16.msra.mxu0 %v9387_v4  ;;  %v9345_v33 = vld [vmem:[#allocation6 + $0x3a8] ss:$12 sps:$4 sm:$0xff]  }
 0x244   :  { %3400 = vmatprep.subr.bf16.mxu1 %v9305_v34  ;;  %v9350_v34 = vld [vmem:[#allocation6 + $0x3c4] ss:$12 sps:$4 sm:$0xff]   ;;  %v9389_v4 = vld [vmem:[#allocation6 + $0x188] ss:$12 sps:$4 sm:$0xff]  }
 0x247   :  { %3401 = vmatpush1.bf16.msra.mxu1 %v9303_v37  ;;  %v9353_v37 = vld [vmem:[#allocation6 + $0x3d8] ss:$12 sps:$4 sm:$0xff]  }
 0x248   :  { %3402 = vmatprep.subr.bf16.mxu1 %v9308_v38  ;;  %v9360_v38 = vld [vmem:[#allocation6 + $0x3f4] ss:$12 sps:$4 sm:$0xff]  }
 0x24b   :  { %3403 = vmatpush1.bf16.msra.mxu1 %v9306_v41  ;;  %v9363_v41 = vld [vmem:[#allocation6 + $0x408] ss:$12 sps:$4 sm:$0xff]  }
 0x24c   :  { %3404 = vmatprep.subr.bf16.mxu1 %v9311_v42  ;;  %v9370_v42 = vld [vmem:[#allocation6 + $0x424] ss:$12 sps:$4 sm:$0xff]  }
 0x24f   :  { %3405 = vmatpush1.bf16.msra.mxu1 %v9309_v62  ;;  %v10745_v62 = vsub.s32 4, %v10661_v43 }
 0x250   :  { %3406 = vmatprep.subr.bf16.mxu1 %v9314_v16  ;;  %v9373_v16 = vld [vmem:[#allocation6 + $0x438] ss:$12 sps:$4 sm:$0xff]  }
 0x253   :  { %3407 = vmatpush1.bf16.msra.mxu1 %v9312_v48  ;;  %v10172_v48 = vld [vmem:[#allocation4] sm:$0x3f] }
 0x254   :  { %3408 = vmatprep.subr.bf16.mxu1 %v9317_v51  ;;  %v532_v51 = vrot.slane %v10172_v48, %v10745_v62  ;;  %v536_v3 = vrot.slane %v10172_v48, %v10748_v46  ;;  %v9436_v48 = vld [vmem:[%s11014_s5 + $0xa4] ss:$8 sps:$4 sm:$0xff]  }
 0x257   :  { %3409 = vmatpush1.bf16.msra.mxu1 %v9315_v53  ;;  %v9385_v53 = vld [vmem:[#allocation6 + $0x46c] ss:$12 sps:$4 sm:$0xff]  }
 0x258   :  { %3410 = vmatprep.subr.bf16.mxu1 %v9320_v18 }
 0x25b   :  { %3411 = vmatpush1.bf16.msra.mxu1 %v9318_v27 }
 0x25c   :  { %3412 = vmatprep.subr.bf16.mxu1 %v9323_v58 }
 0x25f   :  { %3413 = vmatpush1.bf16.msra.mxu1 %v9321_v59  ;;  %v9383_v59 = vld [vmem:[#allocation6 + $0x468] ss:$12 sps:$4 sm:$0xff]  }
 0x260   :  { %3423 = vmatprep.subr.bf16.mxu1 %v9326_v0 }
 0x298   :  { %v2222_v9 = vpop.f32.mrb[4].mxu1 }
 0x299   :  { %v8674_v10 = vadd.f32 %v2222_v9, %v524_v7  ;;  %v2224_v11 = vpop.f32.mrb[5].mxu1  ;;  %v9391_v9 = vld [vmem:[#allocation6 + $0x1a0] ss:$12 sps:$4 sm:$0xff]  }
 0x29a   :  { %v8675_v12 = vadd.f32 %v2224_v11, %v528_v8  ;;  %v2226_v13 = vpop.f32.mrb[6].mxu1  ;;  %v9390_v8 = vld [vmem:[#allocation6 + $0x260] ss:$12 sps:$4 sm:$0xff]   ;;  %v9393_v11 = vld [vmem:[#allocation6 + $0x1b8] ss:$12 sps:$4 sm:$0xff]  }
 0x29b   :  { %v2354_v14 = vmax.f32 %v8674_v10, 0.0  ;;  %v2227_v63 = vpop.f32.mrb[7].mxu1  ;;  %v9392_v10 = vld [vmem:[#allocation6 + $0x278] ss:$12 sps:$4 sm:$0xff]   ;;  %v9395_v13 = vld [vmem:[#allocation6 + $0x1d0] ss:$12 sps:$4 sm:$0xff]  }
 0x29c   :  { %v2355_v15 = vmax.f32 %v8675_v12, 0.0  ;;  %v9394_v12 = vld [vmem:[#allocation6 + $0x290] ss:$12 sps:$4 sm:$0xff]   ;;  %v9397_v63 = vld [vmem:[#allocation6 + $0x1e8] ss:$12 sps:$4 sm:$0xff]  }
 0x29d   :  { %v10740_v20 = vpack.c.bf16 %v2354_v14, %v2354_v14  ;;  %v9396_v14 = vld [vmem:[#allocation6 + $0x2a8] ss:$12 sps:$4 sm:$0xff]  }
 0x29e   :  { %v10738_v17 = vpack.c.bf16 %v2355_v15, %v2355_v15  ;;  %v9398_v15 = vld [vmem:[#allocation6 + $0x2c0] ss:$12 sps:$4 sm:$0xff]  }
 0x2a0   :  { %3414 = vmatprep.mubr.bf16.mxu1 %v10738_v17 }
 0x2a1   :  { %3415 = vmatmul.mubr.bf16.vlgmr.msra.gmra.mrb[8].mxu1 %v10740_v20 }
 0x2a2   :  { %3424 = vmatpush1.bf16.msra.mxu1 %v9324_v2  ;;  %v9399_v2 = vld [vmem:[#allocation6 + $0x200] ss:$12 sps:$4 sm:$0xff]  }
 0x2a3   :  { %3425 = vmatprep.subr.bf16.mxu1 %v9329_v19  ;;  %v9400_v19 = vld [vmem:[#allocation6 + $0x2d8] ss:$12 sps:$4 sm:$0xff]  }
 0x2a6   :  { %3426 = vmatpush1.bf16.msra.mxu1 %v9327_v54  ;;  %v9402_v54 = vld [vmem:[#allocation6 + $0x2f0] ss:$12 sps:$4 sm:$0xff]  }
 0x2a7   :  { %3427 = vmatprep.subr.bf16.mxu1 %v9332_v21 }
 0x2aa   :  { %3428 = vmatpush1.bf16.msra.mxu1 %v9330_v22 }
 0x2ab   :  { %3429 = vmatprep.subr.bf16.mxu1 %v9335_v23 }
 0x2ae   :  { %3430 = vmatpush1.bf16.msra.mxu1 %v9333_v24 }
 0x2af   :  { %3431 = vmatprep.subr.bf16.mxu1 %v9338_v25  ;;  %v9403_v25 = vld [vmem:[#allocation6 + $0x230] ss:$12 sps:$4 sm:$0xff]  }
 0x2b2   :  { %3432 = vmatpush1.bf16.msra.mxu1 %v9336_v26 }
 0x2b3   :  { %3433 = vmatprep.subr.bf16.mxu1 %v9341_v28  ;;  %v9406_v28 = vld [vmem:[%s11014_s5 + $0x4] ss:$8 sps:$4 sm:$0xff]  }
 0x2b6   :  { %3434 = vmatpush1.bf16.msra.mxu1 %v9339_v29  ;;  %v9404_v29 = vld [vmem:[%s11014_s5] ss:$8 sps:$4 sm:$0xff]  }
 0x2b7   :  { %3435 = vmatprep.subr.bf16.mxu1 %v9344_v30  ;;  %v9409_v30 = vld [vmem:[%s11014_s5 + $0x14] ss:$8 sps:$4 sm:$0xff]  }
 0x2ba   :  { %3436 = vmatpush1.bf16.msra.mxu1 %v9342_v31  ;;  %v9407_v31 = vld [vmem:[%s11014_s5 + $0x10] ss:$8 sps:$4 sm:$0xff]  }
 0x2bb   :  { %3437 = vmatprep.subr.bf16.mxu1 %v9347_v32  ;;  %v9412_v32 = vld [vmem:[%s11014_s5 + $0x24] ss:$8 sps:$4 sm:$0xff]  }
 0x2be   :  { %3438 = vmatpush1.bf16.msra.mxu1 %v9345_v33  ;;  %v9410_v33 = vld [vmem:[%s11014_s5 + $0x20] ss:$8 sps:$4 sm:$0xff]  }
 0x2bf   :  { %3439 = vmatprep.subr.bf16.mxu1 %v9350_v34  ;;  %v9413_v34 = vld [vmem:[%s11014_s5 + $0x30] ss:$8 sps:$4 sm:$0xff]  }
 0x2c2   :  { %3440 = vmatpush1.bf16.msra.mxu1 %v9348_v35  ;;  %v9418_v35 = vld [vmem:[%s11014_s5 + $0x44] ss:$8 sps:$4 sm:$0xff]  }
 0x2c3   :  { %3441 = vmatprep.subr.bf16.mxu1 %v9355_v36  ;;  %v9416_v36 = vld [vmem:[%s11014_s5 + $0x40] ss:$8 sps:$4 sm:$0xff]  }
 0x2c6   :  { %3442 = vmatpush1.bf16.msra.mxu1 %v9353_v37  ;;  %v9421_v37 = vld [vmem:[%s11014_s5 + $0x54] ss:$8 sps:$4 sm:$0xff]  }
 0x2c7   :  { %3443 = vmatprep.subr.bf16.mxu1 %v9360_v38  ;;  %v9419_v38 = vld [vmem:[%s11014_s5 + $0x50] ss:$8 sps:$4 sm:$0xff]  }
 0x2ca   :  { %3444 = vmatpush1.bf16.msra.mxu1 %v9358_v39  ;;  %v9424_v39 = vld [vmem:[%s11014_s5 + $0x64] ss:$8 sps:$4 sm:$0xff]  }
 0x2cb   :  { %3445 = vmatprep.subr.bf16.mxu1 %v9365_v40  ;;  %v9422_v40 = vld [vmem:[%s11014_s5 + $0x60] ss:$8 sps:$4 sm:$0xff]  }
 0x2ce   :  { %3446 = vmatpush1.bf16.msra.mxu1 %v9363_v41  ;;  %v9427_v41 = vld [vmem:[%s11014_s5 + $0x74] ss:$8 sps:$4 sm:$0xff]  }
 0x2cf   :  { %3447 = vmatprep.subr.bf16.mxu1 %v9370_v42  ;;  %v9425_v42 = vld [vmem:[%s11014_s5 + $0x70] ss:$8 sps:$4 sm:$0xff]  }
 0x2d2   :  { %3448 = vmatpush1.bf16.msra.mxu1 %v9368_v44  ;;  %v9430_v44 = vld [vmem:[%s11014_s5 + $0x84] ss:$8 sps:$4 sm:$0xff]  }
 0x2d3   :  { %3449 = vmatprep.subr.bf16.mxu1 %v9375_v45  ;;  %v9428_v45 = vld [vmem:[%s11014_s5 + $0x80] ss:$8 sps:$4 sm:$0xff]  }
 0x2d6   :  { %3450 = vmatpush1.bf16.msra.mxu1 %v9373_v16  ;;  %v9433_v16 = vld [vmem:[%s11014_s5 + $0x94] ss:$8 sps:$4 sm:$0xff]  }
 0x2d7   :  { %3451 = vmatprep.subr.bf16.mxu1 %v9380_v47  ;;  %v9431_v47 = vld [vmem:[%s11014_s5 + $0x90] ss:$8 sps:$4 sm:$0xff]  }
 0x2d9   :  { %v2345_v18 = vpop.f32.mrb[4].mxu0 }
 0x2da   :  { %v8676_v27 = vadd.f32 %v2345_v18, %v532_v51  ;;  %v2347_v50 = vpop.f32.mrb[5].mxu0  ;;  %3452 = vmatpush1.bf16.msra.mxu1 %v9378_v52  ;;  %v9434_v51 = vld [vmem:[%s11014_s5 + $0xa0] ss:$8 sps:$4 sm:$0xff]   ;;  %v9439_v52 = vld [vmem:[%s11014_s5 + $0xb4] ss:$8 sps:$4 sm:$0xff]  }
 0x2db   :  { %v8677_v57 = vadd.f32 %v2347_v50, %v536_v3  ;;  %v2349_v58 = vpop.f32.mrb[6].mxu0  ;;  %3453 = vmatprep.subr.bf16.mxu1 %v9385_v53  ;;  %v9437_v3 = vld [vmem:[%s11014_s5 + $0xb0] ss:$8 sps:$4 sm:$0xff]   ;;  %v9442_v53 = vld [vmem:[%s11014_s5 + $0xc4] ss:$8 sps:$4 sm:$0xff]  }
 0x2dc   :  { %v2356_v43 = vmax.f32 %v8676_v27, 0.0  ;;  %v2350_v60 = vpop.f32.mrb[7].mxu0  ;;  %v9440_v18 = vld [vmem:[%s11014_s5 + $0xc0] ss:$8 sps:$4 sm:$0xff]   ;;  %v9445_v27 = vld [vmem:[%s11014_s5 + $0xd4] ss:$8 sps:$4 sm:$0xff]  }
 0x2dd   :  { %v2357_v0 = vmax.f32 %v8677_v57, 0.0  ;;  %v9443_v50 = vld [vmem:[%s11014_s5 + $0xd0] ss:$8 sps:$4 sm:$0xff]   ;;  %v9448_v57 = vld [vmem:[%s11014_s5 + $0xe4] ss:$8 sps:$4 sm:$0xff]  }
 0x2de   :  { %3454 = vmatpush1.bf16.msra.mxu1 %v9383_v59  ;;  %v2362_v7 = vpack.c.bf16 %v2356_v43, %v2356_v43  ;;  %v9446_v58 = vld [vmem:[%s11014_s5 + $0xe0] ss:$8 sps:$4 sm:$0xff]   ;;  %v9451_v59 = vld [vmem:[%s11014_s5 + $0xf4] ss:$8 sps:$4 sm:$0xff]   ;;  %v9449_v43 = vld [vmem:[%s11014_s5 + $0xf0] ss:$8 sps:$4 sm:$0xff]  }
 0x2df   :  { %v2363_v1 = vpack.c.bf16 %v2357_v0, %v2357_v0  ;;  %8626 = vmatprep.subr.bf16.mxu1 %v9388_v61  ;;  %v9454_v60 = vld [vmem:[%s11014_s5 + $0x104] ss:$8 sps:$4 sm:$0xff]   ;;  %v9478_v0 = vld [vmem:[#allocation10 + $0x4] ss:$12 sps:$4 sm:$0xff]  }
 0x2e0   :  { %v9476_v61 = vld [vmem:[#allocation10] ss:$12 sps:$4 sm:$0xff]   ;;  %4237 = vmatprep.subr.bf16.mxu0 %v9478_v0 }
 0x2e1   :  { %3455 = vmatprep.mubr.bf16.mxu1 %v2363_v1  ;;  %3576 = vmatprep.mubr.bf16.mxu0 %v2363_v1  ;;  %v9481_v1 = vld [vmem:[#allocation10 + $0x1c] ss:$12 sps:$4 sm:$0xff]  }
 0x2e2   :  { %3456 = vmatmul.mubr.bf16.vlgmr.msra.gmra.mrb[8].mxu1 %v2362_v7  ;;  %3577 = vmatmul.mubr.bf16.vlgmr.msra.gmra.mrb[12].mxu0 %v2362_v7  ;;  %v9484_v7 = vld [vmem:[#allocation10 + $0x34] ss:$12 sps:$4 sm:$0xff]  }
 0x2e3   :  { %8627 = vmatpush3.bf16.msra.mxu1 %v9389_v4  ;;  %3536 = vmatprep.mubr.bf16.mxu1 %v10738_v17  ;;  %v9401_v17 = vld [vmem:[#allocation6 + $0x218] ss:$12 sps:$4 sm:$0xff]   ;;  %v9479_v4 = vld [vmem:[#allocation10 + $0x18] ss:$12 sps:$4 sm:$0xff]  }
 0x2e4   :  { %8628 = vmatprep.subr.bf16.mxu1 %v9390_v8  ;;  %4238 = vmatpush1.bf16.msra.mxu0 %v9476_v61  ;;  %v9482_v8 = vld [vmem:[#allocation10 + $0x30] ss:$12 sps:$4 sm:$0xff]  }
 0x2e5   :  { %4239 = vmatprep.subr.bf16.mxu0 %v9481_v1 }
 0x2e7   :  { %8629 = vmatpush3.bf16.msra.mxu1 %v9391_v9  ;;  %v9487_v9 = vld [vmem:[#allocation10 + $0x4c] ss:$12 sps:$4 sm:$0xff]  }
 0x2e8   :  { %8630 = vmatprep.subr.bf16.mxu1 %v9392_v10  ;;  %4240 = vmatpush1.bf16.msra.mxu0 %v9479_v4  ;;  %v9485_v10 = vld [vmem:[#allocation10 + $0x48] ss:$12 sps:$4 sm:$0xff]   ;;  %v9473_v4 = vld [vmem:[%s11014_s5 + $0x170] ss:$8 sps:$4 sm:$0xff]  }
 0x2e9   :  { %4241 = vmatprep.subr.bf16.mxu0 %v9484_v7 }
 0x2eb   :  { %8631 = vmatpush3.bf16.msra.mxu1 %v9393_v11  ;;  %v9490_v11 = vld [vmem:[#allocation10 + $0x64] ss:$12 sps:$4 sm:$0xff]  }
 0x2ec   :  { %8632 = vmatprep.subr.bf16.mxu1 %v9394_v12  ;;  %4242 = vmatpush1.bf16.msra.mxu0 %v9482_v8  ;;  %v9488_v12 = vld [vmem:[#allocation10 + $0x60] ss:$12 sps:$4 sm:$0xff]  }
 0x2ed   :  { %4243 = vmatprep.subr.bf16.mxu0 %v9487_v9 }
 0x2ef   :  { %8633 = vmatpush3.bf16.msra.mxu1 %v9395_v13  ;;  %v9493_v13 = vld [vmem:[#allocation10 + $0x7c] ss:$12 sps:$4 sm:$0xff]  }
 0x2f0   :  { %8634 = vmatprep.subr.bf16.mxu1 %v9396_v14  ;;  %4244 = vmatpush1.bf16.msra.mxu0 %v9485_v10  ;;  %v9491_v14 = vld [vmem:[#allocation10 + $0x78] ss:$12 sps:$4 sm:$0xff]  }
 0x2f1   :  { %4245 = vmatprep.subr.bf16.mxu0 %v9490_v11 }
 0x2f3   :  { %8635 = vmatpush3.bf16.msra.mxu1 %v9397_v63  ;;  %v9496_v63 = vld [vmem:[#allocation10 + $0x94] ss:$12 sps:$4 sm:$0xff]  }
 0x2f4   :  { %8636 = vmatprep.subr.bf16.mxu1 %v9398_v15  ;;  %4246 = vmatpush1.bf16.msra.mxu0 %v9488_v12  ;;  %v9494_v15 = vld [vmem:[#allocation10 + $0x90] ss:$12 sps:$4 sm:$0xff]   ;;  %v9508_v12 = vld [vmem:[#allocation10 + $0xf4] ss:$12 sps:$4 sm:$0xff]  }
 0x2f5   :  { %4247 = vmatprep.subr.bf16.mxu0 %v9493_v13  ;;  %v9506_v13 = vld [vmem:[#allocation10 + $0xf0] ss:$12 sps:$4 sm:$0xff]  }
 0x2f7   :  { %8637 = vmatpush3.bf16.msra.mxu1 %v9399_v2  ;;  %v9499_v2 = vld [vmem:[#allocation10 + $0xac] ss:$12 sps:$4 sm:$0xff]  }
 0x2f8   :  { %8638 = vmatprep.subr.bf16.mxu1 %v9400_v19  ;;  %4248 = vmatpush1.bf16.msra.mxu0 %v9491_v14  ;;  %v9497_v19 = vld [vmem:[#allocation10 + $0xa8] ss:$12 sps:$4 sm:$0xff]  }
 0x2f9   :  { %v8620_v21 = vpop.f32.mrb[8].mxu0  ;;  %4249 = vmatprep.subr.bf16.mxu0 %v9496_v63  ;;  %v9509_v14 = vld [vmem:[#allocation10 + $0x108] ss:$12 sps:$4 sm:$0xff]   ;;  %v9524_v63 = vld [vmem:[#allocation13] ss:$24 sps:$4 sm:$0xff]  }
 0x2fa   :  { %v8621_v22 = vpop.f32.mrb[9].mxu0 }
 0x2fb   :  { %v10753_v23 = vadd.f32 %v8621_v22, %v8620_v21  ;;  %8639 = vmatpush3.bf16.msra.mxu1 %v9401_v17  ;;  %v8623_v24 = vpop.f32.mrb[10].mxu0  ;;  %v9502_v17 = vld [vmem:[#allocation10 + $0xc4] ss:$12 sps:$4 sm:$0xff]   ;;  %v9505_v21 = vld [vmem:[#allocation10 + $0xdc] ss:$12 sps:$4 sm:$0xff]  }
 0x2fc   :  { %v8624_v26 = vpop.f32.mrb[11].mxu0  ;;  %8640 = vmatprep.subr.bf16.mxu1 %v9402_v54  ;;  %4250 = vmatpush1.bf16.msra.mxu0 %v9494_v15  ;;  %v9500_v54 = vld [vmem:[#allocation10 + $0xc0] ss:$12 sps:$4 sm:$0xff]   ;;  %v9503_v22 = vld [vmem:[#allocation10 + $0xd8] ss:$12 sps:$4 sm:$0xff]  }
 0x2fd   :  { %4251 = vmatprep.subr.bf16.mxu0 %v9499_v2  ;;  %v2556_v24 = vld [vmem:[#allocation7] sm:$0x7]  ;;  %v9526_v15 = vld [vmem:[#allocation13 + $0x4] ss:$24 sps:$4 sm:$0xff]  }
 0x2fe   :  { %v2565_v26 = vrot.slane %v2556_v24, %v10720_v56  ;;  %v9532_v2 = vld [vmem:[#allocation13 + $0x34] ss:$24 sps:$4 sm:$0xff]  }
 0x2ff   :  { %8641 = vmatpush3.bf16.msra.mxu1 %v9403_v25  ;;  %v2561_v25 = vrot.slane %v2556_v24, %v10717_v55 }
 0x300   :  { %3890 = vmatprep.subr.bf16.mxu1 %v9406_v28  ;;  %4252 = vmatpush1.bf16.msra.mxu0 %v9497_v19  ;;  %v9530_v19 = vld [vmem:[#allocation13 + $0x30] ss:$24 sps:$4 sm:$0xff]  }
 0x301   :  { %4253 = vmatprep.subr.bf16.mxu0 %v9502_v17  ;;  %v9538_v17 = vld [vmem:[#allocation13 + $0x64] ss:$24 sps:$4 sm:$0xff]  }
 0x302   :  { %3537 = vmatmul.mubr.bf16.vlgmr.msra.gmra.mrb[12].mxu1 %v10740_v20  ;;  %v9415_v20 = vld [vmem:[%s11014_s5 + $0x34] ss:$8 sps:$4 sm:$0xff]  }
 0x303   :  { %3891 = vmatpush1.bf16.msra.mxu1 %v9404_v29 }
 0x304   :  { %3892 = vmatprep.subr.bf16.mxu1 %v9409_v30  ;;  %4254 = vmatpush1.bf16.msra.mxu0 %v9500_v54  ;;  %v9536_v54 = vld [vmem:[#allocation13 + $0x60] ss:$24 sps:$4 sm:$0xff]  }
 0x305   :  { %4255 = vmatprep.subr.bf16.mxu0 %v9505_v21  ;;  %v9544_v21 = vld [vmem:[#allocation13 + $0x94] ss:$24 sps:$4 sm:$0xff]  }
 0x307   :  { %3893 = vmatpush1.bf16.msra.mxu1 %v9407_v31 }
 0x308   :  { %3894 = vmatprep.subr.bf16.mxu1 %v9412_v32  ;;  %4256 = vmatpush1.bf16.msra.mxu0 %v9503_v22  ;;  %v9542_v22 = vld [vmem:[#allocation13 + $0x90] ss:$24 sps:$4 sm:$0xff]  }
 0x309   :  { %4257 = vmatprep.subr.bf16.mxu0 %v9508_v12  ;;  %v9523_v12 = vld [vmem:[#allocation10 + $0x110] ss:$12 sps:$4 sm:$0xff]  }
 0x30b   :  { %3895 = vmatpush1.bf16.msra.mxu1 %v9410_v33 }
 0x30c   :  { %3896 = vmatprep.subr.bf16.mxu1 %v9415_v20  ;;  %4258 = vmatpush1.bf16.msra.mxu0 %v9506_v13  ;;  %v9529_v13 = vld [vmem:[#allocation13 + $0xc] ss:$24 sps:$4 sm:$0xff]  }
 0x30f   :  { %3897 = vmatpush1.bf16.msra.mxu1 %v9413_v34 }
 0x310   :  { %3898 = vmatprep.subr.bf16.mxu1 %v9418_v35 }
 0x313   :  { %3899 = vmatpush1.bf16.msra.mxu1 %v9416_v36 }
 0x314   :  { %3900 = vmatprep.subr.bf16.mxu1 %v9421_v37 }
 0x317   :  { %3901 = vmatpush1.bf16.msra.mxu1 %v9419_v38 }
 0x318   :  { %3902 = vmatprep.subr.bf16.mxu1 %v9424_v39 }
 0x31b   :  { %3903 = vmatpush1.bf16.msra.mxu1 %v9422_v40 }
 0x31c   :  { %3904 = vmatprep.subr.bf16.mxu1 %v9427_v41  ;;  %v9452_v41 = vld [vmem:[%s11014_s5 + $0x100] ss:$8 sps:$4 sm:$0xff]  }
 0x31f   :  { %3905 = vmatpush1.bf16.msra.mxu1 %v9425_v42 }
 0x320   :  { %3906 = vmatprep.subr.bf16.mxu1 %v9430_v44  ;;  %v9457_v44 = vld [vmem:[%s11014_s5 + $0x114] ss:$8 sps:$4 sm:$0xff]  }
 0x323   :  { %3907 = vmatpush1.bf16.msra.mxu1 %v9428_v45  ;;  %v9455_v45 = vld [vmem:[%s11014_s5 + $0x110] ss:$8 sps:$4 sm:$0xff]  }
 0x324   :  { %3908 = vmatprep.subr.bf16.mxu1 %v9433_v16  ;;  %v10443_v16 = vmov 0  }
 0x327   :  { %3909 = vmatpush1.bf16.msra.mxu1 %v9431_v47  ;;  %v9460_v47 = vld [vmem:[%s11014_s5 + $0x124] ss:$8 sps:$4 sm:$0xff]  }
 0x328   :  { %3910 = vmatprep.subr.bf16.mxu1 %v9436_v48  ;;  %v9458_v48 = vld [vmem:[%s11014_s5 + $0x120] ss:$8 sps:$4 sm:$0xff]  }
 0x32b   :  { %3911 = vmatpush1.bf16.msra.mxu1 %v9434_v51  ;;  %v9463_v51 = vld [vmem:[%s11014_s5 + $0x134] ss:$8 sps:$4 sm:$0xff]  }
 0x32c   :  { %3912 = vmatprep.subr.bf16.mxu1 %v9439_v52  ;;  %v9461_v52 = vld [vmem:[%s11014_s5 + $0x130] ss:$8 sps:$4 sm:$0xff]  }
 0x32f   :  { %3913 = vmatpush1.bf16.msra.mxu1 %v9437_v3  ;;  %v9466_v3 = vld [vmem:[%s11014_s5 + $0x144] ss:$8 sps:$4 sm:$0xff]  }
 0x330   :  { %3914 = vmatprep.subr.bf16.mxu1 %v9442_v53  ;;  %v9464_v53 = vld [vmem:[%s11014_s5 + $0x140] ss:$8 sps:$4 sm:$0xff]  }
 0x333   :  { %3915 = vmatpush1.bf16.msra.mxu1 %v9440_v18  ;;  %v9469_v18 = vld [vmem:[%s11014_s5 + $0x154] ss:$8 sps:$4 sm:$0xff]  }
 0x334   :  { %3916 = vmatprep.subr.bf16.mxu1 %v9445_v27  ;;  %v9467_v27 = vld [vmem:[%s11014_s5 + $0x150] ss:$8 sps:$4 sm:$0xff]  }
 0x337   :  { %3917 = vmatpush1.bf16.msra.mxu1 %v9443_v50  ;;  %v9472_v50 = vld [vmem:[%s11014_s5 + $0x164] ss:$8 sps:$4 sm:$0xff]  }
 0x338   :  { %3918 = vmatprep.subr.bf16.mxu1 %v9448_v57  ;;  %v2569_v57 = vrot.slane %v2556_v24, %v10729_v5  ;;  %v9550_v24 = vld [vmem:[#allocation13 + $0xc4] ss:$24 sps:$4 sm:$0xff]  }
 0x33a   :  { %v3499_v61 = vadd.f32 %v10753_v23, %v2569_v57  ;;  %v9511_v23 = vld [vmem:[#allocation10 + $0x10c] ss:$12 sps:$4 sm:$0xff]  }
 0x33b   :  { %3919 = vmatpush1.bf16.msra.mxu1 %v9446_v58  ;;  %v9470_v58 = vld [vmem:[%s11014_s5 + $0x160] ss:$8 sps:$4 sm:$0xff]   ;;  %4259 = vmatprep.subr.bf16.mxu0 %v9511_v23  ;;  %v9527_v23 = vld [vmem:[#allocation13 + $0x8] ss:$24 sps:$4 sm:$0xff]  }
 0x33c   :  { %3920 = vmatprep.subr.bf16.mxu1 %v9451_v59  ;;  %v9475_v59 = vld [vmem:[%s11014_s5 + $0x174] ss:$8 sps:$4 sm:$0xff]   ;;  %4260 = vmatpush1.bf16.msra.mxu0 %v9509_v14  ;;  %v9535_v14 = vld [vmem:[#allocation13 + $0x3c] ss:$24 sps:$4 sm:$0xff]  }
 0x33d   :  { %4278 = vmatprep.subr.bf16.mxu0 %v10443_v16 }
 0x33f   :  { %3921 = vmatpush1.bf16.msra.mxu1 %v9449_v43 }
 0x340   :  { %3931 = vmatprep.subr.bf16.mxu1 %v9454_v60 }
 0x3b5   :  { %v3457_v28 = vpop.f32.mrb[8].mxu1  ;;  %v8664_v29 = vpop.f32.mrb[12].mxu0 }
 0x3b6   :  { %v8678_v30 = vadd.f32 %v3457_v28, %v2561_v25  ;;  %v3459_v31 = vpop.f32.mrb[9].mxu1  ;;  %v8665_v32 = vpop.f32.mrb[13].mxu0  ;;  %v9548_v25 = vld [vmem:[#allocation13 + $0xc0] ss:$24 sps:$4 sm:$0xff]   ;;  %v9554_v28 = vld [vmem:[#allocation13 + $0xf0] ss:$24 sps:$4 sm:$0xff]  }
 0x3b7   :  { %v8679_v33 = vadd.f32 %v3459_v31, %v2565_v26  ;;  %v8666_v20 = vadd.f32 %v8665_v32, %v8664_v29  ;;  %v3461_v34 = vpop.f32.mrb[10].mxu1  ;;  %v8667_v35 = vpop.f32.mrb[14].mxu0  ;;  %v9556_v26 = vld [vmem:[#allocation13 + $0xf4] ss:$24 sps:$4 sm:$0xff]   ;;  %v9562_v29 = vld [vmem:[#allocation13 + $0x124] ss:$24 sps:$4 sm:$0xff]  }
 0x3b8   :  { %v3584_v36 = vmax.f32 %v8678_v30, 0.0  ;;  %v3462_v37 = vpop.f32.mrb[11].mxu1  ;;  %v8668_v38 = vpop.f32.mrb[15].mxu0  ;;  %v9560_v30 = vld [vmem:[#allocation13 + $0x120] ss:$24 sps:$4 sm:$0xff]  }
 0x3b9   :  { %v3585_v39 = vmax.f32 %v8679_v33, 0.0  ;;  %v9568_v31 = vld [vmem:[#allocation13 + $0x154] ss:$24 sps:$4 sm:$0xff]   ;;  %v9566_v32 = vld [vmem:[#allocation13 + $0x150] ss:$24 sps:$4 sm:$0xff]  }
 0x3ba   :  { %v3587_v42 = vpack.c.bf16 %v3584_v36, %v3584_v36  ;;  %v9574_v33 = vld [vmem:[#allocation13 + $0x184] ss:$24 sps:$4 sm:$0xff]   ;;  %v9580_v34 = vld [vmem:[#allocation13 + $0x1b4] ss:$24 sps:$4 sm:$0xff]   ;;  %v9578_v35 = vld [vmem:[#allocation13 + $0x1b0] ss:$24 sps:$4 sm:$0xff]  }
 0x3bb   :  { %v3588_v40 = vpack.c.bf16 %v3585_v39, %v3585_v39  ;;  %v9586_v36 = vld [vmem:[#allocation13 + $0x1e4] ss:$24 sps:$4 sm:$0xff]   ;;  %v9584_v37 = vld [vmem:[#allocation13 + $0x1e0] ss:$24 sps:$4 sm:$0xff]   ;;  %v9592_v38 = vld [vmem:[#allocation13 + $0x214] ss:$24 sps:$4 sm:$0xff]  }
 0x3bc   :  { %v9590_v39 = vld [vmem:[#allocation13 + $0x210] ss:$24 sps:$4 sm:$0xff]  }
 0x3bd   :  { %3922 = vmatprep.mubr.bf16.mxu1 %v3588_v40  ;;  %v9598_v40 = vld [vmem:[#allocation13 + $0x244] ss:$24 sps:$4 sm:$0xff]  }
 0x3be   :  { %3923 = vmatmul.mubr.bf16.vlgmr.msra.gmra.mrb[16].mxu1 %v3587_v42  ;;  %v9604_v42 = vld [vmem:[#allocation13 + $0x274] ss:$24 sps:$4 sm:$0xff]  }
 0x3bf   :  { %3932 = vmatpush1.bf16.msra.mxu1 %v9452_v41  ;;  %3963 = vmatprep.mubr.bf16.mxu1 %v10443_v16  ;;  %v9596_v41 = vld [vmem:[#allocation13 + $0x240] ss:$24 sps:$4 sm:$0xff]  }
 0x3c0   :  { %3933 = vmatprep.subr.bf16.mxu1 %v9457_v44  ;;  %v9602_v44 = vld [vmem:[#allocation13 + $0x270] ss:$24 sps:$4 sm:$0xff]  }
 0x3c3   :  { %3934 = vmatpush1.bf16.msra.mxu1 %v9455_v45  ;;  %v3638_v45 = vld [vmem:[#allocation9] sm:$0x3] }
 0x3c4   :  { %3935 = vmatprep.subr.bf16.mxu1 %v9460_v47  ;;  %v3643_v47 = vrot.slane %v3638_v45, %v10717_v55 }
 0x3c7   :  { %3936 = vmatpush1.bf16.msra.mxu1 %v9458_v48  ;;  %v3647_v48 = vrot.slane %v3638_v45, %v10720_v56  ;;  %v9607_v45 = vld [vmem:[#allocation13 + $0x27c] ss:$24 sps:$4 sm:$0xff]  }
 0x3c8   :  { %3937 = vmatprep.subr.bf16.mxu1 %v9463_v51 }
 0x3cb   :  { %3938 = vmatpush1.bf16.msra.mxu1 %v9461_v52 }
 0x3cc   :  { %3939 = vmatprep.subr.bf16.mxu1 %v9466_v3 }
 0x3cf   :  { %3940 = vmatpush1.bf16.msra.mxu1 %v9464_v53 }
 0x3d0   :  { %3941 = vmatprep.subr.bf16.mxu1 %v9469_v18 }
 0x3d3   :  { %3942 = vmatpush1.bf16.msra.mxu1 %v9467_v27 }
 0x3d4   :  { %3943 = vmatprep.subr.bf16.mxu1 %v9472_v50 }
 0x3d5   :  { %v8642_v43 = vpop.f32.mrb[12].mxu1 }
 0x3d6   :  { %v8643_v60 = vpop.f32.mrb[13].mxu1 }
 0x3d7   :  { %v8644_v0 = vadd.f32 %v8643_v60, %v8642_v43  ;;  %v8645_v1 = vpop.f32.mrb[14].mxu1  ;;  %3944 = vmatpush1.bf16.msra.mxu1 %v9470_v58  ;;  %v9513_v60 = vld [vmem:[#allocation10 + $0x20] ss:$12 sps:$4 sm:$0xff]  }
 0x3d8   :  { %v8646_v7 = vpop.f32.mrb[15].mxu1  ;;  %3945 = vmatprep.subr.bf16.mxu1 %v9475_v59  ;;  %v9512_v59 = vld [vmem:[#allocation10 + $0x8] ss:$12 sps:$4 sm:$0xff]  }
 0x3d9   :  { %v3539_v8 = vadd.f32 %v8644_v0, %v3499_v61  ;;  %v9514_v61 = vld [vmem:[#allocation10 + $0x38] ss:$12 sps:$4 sm:$0xff]   ;;  %v9515_v0 = vld [vmem:[#allocation10 + $0x50] ss:$12 sps:$4 sm:$0xff]   ;;  %v9516_v1 = vld [vmem:[#allocation10 + $0x68] ss:$12 sps:$4 sm:$0xff]  }
 0x3da   :  { %v9518_v7 = vld [vmem:[#allocation10 + $0x98] ss:$12 sps:$4 sm:$0xff]  }
 0x3db   :  { %v3579_v9 = vadd.f32 %v8666_v20, %v3539_v8  ;;  %3946 = vmatpush1.bf16.msra.mxu1 %v9473_v4  ;;  %v9572_v20 = vld [vmem:[#allocation13 + $0x180] ss:$24 sps:$4 sm:$0xff]   ;;  %v9517_v4 = vld [vmem:[#allocation10 + $0x80] ss:$12 sps:$4 sm:$0xff]  }
 0x3dc   :  { %5220 = vmatprep.subr.bf16.mxu1 %v9526_v15  ;;  %v9519_v8 = vld [vmem:[#allocation10 + $0xb0] ss:$12 sps:$4 sm:$0xff]  }
 0x3dd   :  { %v3586_v10 = vmax.f32 %v3579_v9, 0.0  ;;  %v9520_v9 = vld [vmem:[#allocation10 + $0xc8] ss:$12 sps:$4 sm:$0xff]  }
 0x3de   :  { %v9541_v15 = vld [vmem:[#allocation13 + $0x6c] ss:$24 sps:$4 sm:$0xff]  }
 0x3df   :  { %v3589_v11 = vpack.c.bf16 %v3586_v10, %v3586_v10  ;;  %v9521_v10 = vld [vmem:[#allocation10 + $0xe0] ss:$12 sps:$4 sm:$0xff]  }
 0x3e1   :  { %3964 = vmatmul.mubr.bf16.vlgmr.msra.gmra.mrb[16].mxu1 %v3589_v11  ;;  %v9522_v11 = vld [vmem:[#allocation10 + $0xf8] ss:$12 sps:$4 sm:$0xff]  }
 0x3e2   :  { %5221 = vmatpush1.bf16.msra.mxu1 %v9524_v63  ;;  %v9533_v63 = vld [vmem:[#allocation13 + $0x38] ss:$24 sps:$4 sm:$0xff]  }
 0x3e3   :  { %5222 = vmatprep.subr.bf16.mxu1 %v9532_v2  ;;  %v9539_v2 = vld [vmem:[#allocation13 + $0x68] ss:$24 sps:$4 sm:$0xff]  }
 0x3e6   :  { %5223 = vmatpush1.bf16.msra.mxu1 %v9530_v19  ;;  %v9547_v19 = vld [vmem:[#allocation13 + $0x9c] ss:$24 sps:$4 sm:$0xff]  }
 0x3e7   :  { %5224 = vmatprep.subr.bf16.mxu1 %v9538_v17  ;;  %v9545_v17 = vld [vmem:[#allocation13 + $0x98] ss:$24 sps:$4 sm:$0xff]  }
 0x3ea   :  { %5225 = vmatpush1.bf16.msra.mxu1 %v9536_v54  ;;  %v9553_v54 = vld [vmem:[#allocation13 + $0xcc] ss:$24 sps:$4 sm:$0xff]  }
 0x3eb   :  { %5226 = vmatprep.subr.bf16.mxu1 %v9544_v21  ;;  %v9551_v21 = vld [vmem:[#allocation13 + $0xc8] ss:$24 sps:$4 sm:$0xff]  }
 0x3ee   :  { %5227 = vmatpush1.bf16.msra.mxu1 %v9542_v22  ;;  %v9559_v22 = vld [vmem:[#allocation13 + $0xfc] ss:$24 sps:$4 sm:$0xff]  }
 0x3ef   :  { %5228 = vmatprep.subr.bf16.mxu1 %v9550_v24  ;;  %v9557_v24 = vld [vmem:[#allocation13 + $0xf8] ss:$24 sps:$4 sm:$0xff]  }
 0x3f2   :  { %5229 = vmatpush1.bf16.msra.mxu1 %v9548_v25  ;;  %v9565_v25 = vld [vmem:[#allocation13 + $0x12c] ss:$24 sps:$4 sm:$0xff]  }
 0x3f3   :  { %5230 = vmatprep.subr.bf16.mxu1 %v9556_v26  ;;  %v9563_v26 = vld [vmem:[#allocation13 + $0x128] ss:$24 sps:$4 sm:$0xff]  }
 0x3f6   :  { %5231 = vmatpush1.bf16.msra.mxu1 %v9554_v28  ;;  %v9571_v28 = vld [vmem:[#allocation13 + $0x15c] ss:$24 sps:$4 sm:$0xff]  }
 0x3f7   :  { %5232 = vmatprep.subr.bf16.mxu1 %v9562_v29  ;;  %v9569_v29 = vld [vmem:[#allocation13 + $0x158] ss:$24 sps:$4 sm:$0xff]  }
 0x3fa   :  { %5233 = vmatpush1.bf16.msra.mxu1 %v9560_v30  ;;  %v9577_v30 = vld [vmem:[#allocation13 + $0x18c] ss:$24 sps:$4 sm:$0xff]  }
 0x3fb   :  { %5234 = vmatprep.subr.bf16.mxu1 %v9568_v31  ;;  %v9575_v31 = vld [vmem:[#allocation13 + $0x188] ss:$24 sps:$4 sm:$0xff]  }
 0x3fe   :  { %5235 = vmatpush1.bf16.msra.mxu1 %v9566_v32  ;;  %v9583_v32 = vld [vmem:[#allocation13 + $0x1bc] ss:$24 sps:$4 sm:$0xff]  }
 0x3ff   :  { %5236 = vmatprep.subr.bf16.mxu1 %v9574_v33  ;;  %v9581_v33 = vld [vmem:[#allocation13 + $0x1b8] ss:$24 sps:$4 sm:$0xff]  }
 0x402   :  { %5237 = vmatpush1.bf16.msra.mxu1 %v9572_v20  ;;  %v9589_v20 = vld [vmem:[#allocation13 + $0x1ec] ss:$24 sps:$4 sm:$0xff]  }
 0x403   :  { %5238 = vmatprep.subr.bf16.mxu1 %v9580_v34  ;;  %v9610_v34 = vld [vmem:[#allocation13 + $0x2a4] ss:$24 sps:$4 sm:$0xff]  }
 0x406   :  { %5239 = vmatpush1.bf16.msra.mxu1 %v9578_v35  ;;  %v9608_v35 = vld [vmem:[#allocation13 + $0x2a0] ss:$24 sps:$4 sm:$0xff]  }
 0x407   :  { %5240 = vmatprep.subr.bf16.mxu1 %v9586_v36  ;;  %v9587_v36 = vld [vmem:[#allocation13 + $0x1e8] ss:$24 sps:$4 sm:$0xff]  }
 0x40a   :  { %5241 = vmatpush1.bf16.msra.mxu1 %v9584_v37  ;;  %v9595_v37 = vld [vmem:[#allocation13 + $0x21c] ss:$24 sps:$4 sm:$0xff]  }
 0x40b   :  { %5242 = vmatprep.subr.bf16.mxu1 %v9592_v38  ;;  %v9616_v38 = vld [vmem:[#allocation13 + $0x2d4] ss:$24 sps:$4 sm:$0xff]  }
 0x40e   :  { %5243 = vmatpush1.bf16.msra.mxu1 %v9590_v39  ;;  %v9614_v39 = vld [vmem:[#allocation13 + $0x2d0] ss:$24 sps:$4 sm:$0xff]  }
 0x40f   :  { %5244 = vmatprep.subr.bf16.mxu1 %v9598_v40  ;;  %v9593_v40 = vld [vmem:[#allocation13 + $0x218] ss:$24 sps:$4 sm:$0xff]  }
 0x412   :  { %5245 = vmatpush1.bf16.msra.mxu1 %v9596_v41  ;;  %v9601_v41 = vld [vmem:[#allocation13 + $0x24c] ss:$24 sps:$4 sm:$0xff]  }
 0x413   :  { %5246 = vmatprep.subr.bf16.mxu1 %v9604_v42  ;;  %v9622_v42 = vld [vmem:[#allocation13 + $0x304] ss:$24 sps:$4 sm:$0xff]  }
 0x416   :  { %5247 = vmatpush1.bf16.msra.mxu1 %v9602_v44  ;;  %v9599_v44 = vld [vmem:[#allocation13 + $0x248] ss:$24 sps:$4 sm:$0xff]  }
 0x417   :  { %5248 = vmatprep.subr.bf16.mxu1 %v9610_v34  ;;  %v9664_v34 = vld [vmem:[#allocation13 + $0x454] ss:$24 sps:$4 sm:$0xff]  }
 0x41a   :  { %5249 = vmatpush1.bf16.msra.mxu1 %v9608_v35  ;;  %v9667_v35 = vld [vmem:[#allocation13 + $0x45c] ss:$24 sps:$4 sm:$0xff]  }
 0x41b   :  { %5250 = vmatprep.subr.bf16.mxu1 %v9616_v38  ;;  %v9670_v38 = vld [vmem:[#allocation13 + $0x14] ss:$24 sps:$4 sm:$0xff]  }
 0x41e   :  { %5251 = vmatpush1.bf16.msra.mxu1 %v9614_v39  ;;  %v9742_v39 = vld [vmem:[#allocation16 + $0x4] ss:$24 sps:$4 sm:$0xff]  }
 0x41f   :  { %5261 = vmatprep.subr.bf16.mxu1 %v9622_v42 }
 0x4b4   :  { %v3965_v51 = vpop.f32.mrb[16].mxu1 }
 0x4b5   :  { %v8680_v52 = vadd.f32 %v3965_v51, %v3643_v47  ;;  %v3967_v3 = vpop.f32.mrb[17].mxu1  ;;  %v9605_v47 = vld [vmem:[#allocation13 + $0x278] ss:$24 sps:$4 sm:$0xff]   ;;  %v9611_v51 = vld [vmem:[#allocation13 + $0x2a8] ss:$24 sps:$4 sm:$0xff]  }
 0x4b6   :  { %v8681_v53 = vadd.f32 %v3967_v3, %v3647_v48  ;;  %v3969_v18 = vpop.f32.mrb[18].mxu1  ;;  %v9613_v48 = vld [vmem:[#allocation13 + $0x2ac] ss:$24 sps:$4 sm:$0xff]   ;;  %v9617_v3 = vld [vmem:[#allocation13 + $0x2d8] ss:$24 sps:$4 sm:$0xff]  }
 0x4b7   :  { %v3972_v27 = vmax.f32 %v8680_v52, 0.0  ;;  %v3970_v50 = vpop.f32.mrb[19].mxu1  ;;  %v9619_v52 = vld [vmem:[#allocation13 + $0x2dc] ss:$24 sps:$4 sm:$0xff]  }
 0x4b8   :  { %v3973_v57 = vmax.f32 %v8681_v53, 0.0  ;;  %v9625_v53 = vld [vmem:[#allocation13 + $0x30c] ss:$24 sps:$4 sm:$0xff]   ;;  %v10919_v18 = vld [vmem:[#allocation12] sm:$0x7] }
 0x4b9   :  { %v3974_v43 = vpack.c.bf16 %v3972_v27, %v3972_v27  ;;  %v4029_v27 = vrot.slane %v10919_v18, %v10717_v55  ;;  %v4033_v50 = vrot.slane %v10919_v18, %v10720_v56 }
 0x4ba   :  { %v3975_v58 = vpack.c.bf16 %v3973_v57, %v3973_v57 }
 0x4bc   :  { %8169 = vmatprep.mubr.msk.bf16.mxu0 %vm4233_vm0, %v3975_v58 }
 0x4bd   :  { %4270 = vmatmul.mubr.bf16.vlgmr.msra.gmra.mrb[16].mxu0 %v3974_v43 }
 0x4be   :  { %4279 = vmatpush1.bf16.msra.mxu0 %v9512_v59  ;;  %8170 = vmatprep.mubr.msk.bf16.mxu0 %vm4233_vm0, %v3975_v58 }
 0x4bf   :  { %4280 = vmatprep.subr.bf16.mxu0 %v10443_v16 }
 0x4c2   :  { %4281 = vmatpush1.bf16.msra.mxu0 %v9513_v60 }
 0x4c3   :  { %4282 = vmatprep.subr.bf16.mxu0 %v10443_v16 }
 0x4c6   :  { %4283 = vmatpush1.bf16.msra.mxu0 %v9514_v61 }
 0x4c7   :  { %4284 = vmatprep.subr.bf16.mxu0 %v10443_v16 }
 0x4ca   :  { %4285 = vmatpush1.bf16.msra.mxu0 %v9515_v0 }
 0x4cb   :  { %4286 = vmatprep.subr.bf16.mxu0 %v10443_v16 }
 0x4ce   :  { %4287 = vmatpush1.bf16.msra.mxu0 %v9516_v1 }
 0x4cf   :  { %4288 = vmatprep.subr.bf16.mxu0 %v10443_v16 }
 0x4d2   :  { %4289 = vmatpush1.bf16.msra.mxu0 %v9517_v4 }
 0x4d3   :  { %4290 = vmatprep.subr.bf16.mxu0 %v10443_v16 }
 0x4d6   :  { %4291 = vmatpush1.bf16.msra.mxu0 %v9518_v7  ;;  %v9620_v7 = vld [vmem:[#allocation13 + $0x300] ss:$24 sps:$4 sm:$0xff]  }
 0x4d7   :  { %4292 = vmatprep.subr.bf16.mxu0 %v10443_v16 }
 0x4da   :  { %4293 = vmatpush1.bf16.msra.mxu0 %v9519_v8  ;;  %v9623_v8 = vld [vmem:[#allocation13 + $0x308] ss:$24 sps:$4 sm:$0xff]  }
 0x4db   :  { %4294 = vmatprep.subr.bf16.mxu0 %v10443_v16 }
 0x4de   :  { %4295 = vmatpush1.bf16.msra.mxu0 %v9520_v9 }
 0x4df   :  { %4296 = vmatprep.subr.bf16.mxu0 %v10443_v16 }
 0x4e2   :  { %4297 = vmatpush1.bf16.msra.mxu0 %v9521_v10  ;;  %v9628_v10 = vld [vmem:[#allocation13 + $0x334] ss:$24 sps:$4 sm:$0xff]  }
 0x4e3   :  { %4298 = vmatprep.subr.bf16.mxu0 %v10443_v16 }
 0x4e6   :  { %4299 = vmatpush1.bf16.msra.mxu0 %v9522_v11  ;;  %v9631_v11 = vld [vmem:[#allocation13 + $0x33c] ss:$24 sps:$4 sm:$0xff]  }
 0x4e7   :  { %4300 = vmatprep.subr.bf16.mxu0 %v10443_v16 }
 0x4ea   :  { %4301 = vmatpush1.bf16.msra.mxu0 %v9523_v12  ;;  %v9626_v12 = vld [vmem:[#allocation13 + $0x330] ss:$24 sps:$4 sm:$0xff]  }
 0x4eb   :  { %5302 = vmatprep.subr.bf16.mxu0 %v9529_v13  ;;  %v9629_v13 = vld [vmem:[#allocation13 + $0x338] ss:$24 sps:$4 sm:$0xff]  }
 0x4ed   :  { %4311 = vmatmul.mubr.bf16.vlgmr.msra.gmra.mrb[20].mxu0 %v3974_v43 }
 0x4ee   :  { %5303 = vmatpush1.bf16.msra.mxu0 %v9527_v23  ;;  %v9634_v23 = vld [vmem:[#allocation13 + $0x364] ss:$24 sps:$4 sm:$0xff]  }
 0x4ef   :  { %5304 = vmatprep.subr.bf16.mxu0 %v9535_v14  ;;  %v9637_v14 = vld [vmem:[#allocation13 + $0x36c] ss:$24 sps:$4 sm:$0xff]  }
 0x4f2   :  { %5305 = vmatpush1.bf16.msra.mxu0 %v9533_v63  ;;  %v9632_v63 = vld [vmem:[#allocation13 + $0x360] ss:$24 sps:$4 sm:$0xff]  }
 0x4f3   :  { %5306 = vmatprep.subr.bf16.mxu0 %v9541_v15  ;;  %v9635_v15 = vld [vmem:[#allocation13 + $0x368] ss:$24 sps:$4 sm:$0xff]  }
 0x4f6   :  { %5307 = vmatpush1.bf16.msra.mxu0 %v9539_v2  ;;  %v9640_v2 = vld [vmem:[#allocation13 + $0x394] ss:$24 sps:$4 sm:$0xff]  }
 0x4f7   :  { %5308 = vmatprep.subr.bf16.mxu0 %v9547_v19  ;;  %v9643_v19 = vld [vmem:[#allocation13 + $0x39c] ss:$24 sps:$4 sm:$0xff]  }
 0x4fa   :  { %5309 = vmatpush1.bf16.msra.mxu0 %v9545_v17  ;;  %v9638_v17 = vld [vmem:[#allocation13 + $0x390] ss:$24 sps:$4 sm:$0xff]  }
 0x4fb   :  { %5310 = vmatprep.subr.bf16.mxu0 %v9553_v54  ;;  %v9641_v54 = vld [vmem:[#allocation13 + $0x398] ss:$24 sps:$4 sm:$0xff]  }
 0x4fe   :  { %5311 = vmatpush1.bf16.msra.mxu0 %v9551_v21  ;;  %v9646_v21 = vld [vmem:[#allocation13 + $0x3c4] ss:$24 sps:$4 sm:$0xff]  }
 0x4ff   :  { %5312 = vmatprep.subr.bf16.mxu0 %v9559_v22  ;;  %v9649_v22 = vld [vmem:[#allocation13 + $0x3cc] ss:$24 sps:$4 sm:$0xff]  }
 0x502   :  { %5313 = vmatpush1.bf16.msra.mxu0 %v9557_v24  ;;  %v9644_v24 = vld [vmem:[#allocation13 + $0x3c0] ss:$24 sps:$4 sm:$0xff]  }
 0x503   :  { %5314 = vmatprep.subr.bf16.mxu0 %v9565_v25  ;;  %v9647_v25 = vld [vmem:[#allocation13 + $0x3c8] ss:$24 sps:$4 sm:$0xff]  }
 0x506   :  { %5315 = vmatpush1.bf16.msra.mxu0 %v9563_v26  ;;  %v9652_v26 = vld [vmem:[#allocation13 + $0x3f4] ss:$24 sps:$4 sm:$0xff]  }
 0x507   :  { %5316 = vmatprep.subr.bf16.mxu0 %v9571_v28  ;;  %v9655_v28 = vld [vmem:[#allocation13 + $0x3fc] ss:$24 sps:$4 sm:$0xff]  }
 0x50a   :  { %5317 = vmatpush1.bf16.msra.mxu0 %v9569_v29  ;;  %v9650_v29 = vld [vmem:[#allocation13 + $0x3f0] ss:$24 sps:$4 sm:$0xff]  }
 0x50b   :  { %5318 = vmatprep.subr.bf16.mxu0 %v9577_v30  ;;  %v9653_v30 = vld [vmem:[#allocation13 + $0x3f8] ss:$24 sps:$4 sm:$0xff]  }
 0x50e   :  { %5319 = vmatpush1.bf16.msra.mxu0 %v9575_v31  ;;  %v9658_v31 = vld [vmem:[#allocation13 + $0x424] ss:$24 sps:$4 sm:$0xff]  }
 0x50f   :  { %5320 = vmatprep.subr.bf16.mxu0 %v9583_v32  ;;  %v9661_v32 = vld [vmem:[#allocation13 + $0x42c] ss:$24 sps:$4 sm:$0xff]  }
 0x512   :  { %5321 = vmatpush1.bf16.msra.mxu0 %v9581_v33  ;;  %v9656_v33 = vld [vmem:[#allocation13 + $0x420] ss:$24 sps:$4 sm:$0xff]  }
 0x513   :  { %5322 = vmatprep.subr.bf16.mxu0 %v9589_v20  ;;  %v9659_v20 = vld [vmem:[#allocation13 + $0x428] ss:$24 sps:$4 sm:$0xff]  }
 0x516   :  { %5323 = vmatpush1.bf16.msra.mxu0 %v9587_v36  ;;  %v9662_v36 = vld [vmem:[#allocation13 + $0x450] ss:$24 sps:$4 sm:$0xff]  }
 0x517   :  { %5324 = vmatprep.subr.bf16.mxu0 %v9595_v37  ;;  %v9665_v37 = vld [vmem:[#allocation13 + $0x458] ss:$24 sps:$4 sm:$0xff]  }
 0x51a   :  { %5325 = vmatpush1.bf16.msra.mxu0 %v9593_v40  ;;  %v4037_v40 = vrot.slane %v10919_v18, %v10729_v5  ;;  %v9671_v18 = vld [vmem:[#allocation13 + $0x40] ss:$24 sps:$4 sm:$0xff]  }
 0x51b   :  { %5326 = vmatprep.subr.bf16.mxu0 %v9601_v41 }
 0x51e   :  { %5327 = vmatpush1.bf16.msra.mxu0 %v9599_v44 }
 0x51f   :  { %5328 = vmatprep.subr.bf16.mxu0 %v9607_v45 }
 0x522   :  { %5329 = vmatpush1.bf16.msra.mxu0 %v9605_v47 }
 0x523   :  { %5330 = vmatprep.subr.bf16.mxu0 %v9613_v48 }
 0x526   :  { %5331 = vmatpush1.bf16.msra.mxu0 %v9611_v51  ;;  %v9668_v51 = vld [vmem:[#allocation13 + $0x10] ss:$24 sps:$4 sm:$0xff]  }
 0x527   :  { %5332 = vmatprep.subr.bf16.mxu0 %v9619_v52 }
 0x52a   :  { %5333 = vmatpush1.bf16.msra.mxu0 %v9617_v3  ;;  %v9673_v3 = vld [vmem:[#allocation13 + $0x44] ss:$24 sps:$4 sm:$0xff]  }
 0x52b   :  { %5343 = vmatprep.subr.bf16.mxu0 %v9625_v53  ;;  %v9740_v53 = vld [vmem:[#allocation16] ss:$24 sps:$4 sm:$0xff]  }
 0x590   :  { %v4271_v57 = vpop.f32.mrb[16].mxu0 }
 0x591   :  { %v4272_v58 = vadd.f32 %v4271_v57, %v4029_v27  ;;  %v4273_v59 = vpop.f32.mrb[17].mxu0  ;;  %v9748_v27 = vld [vmem:[#allocation16 + $0x34] ss:$24 sps:$4 sm:$0xff]   ;;  %v9746_v57 = vld [vmem:[#allocation16 + $0x30] ss:$24 sps:$4 sm:$0xff]  }
 0x592   :  { %v4274_v43 = vadd.f32 %v4273_v59, %v4033_v50  ;;  %v4275_v60 = vpop.f32.mrb[18].mxu0  ;;  %v9676_v50 = vld [vmem:[#allocation13 + $0x74] ss:$24 sps:$4 sm:$0xff]   ;;  %v9674_v59 = vld [vmem:[#allocation13 + $0x70] ss:$24 sps:$4 sm:$0xff]  }
 0x593   :  { %v4318_v61 = vmax.f32 %v4272_v58, 0.0  ;;  %v4276_v0 = vpop.f32.mrb[19].mxu0  ;;  %v9754_v58 = vld [vmem:[#allocation16 + $0x64] ss:$24 sps:$4 sm:$0xff]   ;;  %v9752_v60 = vld [vmem:[#allocation16 + $0x60] ss:$24 sps:$4 sm:$0xff]  }
 0x594   :  { %v4319_v1 = vmax.f32 %v4274_v43, 0.0  ;;  %v9679_v43 = vld [vmem:[#allocation13 + $0xa4] ss:$24 sps:$4 sm:$0xff]   ;;  %v9677_v0 = vld [vmem:[#allocation13 + $0xa0] ss:$24 sps:$4 sm:$0xff]  }
 0x595   :  { %v10927_v9 = vpack.c.bf16 %v4318_v61, %v4318_v61  ;;  %v9760_v61 = vld [vmem:[#allocation16 + $0x94] ss:$24 sps:$4 sm:$0xff]  }
 0x596   :  { %v10925_v4 = vpack.c.bf16 %v4319_v1, %v4319_v1  ;;  %v9682_v1 = vld [vmem:[#allocation13 + $0xd4] ss:$24 sps:$4 sm:$0xff]  }
 0x598   :  { %5252 = vmatprep.mubr.bf16.mxu1 %v10925_v4  ;;  %5334 = vmatprep.mubr.bf16.mxu0 %v10925_v4 }
 0x599   :  { %5253 = vmatmul.mubr.bf16.vlgmr.msra.gmra.mrb[20].mxu1 %v10927_v9  ;;  %5335 = vmatmul.mubr.bf16.vlgmr.msra.gmra.mrb[24].mxu0 %v10927_v9 }
 0x59a   :  { %5262 = vmatpush1.bf16.msra.mxu1 %v9620_v7  ;;  %5344 = vmatpush1.bf16.msra.mxu0 %v9623_v8  ;;  %v9766_v7 = vld [vmem:[#allocation16 + $0xc4] ss:$24 sps:$4 sm:$0xff]  }
 0x59b   :  { %5263 = vmatprep.subr.bf16.mxu1 %v9628_v10  ;;  %5345 = vmatprep.subr.bf16.mxu0 %v9631_v11  ;;  %v9680_v8 = vld [vmem:[#allocation13 + $0xd0] ss:$24 sps:$4 sm:$0xff]   ;;  %v9685_v10 = vld [vmem:[#allocation13 + $0x104] ss:$24 sps:$4 sm:$0xff]  }
 0x59c   :  { %5293 = vmatprep.mubr.bf16.mxu1 %v10443_v16  ;;  %5375 = vmatprep.mubr.bf16.mxu0 %v10443_v16  ;;  %v9764_v11 = vld [vmem:[#allocation16 + $0xc0] ss:$24 sps:$4 sm:$0xff]  }
 0x59e   :  { %5264 = vmatpush1.bf16.msra.mxu1 %v9626_v12  ;;  %5346 = vmatpush1.bf16.msra.mxu0 %v9629_v13  ;;  %v9772_v12 = vld [vmem:[#allocation16 + $0xf4] ss:$24 sps:$4 sm:$0xff]  }
 0x59f   :  { %5265 = vmatprep.subr.bf16.mxu1 %v9634_v23  ;;  %5347 = vmatprep.subr.bf16.mxu0 %v9637_v14  ;;  %v9683_v13 = vld [vmem:[#allocation13 + $0x100] ss:$24 sps:$4 sm:$0xff]   ;;  %v9688_v23 = vld [vmem:[#allocation13 + $0x134] ss:$24 sps:$4 sm:$0xff]  }
 0x5a0   :  { %v9770_v14 = vld [vmem:[#allocation16 + $0xf0] ss:$24 sps:$4 sm:$0xff]  }
 0x5a2   :  { %5266 = vmatpush1.bf16.msra.mxu1 %v9632_v63  ;;  %5348 = vmatpush1.bf16.msra.mxu0 %v9635_v15  ;;  %v9778_v63 = vld [vmem:[#allocation16 + $0x124] ss:$24 sps:$4 sm:$0xff]  }
 0x5a3   :  { %5267 = vmatprep.subr.bf16.mxu1 %v9640_v2  ;;  %5349 = vmatprep.subr.bf16.mxu0 %v9643_v19  ;;  %v9686_v15 = vld [vmem:[#allocation13 + $0x130] ss:$24 sps:$4 sm:$0xff]   ;;  %v9691_v2 = vld [vmem:[#allocation13 + $0x164] ss:$24 sps:$4 sm:$0xff]  }
 0x5a4   :  { %v9776_v19 = vld [vmem:[#allocation16 + $0x120] ss:$24 sps:$4 sm:$0xff]  }
 0x5a6   :  { %5268 = vmatpush1.bf16.msra.mxu1 %v9638_v17  ;;  %5350 = vmatpush1.bf16.msra.mxu0 %v9641_v54  ;;  %v9784_v17 = vld [vmem:[#allocation16 + $0x154] ss:$24 sps:$4 sm:$0xff]  }
 0x5a7   :  { %5269 = vmatprep.subr.bf16.mxu1 %v9646_v21  ;;  %5351 = vmatprep.subr.bf16.mxu0 %v9649_v22  ;;  %v9689_v54 = vld [vmem:[#allocation13 + $0x160] ss:$24 sps:$4 sm:$0xff]   ;;  %v9694_v21 = vld [vmem:[#allocation13 + $0x194] ss:$24 sps:$4 sm:$0xff]  }
 0x5a8   :  { %v9782_v22 = vld [vmem:[#allocation16 + $0x150] ss:$24 sps:$4 sm:$0xff]  }
 0x5aa   :  { %5270 = vmatpush1.bf16.msra.mxu1 %v9644_v24  ;;  %5352 = vmatpush1.bf16.msra.mxu0 %v9647_v25  ;;  %v9790_v24 = vld [vmem:[#allocation16 + $0x184] ss:$24 sps:$4 sm:$0xff]  }
 0x5ab   :  { %5271 = vmatprep.subr.bf16.mxu1 %v9652_v26  ;;  %5353 = vmatprep.subr.bf16.mxu0 %v9655_v28  ;;  %v9692_v25 = vld [vmem:[#allocation13 + $0x190] ss:$24 sps:$4 sm:$0xff]   ;;  %v9697_v26 = vld [vmem:[#allocation13 + $0x1c4] ss:$24 sps:$4 sm:$0xff]  }
 0x5ac   :  { %v9788_v28 = vld [vmem:[#allocation16 + $0x180] ss:$24 sps:$4 sm:$0xff]  }
 0x5ae   :  { %5272 = vmatpush1.bf16.msra.mxu1 %v9650_v29  ;;  %5354 = vmatpush1.bf16.msra.mxu0 %v9653_v30  ;;  %v9796_v29 = vld [vmem:[#allocation16 + $0x1b4] ss:$24 sps:$4 sm:$0xff]  }
 0x5af   :  { %5273 = vmatprep.subr.bf16.mxu1 %v9658_v31  ;;  %5355 = vmatprep.subr.bf16.mxu0 %v9661_v32  ;;  %v9695_v30 = vld [vmem:[#allocation13 + $0x1c0] ss:$24 sps:$4 sm:$0xff]   ;;  %v9700_v31 = vld [vmem:[#allocation13 + $0x1f4] ss:$24 sps:$4 sm:$0xff]  }
 0x5b0   :  { %v9794_v32 = vld [vmem:[#allocation16 + $0x1b0] ss:$24 sps:$4 sm:$0xff]  }
 0x5b2   :  { %5274 = vmatpush1.bf16.msra.mxu1 %v9656_v33  ;;  %5356 = vmatpush1.bf16.msra.mxu0 %v9659_v20  ;;  %v9802_v33 = vld [vmem:[#allocation16 + $0x1e4] ss:$24 sps:$4 sm:$0xff]  }
 0x5b3   :  { %5275 = vmatprep.subr.bf16.mxu1 %v9664_v34  ;;  %5357 = vmatprep.subr.bf16.mxu0 %v9667_v35  ;;  %v9698_v20 = vld [vmem:[#allocation13 + $0x1f0] ss:$24 sps:$4 sm:$0xff]   ;;  %v9703_v34 = vld [vmem:[#allocation13 + $0x224] ss:$24 sps:$4 sm:$0xff]  }
 0x5b4   :  { %v9800_v35 = vld [vmem:[#allocation16 + $0x1e0] ss:$24 sps:$4 sm:$0xff]  }
 0x5b6   :  { %5276 = vmatpush1.bf16.msra.mxu1 %v9662_v36  ;;  %5358 = vmatpush1.bf16.msra.mxu0 %v9665_v37  ;;  %v9808_v36 = vld [vmem:[#allocation16 + $0x214] ss:$24 sps:$4 sm:$0xff]  }
 0x5b7   :  { %5384 = vmatprep.subr.bf16.mxu1 %v9670_v38  ;;  %7238 = vmatprep.subr.bf16.mxu0 %v9742_v39  ;;  %v9701_v37 = vld [vmem:[#allocation13 + $0x220] ss:$24 sps:$4 sm:$0xff]   ;;  %v9706_v38 = vld [vmem:[#allocation13 + $0x254] ss:$24 sps:$4 sm:$0xff]  }
 0x5b8   :  { %v9806_v39 = vld [vmem:[#allocation16 + $0x210] ss:$24 sps:$4 sm:$0xff]  }
 0x5c0   :  { %v4312_v41 = vpop.f32.mrb[20].mxu0 }
 0x5c1   :  { %v4313_v42 = vadd.f32 %v4312_v41, %v4037_v40  ;;  %v4314_v44 = vpop.f32.mrb[21].mxu0  ;;  %v9814_v40 = vld [vmem:[#allocation16 + $0x244] ss:$24 sps:$4 sm:$0xff]  }
 0x5c2   :  { %v4315_v45 = vpop.f32.mrb[22].mxu0  ;;  %v9704_v41 = vld [vmem:[#allocation13 + $0x250] ss:$24 sps:$4 sm:$0xff]  }
 0x5c3   :  { %v4320_v47 = vmax.f32 %v4313_v42, 0.0  ;;  %v4316_v48 = vpop.f32.mrb[23].mxu0  ;;  %v9709_v42 = vld [vmem:[#allocation13 + $0x284] ss:$24 sps:$4 sm:$0xff]  }
 0x5c4   :  { %v9812_v44 = vld [vmem:[#allocation16 + $0x240] ss:$24 sps:$4 sm:$0xff]   ;;  %v9820_v45 = vld [vmem:[#allocation16 + $0x274] ss:$24 sps:$4 sm:$0xff]  }
 0x5c5   :  { %v10937_v52 = vpack.c.bf16 %v4320_v47, %v4320_v47  ;;  %v9707_v47 = vld [vmem:[#allocation13 + $0x280] ss:$24 sps:$4 sm:$0xff]   ;;  %v9712_v48 = vld [vmem:[#allocation13 + $0x2b4] ss:$24 sps:$4 sm:$0xff]  }
 0x5c7   :  { %5294 = vmatmul.mubr.bf16.vlgmr.msra.gmra.mrb[20].mxu1 %v10937_v52  ;;  %5376 = vmatmul.mubr.bf16.vlgmr.msra.gmra.mrb[24].mxu0 %v10937_v52 }
 0x5c8   :  { %5385 = vmatpush1.bf16.msra.mxu1 %v9668_v51  ;;  %5416 = vmatprep.mubr.bf16.mxu1 %v10925_v4  ;;  %v9758_v4 = vld [vmem:[#allocation16 + $0x90] ss:$24 sps:$4 sm:$0xff]  }
 0x5c9   :  { %5386 = vmatprep.subr.bf16.mxu1 %v9673_v3  ;;  %7239 = vmatpush1.bf16.msra.mxu0 %v9740_v53  ;;  %v9818_v51 = vld [vmem:[#allocation16 + $0x270] ss:$24 sps:$4 sm:$0xff]   ;;  %v9715_v53 = vld [vmem:[#allocation13 + $0x2e4] ss:$24 sps:$4 sm:$0xff]  }
 0x5ca   :  { %7240 = vmatprep.subr.bf16.mxu0 %v9748_v27  ;;  %v9710_v3 = vld [vmem:[#allocation13 + $0x2b0] ss:$24 sps:$4 sm:$0xff]   ;;  %v9713_v27 = vld [vmem:[#allocation13 + $0x2e0] ss:$24 sps:$4 sm:$0xff]  }
 0x5cc   :  { %5387 = vmatpush1.bf16.msra.mxu1 %v9671_v18  ;;  %v9718_v18 = vld [vmem:[#allocation13 + $0x314] ss:$24 sps:$4 sm:$0xff]  }
 0x5cd   :  { %5388 = vmatprep.subr.bf16.mxu1 %v9676_v50  ;;  %7241 = vmatpush1.bf16.msra.mxu0 %v9746_v57  ;;  %v9716_v50 = vld [vmem:[#allocation13 + $0x310] ss:$24 sps:$4 sm:$0xff]   ;;  %v9721_v57 = vld [vmem:[#allocation13 + $0x344] ss:$24 sps:$4 sm:$0xff]  }
 0x5ce   :  { %7242 = vmatprep.subr.bf16.mxu0 %v9754_v58  ;;  %v9719_v58 = vld [vmem:[#allocation13 + $0x340] ss:$24 sps:$4 sm:$0xff]  }
 0x5d0   :  { %5389 = vmatpush1.bf16.msra.mxu1 %v9674_v59  ;;  %v9724_v59 = vld [vmem:[#allocation13 + $0x374] ss:$24 sps:$4 sm:$0xff]  }
 0x5d1   :  { %5390 = vmatprep.subr.bf16.mxu1 %v9679_v43  ;;  %7243 = vmatpush1.bf16.msra.mxu0 %v9752_v60  ;;  %v9722_v43 = vld [vmem:[#allocation13 + $0x370] ss:$24 sps:$4 sm:$0xff]   ;;  %v9727_v60 = vld [vmem:[#allocation13 + $0x3a4] ss:$24 sps:$4 sm:$0xff]  }
 0x5d2   :  { %7244 = vmatprep.subr.bf16.mxu0 %v9760_v61  ;;  %v9725_v61 = vld [vmem:[#allocation13 + $0x3a0] ss:$24 sps:$4 sm:$0xff]  }
 0x5d4   :  { %5391 = vmatpush1.bf16.msra.mxu1 %v9677_v0  ;;  %v9730_v0 = vld [vmem:[#allocation13 + $0x3d4] ss:$24 sps:$4 sm:$0xff]  }
 0x5d5   :  { %5392 = vmatprep.subr.bf16.mxu1 %v9682_v1  ;;  %7245 = vmatpush1.bf16.msra.mxu0 %v9758_v4  ;;  %v9728_v1 = vld [vmem:[#allocation13 + $0x3d0] ss:$24 sps:$4 sm:$0xff]   ;;  %v9733_v4 = vld [vmem:[#allocation13 + $0x404] ss:$24 sps:$4 sm:$0xff]  }
 0x5d6   :  { %7246 = vmatprep.subr.bf16.mxu0 %v9766_v7  ;;  %v9736_v7 = vld [vmem:[#allocation13 + $0x434] ss:$24 sps:$4 sm:$0xff]  }
 0x5d8   :  { %5393 = vmatpush1.bf16.msra.mxu1 %v9680_v8  ;;  %v9826_v8 = vld [vmem:[#allocation16 + $0x2a4] ss:$24 sps:$4 sm:$0xff]  }
 0x5d9   :  { %5394 = vmatprep.subr.bf16.mxu1 %v9685_v10  ;;  %7247 = vmatpush1.bf16.msra.mxu0 %v9764_v11  ;;  %v9734_v10 = vld [vmem:[#allocation13 + $0x430] ss:$24 sps:$4 sm:$0xff]   ;;  %v9739_v11 = vld [vmem:[#allocation13 + $0x464] ss:$24 sps:$4 sm:$0xff]  }
 0x5da   :  { %7248 = vmatprep.subr.bf16.mxu0 %v9772_v12  ;;  %v9832_v12 = vld [vmem:[#allocation16 + $0x2d4] ss:$24 sps:$4 sm:$0xff]  }
 0x5dc   :  { %5395 = vmatpush1.bf16.msra.mxu1 %v9683_v13  ;;  %v9830_v13 = vld [vmem:[#allocation16 + $0x2d0] ss:$24 sps:$4 sm:$0xff]  }
 0x5dd   :  { %5396 = vmatprep.subr.bf16.mxu1 %v9688_v23  ;;  %7249 = vmatpush1.bf16.msra.mxu0 %v9770_v14  ;;  %v9737_v23 = vld [vmem:[#allocation13 + $0x460] ss:$24 sps:$4 sm:$0xff]   ;;  %v9745_v14 = vld [vmem:[#allocation16 + $0xc] ss:$24 sps:$4 sm:$0xff]  }
 0x5de   :  { %7250 = vmatprep.subr.bf16.mxu0 %v9778_v63  ;;  %v9838_v63 = vld [vmem:[#allocation16 + $0x304] ss:$24 sps:$4 sm:$0xff]  }
 0x5e0   :  { %5397 = vmatpush1.bf16.msra.mxu1 %v9686_v15  ;;  %v9743_v15 = vld [vmem:[#allocation16 + $0x8] ss:$24 sps:$4 sm:$0xff]  }
 0x5e1   :  { %5398 = vmatprep.subr.bf16.mxu1 %v9691_v2  ;;  %7251 = vmatpush1.bf16.msra.mxu0 %v9776_v19  ;;  %v9751_v2 = vld [vmem:[#allocation16 + $0x3c] ss:$24 sps:$4 sm:$0xff]   ;;  %v9749_v19 = vld [vmem:[#allocation16 + $0x38] ss:$24 sps:$4 sm:$0xff]  }
 0x5e2   :  { %7252 = vmatprep.subr.bf16.mxu0 %v9784_v17  ;;  %v9757_v17 = vld [vmem:[#allocation16 + $0x6c] ss:$24 sps:$4 sm:$0xff]  }
 0x5e4   :  { %5399 = vmatpush1.bf16.msra.mxu1 %v9689_v54  ;;  %v9755_v54 = vld [vmem:[#allocation16 + $0x68] ss:$24 sps:$4 sm:$0xff]  }
 0x5e5   :  { %5400 = vmatprep.subr.bf16.mxu1 %v9694_v21  ;;  %7253 = vmatpush1.bf16.msra.mxu0 %v9782_v22  ;;  %v9763_v21 = vld [vmem:[#allocation16 + $0x9c] ss:$24 sps:$4 sm:$0xff]   ;;  %v9761_v22 = vld [vmem:[#allocation16 + $0x98] ss:$24 sps:$4 sm:$0xff]  }
 0x5e6   :  { %7254 = vmatprep.subr.bf16.mxu0 %v9790_v24  ;;  %v9769_v24 = vld [vmem:[#allocation16 + $0xcc] ss:$24 sps:$4 sm:$0xff]  }
 0x5e8   :  { %5401 = vmatpush1.bf16.msra.mxu1 %v9692_v25  ;;  %v9767_v25 = vld [vmem:[#allocation16 + $0xc8] ss:$24 sps:$4 sm:$0xff]  }
 0x5e9   :  { %5402 = vmatprep.subr.bf16.mxu1 %v9697_v26  ;;  %7255 = vmatpush1.bf16.msra.mxu0 %v9788_v28  ;;  %v9775_v26 = vld [vmem:[#allocation16 + $0xfc] ss:$24 sps:$4 sm:$0xff]   ;;  %v9773_v28 = vld [vmem:[#allocation16 + $0xf8] ss:$24 sps:$4 sm:$0xff]  }
 0x5ea   :  { %7256 = vmatprep.subr.bf16.mxu0 %v9796_v29  ;;  %v9779_v29 = vld [vmem:[#allocation16 + $0x128] ss:$24 sps:$4 sm:$0xff]  }
 0x5ec   :  { %5403 = vmatpush1.bf16.msra.mxu1 %v9695_v30  ;;  %v9787_v30 = vld [vmem:[#allocation16 + $0x15c] ss:$24 sps:$4 sm:$0xff]  }
 0x5ed   :  { %5404 = vmatprep.subr.bf16.mxu1 %v9700_v31  ;;  %7257 = vmatpush1.bf16.msra.mxu0 %v9794_v32  ;;  %v9785_v31 = vld [vmem:[#allocation16 + $0x158] ss:$24 sps:$4 sm:$0xff]   ;;  %v9793_v32 = vld [vmem:[#allocation16 + $0x18c] ss:$24 sps:$4 sm:$0xff]  }
 0x5ee   :  { %7258 = vmatprep.subr.bf16.mxu0 %v9802_v33  ;;  %v9791_v33 = vld [vmem:[#allocation16 + $0x188] ss:$24 sps:$4 sm:$0xff]  }
 0x5f0   :  { %5405 = vmatpush1.bf16.msra.mxu1 %v9698_v20  ;;  %v9799_v20 = vld [vmem:[#allocation16 + $0x1bc] ss:$24 sps:$4 sm:$0xff]  }
 0x5f1   :  { %5406 = vmatprep.subr.bf16.mxu1 %v9703_v34  ;;  %7259 = vmatpush1.bf16.msra.mxu0 %v9800_v35  ;;  %v9797_v34 = vld [vmem:[#allocation16 + $0x1b8] ss:$24 sps:$4 sm:$0xff]   ;;  %v9805_v35 = vld [vmem:[#allocation16 + $0x1ec] ss:$24 sps:$4 sm:$0xff]  }
 0x5f2   :  { %7260 = vmatprep.subr.bf16.mxu0 %v9808_v36  ;;  %v9803_v36 = vld [vmem:[#allocation16 + $0x1e8] ss:$24 sps:$4 sm:$0xff]  }
 0x5f4   :  { %5407 = vmatpush1.bf16.msra.mxu1 %v9701_v37  ;;  %v9811_v37 = vld [vmem:[#allocation16 + $0x21c] ss:$24 sps:$4 sm:$0xff]  }
 0x5f5   :  { %5408 = vmatprep.subr.bf16.mxu1 %v9706_v38  ;;  %7261 = vmatpush1.bf16.msra.mxu0 %v9806_v39  ;;  %v9809_v38 = vld [vmem:[#allocation16 + $0x218] ss:$24 sps:$4 sm:$0xff]   ;;  %v9817_v39 = vld [vmem:[#allocation16 + $0x24c] ss:$24 sps:$4 sm:$0xff]  }
 0x5f6   :  { %7262 = vmatprep.subr.bf16.mxu0 %v9814_v40  ;;  %v9815_v40 = vld [vmem:[#allocation16 + $0x248] ss:$24 sps:$4 sm:$0xff]  }
 0x5f8   :  { %5409 = vmatpush1.bf16.msra.mxu1 %v9704_v41  ;;  %v9823_v41 = vld [vmem:[#allocation16 + $0x27c] ss:$24 sps:$4 sm:$0xff]  }
 0x5f9   :  { %5410 = vmatprep.subr.bf16.mxu1 %v9709_v42  ;;  %7263 = vmatpush1.bf16.msra.mxu0 %v9812_v44  ;;  %v9821_v42 = vld [vmem:[#allocation16 + $0x278] ss:$24 sps:$4 sm:$0xff]   ;;  %v9829_v44 = vld [vmem:[#allocation16 + $0x2ac] ss:$24 sps:$4 sm:$0xff]  }
 0x5fa   :  { %7264 = vmatprep.subr.bf16.mxu0 %v9820_v45  ;;  %v9827_v45 = vld [vmem:[#allocation16 + $0x2a8] ss:$24 sps:$4 sm:$0xff]  }
 0x5fc   :  { %5411 = vmatpush1.bf16.msra.mxu1 %v9707_v47  ;;  %v9835_v47 = vld [vmem:[#allocation16 + $0x2dc] ss:$24 sps:$4 sm:$0xff]  }
 0x5fd   :  { %5412 = vmatprep.subr.bf16.mxu1 %v9712_v48  ;;  %7265 = vmatpush1.bf16.msra.mxu0 %v9818_v51  ;;  %v9833_v48 = vld [vmem:[#allocation16 + $0x2d8] ss:$24 sps:$4 sm:$0xff]   ;;  %v9841_v51 = vld [vmem:[#allocation16 + $0x30c] ss:$24 sps:$4 sm:$0xff]  }
 0x5fe   :  { %7266 = vmatprep.subr.bf16.mxu0 %v9826_v8 }
 0x600   :  { %5413 = vmatpush1.bf16.msra.mxu1 %v9710_v3  ;;  %v10945_v3 = vld [vmem:[#allocation15] sm:$0x3f] }
 0x601   :  { %5414 = vmatprep.subr.bf16.mxu1 %v9715_v53  ;;  %v4473_v53 = vrot.slane %v10945_v3, %v10717_v55 }
 0x604   :  { %5415 = vmatpush1.bf16.msra.mxu1 %v9713_v27  ;;  %v4477_v27 = vrot.slane %v10945_v3, %v10720_v56 }
 0x605   :  { %5425 = vmatprep.subr.bf16.mxu1 %v9718_v18  ;;  %v4485_v18 = vrot.slane %v10945_v3, %v10732_v6 }
 0x607   :  { %5417 = vmatmul.mubr.bf16.vlgmr.msra.gmra.mrb[24].mxu1 %v10927_v9  ;;  %v9731_v9 = vld [vmem:[#allocation13 + $0x400] ss:$24 sps:$4 sm:$0xff]  }
 0x608   :  { %5426 = vmatpush1.bf16.msra.mxu1 %v9716_v50  ;;  %5457 = vmatprep.mubr.bf16.mxu1 %v10443_v16  ;;  %v9824_v16 = vld [vmem:[#allocation16 + $0x2a0] ss:$24 sps:$4 sm:$0xff]  }
 0x609   :  { %5427 = vmatprep.subr.bf16.mxu1 %v9721_v57  ;;  %7267 = vmatpush1.bf16.msra.mxu0 %v9824_v16 }
 0x60a   :  { %7268 = vmatprep.subr.bf16.mxu0 %v9832_v12  ;;  %v9839_v12 = vld [vmem:[#allocation16 + $0x308] ss:$24 sps:$4 sm:$0xff]  }
 0x60c   :  { %5428 = vmatpush1.bf16.msra.mxu1 %v9719_v58 }
 0x60d   :  { %5429 = vmatprep.subr.bf16.mxu1 %v9724_v59  ;;  %7269 = vmatpush1.bf16.msra.mxu0 %v9830_v13 }
 0x60e   :  { %7279 = vmatprep.subr.bf16.mxu0 %v9838_v63 }
 0x610   :  { %5430 = vmatpush1.bf16.msra.mxu1 %v9722_v43 }
 0x611   :  { %5431 = vmatprep.subr.bf16.mxu1 %v9727_v60 }
 0x614   :  { %5432 = vmatpush1.bf16.msra.mxu1 %v9725_v61 }
 0x615   :  { %5433 = vmatprep.subr.bf16.mxu1 %v9730_v0 }
 0x618   :  { %5434 = vmatpush1.bf16.msra.mxu1 %v9728_v1 }
 0x619   :  { %5435 = vmatprep.subr.bf16.mxu1 %v9733_v4 }
 0x61c   :  { %5436 = vmatpush1.bf16.msra.mxu1 %v9731_v9 }
 0x61d   :  { %5437 = vmatprep.subr.bf16.mxu1 %v9736_v7 }
 0x620   :  { %5438 = vmatpush1.bf16.msra.mxu1 %v9734_v10 }
 0x621   :  { %5439 = vmatprep.subr.bf16.mxu1 %v9739_v11  ;;  %v9836_v11 = vld [vmem:[#allocation16 + $0x300] ss:$24 sps:$4 sm:$0xff]  }
 0x624   :  { %5440 = vmatpush1.bf16.msra.mxu1 %v9737_v23  ;;  %v9844_v23 = vld [vmem:[#allocation16 + $0x334] ss:$24 sps:$4 sm:$0xff]  }
 0x625   :  { %7361 = vmatprep.subr.bf16.mxu1 %v9745_v14  ;;  %v9847_v14 = vld [vmem:[#allocation16 + $0x33c] ss:$24 sps:$4 sm:$0xff]  }
 0x627   :  { %5458 = vmatmul.mubr.bf16.vlgmr.msra.gmra.mrb[24].mxu1 %v10937_v52  ;;  %v9781_v52 = vld [vmem:[#allocation16 + $0x12c] ss:$24 sps:$4 sm:$0xff]  }
 0x628   :  { %7362 = vmatpush1.bf16.msra.mxu1 %v9743_v15  ;;  %v9842_v15 = vld [vmem:[#allocation16 + $0x330] ss:$24 sps:$4 sm:$0xff]  }
 0x629   :  { %7363 = vmatprep.subr.bf16.mxu1 %v9751_v2  ;;  %v9845_v2 = vld [vmem:[#allocation16 + $0x338] ss:$24 sps:$4 sm:$0xff]  }
 0x62c   :  { %7364 = vmatpush1.bf16.msra.mxu1 %v9749_v19  ;;  %v9850_v19 = vld [vmem:[#allocation16 + $0x364] ss:$24 sps:$4 sm:$0xff]  }
 0x62d   :  { %7365 = vmatprep.subr.bf16.mxu1 %v9757_v17  ;;  %v9853_v17 = vld [vmem:[#allocation16 + $0x36c] ss:$24 sps:$4 sm:$0xff]  }
 0x630   :  { %7366 = vmatpush1.bf16.msra.mxu1 %v9755_v54  ;;  %v9848_v54 = vld [vmem:[#allocation16 + $0x360] ss:$24 sps:$4 sm:$0xff]  }
 0x631   :  { %7367 = vmatprep.subr.bf16.mxu1 %v9763_v21  ;;  %v9851_v21 = vld [vmem:[#allocation16 + $0x368] ss:$24 sps:$4 sm:$0xff]  }
 0x634   :  { %7368 = vmatpush1.bf16.msra.mxu1 %v9761_v22  ;;  %v9856_v22 = vld [vmem:[#allocation16 + $0x394] ss:$24 sps:$4 sm:$0xff]  }
 0x635   :  { %7369 = vmatprep.subr.bf16.mxu1 %v9769_v24  ;;  %v9859_v24 = vld [vmem:[#allocation16 + $0x39c] ss:$24 sps:$4 sm:$0xff]  }
 0x638   :  { %7370 = vmatpush1.bf16.msra.mxu1 %v9767_v25  ;;  %v9854_v25 = vld [vmem:[#allocation16 + $0x390] ss:$24 sps:$4 sm:$0xff]  }
 0x639   :  { %7371 = vmatprep.subr.bf16.mxu1 %v9775_v26  ;;  %v9857_v26 = vld [vmem:[#allocation16 + $0x398] ss:$24 sps:$4 sm:$0xff]  }
 0x63c   :  { %7372 = vmatpush1.bf16.msra.mxu1 %v9773_v28  ;;  %v9862_v28 = vld [vmem:[#allocation16 + $0x3c4] ss:$24 sps:$4 sm:$0xff]  }
 0x63d   :  { %7373 = vmatprep.subr.bf16.mxu1 %v9781_v52  ;;  %v9865_v52 = vld [vmem:[#allocation16 + $0x3cc] ss:$24 sps:$4 sm:$0xff]  }
 0x640   :  { %7374 = vmatpush1.bf16.msra.mxu1 %v9779_v29  ;;  %v9860_v29 = vld [vmem:[#allocation16 + $0x3c0] ss:$24 sps:$4 sm:$0xff]  }
 0x641   :  { %7375 = vmatprep.subr.bf16.mxu1 %v9787_v30  ;;  %v9863_v30 = vld [vmem:[#allocation16 + $0x3c8] ss:$24 sps:$4 sm:$0xff]  }
 0x644   :  { %7376 = vmatpush1.bf16.msra.mxu1 %v9785_v31  ;;  %v9868_v31 = vld [vmem:[#allocation16 + $0x3f4] ss:$24 sps:$4 sm:$0xff]  }
 0x645   :  { %7377 = vmatprep.subr.bf16.mxu1 %v9793_v32  ;;  %v9871_v32 = vld [vmem:[#allocation16 + $0x3fc] ss:$24 sps:$4 sm:$0xff]  }
 0x648   :  { %7378 = vmatpush1.bf16.msra.mxu1 %v9791_v33  ;;  %v9866_v33 = vld [vmem:[#allocation16 + $0x3f0] ss:$24 sps:$4 sm:$0xff]  }
 0x649   :  { %7379 = vmatprep.subr.bf16.mxu1 %v9799_v20  ;;  %v9869_v20 = vld [vmem:[#allocation16 + $0x3f8] ss:$24 sps:$4 sm:$0xff]  }
 0x64c   :  { %7380 = vmatpush1.bf16.msra.mxu1 %v9797_v34  ;;  %v9874_v34 = vld [vmem:[#allocation16 + $0x424] ss:$24 sps:$4 sm:$0xff]  }
 0x64d   :  { %7381 = vmatprep.subr.bf16.mxu1 %v9805_v35  ;;  %v9877_v35 = vld [vmem:[#allocation16 + $0x42c] ss:$24 sps:$4 sm:$0xff]  }
 0x650   :  { %7382 = vmatpush1.bf16.msra.mxu1 %v9803_v36  ;;  %v9872_v36 = vld [vmem:[#allocation16 + $0x420] ss:$24 sps:$4 sm:$0xff]  }
 0x651   :  { %7383 = vmatprep.subr.bf16.mxu1 %v9811_v37  ;;  %v9875_v37 = vld [vmem:[#allocation16 + $0x428] ss:$24 sps:$4 sm:$0xff]  }
 0x654   :  { %7384 = vmatpush1.bf16.msra.mxu1 %v9809_v38  ;;  %v9880_v38 = vld [vmem:[#allocation16 + $0x454] ss:$24 sps:$4 sm:$0xff]  }
 0x655   :  { %7385 = vmatprep.subr.bf16.mxu1 %v9817_v39  ;;  %v9883_v39 = vld [vmem:[#allocation16 + $0x45c] ss:$24 sps:$4 sm:$0xff]  }
 0x658   :  { %7386 = vmatpush1.bf16.msra.mxu1 %v9815_v40  ;;  %v9878_v40 = vld [vmem:[#allocation16 + $0x450] ss:$24 sps:$4 sm:$0xff]  }
 0x659   :  { %7387 = vmatprep.subr.bf16.mxu1 %v9823_v41  ;;  %v9881_v41 = vld [vmem:[#allocation16 + $0x458] ss:$24 sps:$4 sm:$0xff]  }
 0x65c   :  { %7388 = vmatpush1.bf16.msra.mxu1 %v9821_v42  ;;  %v9886_v42 = vld [vmem:[#allocation16 + $0x484] ss:$24 sps:$4 sm:$0xff]  }
 0x65d   :  { %7389 = vmatprep.subr.bf16.mxu1 %v9829_v44  ;;  %v9889_v44 = vld [vmem:[#allocation16 + $0x48c] ss:$24 sps:$4 sm:$0xff]  }
 0x660   :  { %7390 = vmatpush1.bf16.msra.mxu1 %v9827_v45  ;;  %v9884_v45 = vld [vmem:[#allocation16 + $0x480] ss:$24 sps:$4 sm:$0xff]  }
 0x661   :  { %7391 = vmatprep.subr.bf16.mxu1 %v9835_v47  ;;  %v9887_v47 = vld [vmem:[#allocation16 + $0x488] ss:$24 sps:$4 sm:$0xff]  }
 0x664   :  { %7392 = vmatpush1.bf16.msra.mxu1 %v9833_v48  ;;  %v9892_v48 = vld [vmem:[#allocation16 + $0x4b4] ss:$24 sps:$4 sm:$0xff]  }
 0x665   :  { %7402 = vmatprep.subr.bf16.mxu1 %v9841_v51  ;;  %v9895_v51 = vld [vmem:[#allocation16 + $0x4bc] ss:$24 sps:$4 sm:$0xff]  }
 0x69a   :  { %v5295_v50 = vpop.f32.mrb[20].mxu1  ;;  %v10953_v57 = vpop.f32.mrb[24].mxu0 }
 0x69b   :  { %v8682_v58 = vadd.f32 %v5295_v50, %v4473_v53  ;;  %v5297_v59 = vpop.f32.mrb[21].mxu1  ;;  %v5379_v43 = vpop.f32.mrb[25].mxu0  ;;  %v9890_v53 = vld [vmem:[#allocation16 + $0x4b0] ss:$24 sps:$4 sm:$0xff]   ;;  %v9901_v50 = vld [vmem:[#allocation16 + $0x4ec] ss:$24 sps:$4 sm:$0xff]  }
 0x69c   :  { %v8683_v60 = vadd.f32 %v5297_v59, %v4477_v27  ;;  %v8685_v61 = vadd.f32 %v5379_v43, %v4485_v18  ;;  %v5299_v0 = vpop.f32.mrb[22].mxu1  ;;  %v5381_v1 = vpop.f32.mrb[26].mxu0  ;;  %v9893_v27 = vld [vmem:[#allocation16 + $0x4b8] ss:$24 sps:$4 sm:$0xff]   ;;  %v9898_v18 = vld [vmem:[#allocation16 + $0x4e4] ss:$24 sps:$4 sm:$0xff]  }
 0x69d   :  { %v5466_v4 = vmax.f32 %v8682_v58, 0.0  ;;  %v5300_v9 = vpop.f32.mrb[23].mxu1  ;;  %v5382_v7 = vpop.f32.mrb[27].mxu0  ;;  %v9896_v58 = vld [vmem:[#allocation16 + $0x4e0] ss:$24 sps:$4 sm:$0xff]  }
 0x69e   :  { %v5467_v8 = vmax.f32 %v8683_v60, 0.0  ;;  %v5469_v16 = vmax.f32 %v8685_v61, 0.0  ;;  %v9899_v59 = vld [vmem:[#allocation16 + $0x4e8] ss:$24 sps:$4 sm:$0xff]   ;;  %v9904_v43 = vld [vmem:[#allocation16 + $0x514] ss:$24 sps:$4 sm:$0xff]  }
 0x69f   :  { %v10957_v13 = vpack.c.bf16 %v5466_v4, %v5466_v4  ;;  %v9907_v60 = vld [vmem:[#allocation16 + $0x51c] ss:$24 sps:$4 sm:$0xff]   ;;  %v9902_v61 = vld [vmem:[#allocation16 + $0x510] ss:$24 sps:$4 sm:$0xff]   ;;  %v9913_v4 = vld [vmem:[#allocation16 + $0x54c] ss:$24 sps:$4 sm:$0xff]  }
 0x6a0   :  { %v10955_v10 = vpack.c.bf16 %v5467_v8, %v5467_v8  ;;  %v10961_v63 = vpack.c.bf16 %v5469_v16, %v5469_v16  ;;  %v9905_v0 = vld [vmem:[#allocation16 + $0x518] ss:$24 sps:$4 sm:$0xff]   ;;  %v9910_v1 = vld [vmem:[#allocation16 + $0x544] ss:$24 sps:$4 sm:$0xff]   ;;  %v9911_v7 = vld [vmem:[#allocation16 + $0x548] ss:$24 sps:$4 sm:$0xff]  }
 0x6a1   :  { %v9908_v9 = vld [vmem:[#allocation16 + $0x540] ss:$24 sps:$4 sm:$0xff]   ;;  %v9916_v8 = vld [vmem:[#allocation16 + $0x574] ss:$24 sps:$4 sm:$0xff]  }
 0x6a2   :  { %7270 = vmatprep.mubr.bf16.mxu0 %v10955_v10  ;;  %7393 = vmatprep.mubr.bf16.mxu1 %v10955_v10  ;;  %v9919_v16 = vld [vmem:[#allocation16 + $0x57c] ss:$24 sps:$4 sm:$0xff]  }
 0x6a3   :  { %7271 = vmatmul.mubr.bf16.vlgmr.msra.gmra.mrb[28].mxu0 %v10957_v13  ;;  %7394 = vmatmul.mubr.bf16.vlgmr.msra.gmra.mrb[28].mxu1 %v10957_v13 }
 0x6a4   :  { %7280 = vmatpush1.bf16.msra.mxu0 %v9836_v11  ;;  %7403 = vmatpush1.bf16.msra.mxu1 %v9839_v12  ;;  %v9914_v11 = vld [vmem:[#allocation16 + $0x570] ss:$24 sps:$4 sm:$0xff]  }
 0x6a5   :  { %7311 = vmatprep.mubr.bf16.mxu0 %v10961_v63  ;;  %7434 = vmatprep.mubr.bf16.mxu1 %v10961_v63  ;;  %v9917_v12 = vld [vmem:[#allocation16 + $0x578] ss:$24 sps:$4 sm:$0xff]  }
 0x6a6   :  { %7281 = vmatprep.subr.bf16.mxu0 %v9844_v23  ;;  %7404 = vmatprep.subr.bf16.mxu1 %v9847_v14  ;;  %v4481_v23 = vrot.slane %v10945_v3, %v10729_v5  ;;  %v9922_v14 = vld [vmem:[#allocation16 + $0x5a4] ss:$24 sps:$4 sm:$0xff]  }
 0x6a8   :  { %7282 = vmatpush1.bf16.msra.mxu0 %v9842_v15  ;;  %7405 = vmatpush1.bf16.msra.mxu1 %v9845_v2  ;;  %v9925_v15 = vld [vmem:[#allocation16 + $0x5ac] ss:$24 sps:$4 sm:$0xff]   ;;  %v9920_v2 = vld [vmem:[#allocation16 + $0x5a0] ss:$24 sps:$4 sm:$0xff]  }
 0x6a9   :  { %7283 = vmatprep.subr.bf16.mxu0 %v9850_v19  ;;  %7406 = vmatprep.subr.bf16.mxu1 %v9853_v17  ;;  %v9923_v19 = vld [vmem:[#allocation16 + $0x5a8] ss:$24 sps:$4 sm:$0xff]   ;;  %v8684_v17 = vadd.f32 %v10953_v57, %v4481_v23  ;;  %v9940_v57 = vld [vmem:[#allocation16 + $0x634] ss:$24 sps:$4 sm:$0xff]  }
 0x6ac   :  { %7284 = vmatpush1.bf16.msra.mxu0 %v9848_v54  ;;  %7407 = vmatpush1.bf16.msra.mxu1 %v9851_v21  ;;  %v9928_v54 = vld [vmem:[#allocation16 + $0x5d4] ss:$24 sps:$4 sm:$0xff]  }
 0x6ad   :  { %7285 = vmatprep.subr.bf16.mxu0 %v9856_v22  ;;  %7408 = vmatprep.subr.bf16.mxu1 %v9859_v24  ;;  %v9931_v21 = vld [vmem:[#allocation16 + $0x5dc] ss:$24 sps:$4 sm:$0xff]   ;;  %v9926_v22 = vld [vmem:[#allocation16 + $0x5d0] ss:$24 sps:$4 sm:$0xff]  }
 0x6ae   :  { %v9929_v24 = vld [vmem:[#allocation16 + $0x5d8] ss:$24 sps:$4 sm:$0xff]  }
 0x6b0   :  { %7286 = vmatpush1.bf16.msra.mxu0 %v9854_v25  ;;  %7409 = vmatpush1.bf16.msra.mxu1 %v9857_v26  ;;  %v5468_v25 = vmax.f32 %v8684_v17, 0.0  ;;  %v9934_v26 = vld [vmem:[#allocation16 + $0x604] ss:$24 sps:$4 sm:$0xff]   ;;  %v9986_v17 = vld [vmem:[#allocation16 + $0x7b0] ss:$24 sps:$4 sm:$0xff]  }
 0x6b1   :  { %7287 = vmatprep.subr.bf16.mxu0 %v9862_v28  ;;  %7410 = vmatprep.subr.bf16.mxu1 %v9865_v52  ;;  %v9937_v28 = vld [vmem:[#allocation16 + $0x60c] ss:$24 sps:$4 sm:$0xff]   ;;  %v9932_v52 = vld [vmem:[#allocation16 + $0x600] ss:$24 sps:$4 sm:$0xff]  }
 0x6b4   :  { %7288 = vmatpush1.bf16.msra.mxu0 %v9860_v29  ;;  %7411 = vmatpush1.bf16.msra.mxu1 %v9863_v30  ;;  %v9935_v29 = vld [vmem:[#allocation16 + $0x608] ss:$24 sps:$4 sm:$0xff]   ;;  %v10970_v30 = vpack.c.bf16 %v5468_v25, %v5468_v25 }
 0x6b5   :  { %7289 = vmatprep.subr.bf16.mxu0 %v9868_v31  ;;  %7412 = vmatprep.subr.bf16.mxu1 %v9871_v32  ;;  %v9943_v31 = vld [vmem:[#allocation16 + $0x63c] ss:$24 sps:$4 sm:$0xff]   ;;  %v9938_v32 = vld [vmem:[#allocation16 + $0x630] ss:$24 sps:$4 sm:$0xff]  }
 0x6b6   :  { %v9995_v25 = vld [vmem:[#allocation16 + $0x7e8] ss:$24 sps:$4 sm:$0xff]  }
 0x6b8   :  { %7290 = vmatpush1.bf16.msra.mxu0 %v9866_v33  ;;  %7413 = vmatpush1.bf16.msra.mxu1 %v9869_v20  ;;  %v9941_v33 = vld [vmem:[#allocation16 + $0x638] ss:$24 sps:$4 sm:$0xff]   ;;  %v9946_v20 = vld [vmem:[#allocation16 + $0x664] ss:$24 sps:$4 sm:$0xff]  }
 0x6b9   :  { %7291 = vmatprep.subr.bf16.mxu0 %v9874_v34  ;;  %7414 = vmatprep.subr.bf16.mxu1 %v9877_v35  ;;  %v9949_v34 = vld [vmem:[#allocation16 + $0x66c] ss:$24 sps:$4 sm:$0xff]   ;;  %v9944_v35 = vld [vmem:[#allocation16 + $0x660] ss:$24 sps:$4 sm:$0xff]  }
 0x6bc   :  { %7292 = vmatpush1.bf16.msra.mxu0 %v9872_v36  ;;  %7415 = vmatpush1.bf16.msra.mxu1 %v9875_v37  ;;  %v9947_v36 = vld [vmem:[#allocation16 + $0x668] ss:$24 sps:$4 sm:$0xff]   ;;  %v9952_v37 = vld [vmem:[#allocation16 + $0x694] ss:$24 sps:$4 sm:$0xff]  }
 0x6bd   :  { %7293 = vmatprep.subr.bf16.mxu0 %v9880_v38  ;;  %7416 = vmatprep.subr.bf16.mxu1 %v9883_v39  ;;  %v9955_v38 = vld [vmem:[#allocation16 + $0x69c] ss:$24 sps:$4 sm:$0xff]   ;;  %v9950_v39 = vld [vmem:[#allocation16 + $0x690] ss:$24 sps:$4 sm:$0xff]  }
 0x6c0   :  { %7294 = vmatpush1.bf16.msra.mxu0 %v9878_v40  ;;  %7417 = vmatpush1.bf16.msra.mxu1 %v9881_v41  ;;  %v9953_v40 = vld [vmem:[#allocation16 + $0x698] ss:$24 sps:$4 sm:$0xff]   ;;  %v9958_v41 = vld [vmem:[#allocation16 + $0x6c4] ss:$24 sps:$4 sm:$0xff]  }
 0x6c1   :  { %7295 = vmatprep.subr.bf16.mxu0 %v9886_v42  ;;  %7418 = vmatprep.subr.bf16.mxu1 %v9889_v44  ;;  %v9961_v42 = vld [vmem:[#allocation16 + $0x6cc] ss:$24 sps:$4 sm:$0xff]   ;;  %v9956_v44 = vld [vmem:[#allocation16 + $0x6c0] ss:$24 sps:$4 sm:$0xff]  }
 0x6c4   :  { %7296 = vmatpush1.bf16.msra.mxu0 %v9884_v45  ;;  %7419 = vmatpush1.bf16.msra.mxu1 %v9887_v47  ;;  %v9959_v45 = vld [vmem:[#allocation16 + $0x6c8] ss:$24 sps:$4 sm:$0xff]   ;;  %v9964_v47 = vld [vmem:[#allocation16 + $0x6f4] ss:$24 sps:$4 sm:$0xff]  }
 0x6c5   :  { %7297 = vmatprep.subr.bf16.mxu0 %v9892_v48  ;;  %7420 = vmatprep.subr.bf16.mxu1 %v9895_v51  ;;  %v9967_v48 = vld [vmem:[#allocation16 + $0x6fc] ss:$24 sps:$4 sm:$0xff]   ;;  %v9962_v51 = vld [vmem:[#allocation16 + $0x6f0] ss:$24 sps:$4 sm:$0xff]  }
 0x6c8   :  { %7298 = vmatpush1.bf16.msra.mxu0 %v9890_v53  ;;  %7421 = vmatpush1.bf16.msra.mxu1 %v9893_v27  ;;  %v9965_v53 = vld [vmem:[#allocation16 + $0x6f8] ss:$24 sps:$4 sm:$0xff]   ;;  %v9970_v27 = vld [vmem:[#allocation16 + $0x724] ss:$24 sps:$4 sm:$0xff]  }
 0x6c9   :  { %7299 = vmatprep.subr.bf16.mxu0 %v9898_v18  ;;  %7422 = vmatprep.subr.bf16.mxu1 %v9901_v50  ;;  %v9973_v18 = vld [vmem:[#allocation16 + $0x72c] ss:$24 sps:$4 sm:$0xff]   ;;  %v4493_v50 = vrot.slane %v10945_v3, %v10748_v46 }
 0x6cc   :  { %7300 = vmatpush1.bf16.msra.mxu0 %v9896_v58  ;;  %7423 = vmatpush1.bf16.msra.mxu1 %v9899_v59  ;;  %v9968_v58 = vld [vmem:[#allocation16 + $0x720] ss:$24 sps:$4 sm:$0xff]  }
 0x6cd   :  { %7301 = vmatprep.subr.bf16.mxu0 %v9904_v43  ;;  %7424 = vmatprep.subr.bf16.mxu1 %v9907_v60  ;;  %v9971_v59 = vld [vmem:[#allocation16 + $0x728] ss:$24 sps:$4 sm:$0xff]   ;;  %v9976_v43 = vld [vmem:[#allocation16 + $0x754] ss:$24 sps:$4 sm:$0xff]  }
 0x6ce   :  { %v9979_v60 = vld [vmem:[#allocation16 + $0x75c] ss:$24 sps:$4 sm:$0xff]  }
 0x6d0   :  { %7302 = vmatpush1.bf16.msra.mxu0 %v9902_v61  ;;  %7425 = vmatpush1.bf16.msra.mxu1 %v9905_v0 }
 0x6d1   :  { %7303 = vmatprep.subr.bf16.mxu0 %v9910_v1  ;;  %7426 = vmatprep.subr.bf16.mxu1 %v9913_v4 }
 0x6d4   :  { %7304 = vmatpush1.bf16.msra.mxu0 %v9908_v9  ;;  %7427 = vmatpush1.bf16.msra.mxu1 %v9911_v7  ;;  %v9974_v9 = vld [vmem:[#allocation16 + $0x750] ss:$24 sps:$4 sm:$0xff]  }
 0x6d5   :  { %7305 = vmatprep.subr.bf16.mxu0 %v9916_v8  ;;  %7428 = vmatprep.subr.bf16.mxu1 %v9919_v16  ;;  %v9977_v7 = vld [vmem:[#allocation16 + $0x758] ss:$24 sps:$4 sm:$0xff]   ;;  %v9982_v16 = vld [vmem:[#allocation16 + $0x784] ss:$24 sps:$4 sm:$0xff]  }
 0x6d8   :  { %7306 = vmatpush1.bf16.msra.mxu0 %v9914_v11  ;;  %7429 = vmatpush1.bf16.msra.mxu1 %v9917_v12  ;;  %v9985_v11 = vld [vmem:[#allocation16 + $0x78c] ss:$24 sps:$4 sm:$0xff]  }
 0x6d9   :  { %7307 = vmatprep.subr.bf16.mxu0 %v9922_v14  ;;  %7430 = vmatprep.subr.bf16.mxu1 %v9925_v15  ;;  %v9980_v14 = vld [vmem:[#allocation16 + $0x780] ss:$24 sps:$4 sm:$0xff]  }
 0x6da   :  { %v9983_v15 = vld [vmem:[#allocation16 + $0x788] ss:$24 sps:$4 sm:$0xff]  }
 0x6dc   :  { %7308 = vmatpush1.bf16.msra.mxu0 %v9920_v2  ;;  %7431 = vmatpush1.bf16.msra.mxu1 %v9923_v19  ;;  %v9988_v2 = vld [vmem:[#allocation16 + $0x7b4] ss:$24 sps:$4 sm:$0xff]  }
 0x6dd   :  { %7309 = vmatprep.subr.bf16.mxu0 %v9928_v54  ;;  %7432 = vmatprep.subr.bf16.mxu1 %v9931_v21  ;;  %v9991_v19 = vld [vmem:[#allocation16 + $0x7bc] ss:$24 sps:$4 sm:$0xff]   ;;  %v9989_v54 = vld [vmem:[#allocation16 + $0x7b8] ss:$24 sps:$4 sm:$0xff]  }
 0x6de   :  { %v9994_v21 = vld [vmem:[#allocation16 + $0x7e4] ss:$24 sps:$4 sm:$0xff]  }
 0x6e0   :  { %7310 = vmatpush1.bf16.msra.mxu0 %v9926_v22  ;;  %7433 = vmatpush1.bf16.msra.mxu1 %v9929_v24  ;;  %v9997_v22 = vld [vmem:[#allocation16 + $0x7ec] ss:$24 sps:$4 sm:$0xff]   ;;  %v9992_v24 = vld [vmem:[#allocation16 + $0x7e0] ss:$24 sps:$4 sm:$0xff]  }
 0x6e1   :  { %7320 = vmatprep.subr.bf16.mxu0 %v9934_v26  ;;  %7443 = vmatprep.subr.bf16.mxu1 %v9937_v28  ;;  %v10000_v26 = vld [vmem:[#allocation16 + $0x814] ss:$24 sps:$4 sm:$0xff]  }
 0x6e2   :  { %v10003_v28 = vld [vmem:[#allocation16 + $0x81c] ss:$24 sps:$4 sm:$0xff]  }
 0x6e3   :  { %7312 = vmatmul.mubr.bf16.vlgmr.msra.gmra.mrb[28].mxu0 %v10970_v30  ;;  %7435 = vmatmul.mubr.bf16.vlgmr.msra.gmra.mrb[28].mxu1 %v10970_v30 }
 0x6e4   :  { %7321 = vmatpush1.bf16.msra.mxu0 %v9932_v52  ;;  %7444 = vmatpush1.bf16.msra.mxu1 %v9935_v29  ;;  %v9998_v52 = vld [vmem:[#allocation16 + $0x810] ss:$24 sps:$4 sm:$0xff]  }
 0x6e5   :  { %7322 = vmatprep.subr.bf16.mxu0 %v9940_v57  ;;  %7445 = vmatprep.subr.bf16.mxu1 %v9943_v31  ;;  %v10001_v29 = vld [vmem:[#allocation16 + $0x818] ss:$24 sps:$4 sm:$0xff]   ;;  %v10006_v57 = vld [vmem:[#allocation16 + $0x844] ss:$24 sps:$4 sm:$0xff]  }
 0x6e6   :  { %v10009_v31 = vld [vmem:[#allocation16 + $0x84c] ss:$24 sps:$4 sm:$0xff]  }
 0x6e8   :  { %7323 = vmatpush1.bf16.msra.mxu0 %v9938_v32  ;;  %7446 = vmatpush1.bf16.msra.mxu1 %v9941_v33  ;;  %v10004_v32 = vld [vmem:[#allocation16 + $0x840] ss:$24 sps:$4 sm:$0xff]  }
 0x6e9   :  { %7324 = vmatprep.subr.bf16.mxu0 %v9946_v20  ;;  %7447 = vmatprep.subr.bf16.mxu1 %v9949_v34  ;;  %v10007_v33 = vld [vmem:[#allocation16 + $0x848] ss:$24 sps:$4 sm:$0xff]   ;;  %v10012_v20 = vld [vmem:[#allocation16 + $0x874] ss:$24 sps:$4 sm:$0xff]  }
 0x6ea   :  { %v10015_v34 = vld [vmem:[#allocation16 + $0x87c] ss:$24 sps:$4 sm:$0xff]  }
 0x6ec   :  { %7325 = vmatpush1.bf16.msra.mxu0 %v9944_v35  ;;  %7448 = vmatpush1.bf16.msra.mxu1 %v9947_v36  ;;  %v10010_v35 = vld [vmem:[#allocation16 + $0x870] ss:$24 sps:$4 sm:$0xff]  }
 0x6ed   :  { %7326 = vmatprep.subr.bf16.mxu0 %v9952_v37  ;;  %7449 = vmatprep.subr.bf16.mxu1 %v9955_v38  ;;  %v10013_v36 = vld [vmem:[#allocation16 + $0x878] ss:$24 sps:$4 sm:$0xff]   ;;  %v4489_v37 = vrot.slane %v10945_v3, %v10745_v62  ;;  %v10018_v38 = vld [vmem:[#allocation16 + $0x8a4] ss:$24 sps:$4 sm:$0xff]   ;;  %v10030_v3 = vld [vmem:[#allocation16 + $0x14] ss:$24 sps:$4 sm:$0xff]  }
 0x6f0   :  { %7327 = vmatpush1.bf16.msra.mxu0 %v9950_v39  ;;  %7450 = vmatpush1.bf16.msra.mxu1 %v9953_v40  ;;  %v10021_v39 = vld [vmem:[#allocation16 + $0x8ac] ss:$24 sps:$4 sm:$0xff]   ;;  %v10016_v40 = vld [vmem:[#allocation16 + $0x8a0] ss:$24 sps:$4 sm:$0xff]  }
 0x6f1   :  { %7328 = vmatprep.subr.bf16.mxu0 %v9958_v41  ;;  %7451 = vmatprep.subr.bf16.mxu1 %v9961_v42  ;;  %v10019_v41 = vld [vmem:[#allocation16 + $0x8a8] ss:$24 sps:$4 sm:$0xff]  }
 0x6f4   :  { %7329 = vmatpush1.bf16.msra.mxu0 %v9956_v44  ;;  %7452 = vmatpush1.bf16.msra.mxu1 %v9959_v45  ;;  %v10024_v44 = vld [vmem:[#allocation16 + $0x8d4] ss:$24 sps:$4 sm:$0xff]  }
 0x6f5   :  { %7330 = vmatprep.subr.bf16.mxu0 %v9964_v47  ;;  %7453 = vmatprep.subr.bf16.mxu1 %v9967_v48  ;;  %v10027_v45 = vld [vmem:[#allocation16 + $0x8dc] ss:$24 sps:$4 sm:$0xff]   ;;  %v10022_v47 = vld [vmem:[#allocation16 + $0x8d0] ss:$24 sps:$4 sm:$0xff]  }
 0x6f6   :  { %v10025_v48 = vld [vmem:[#allocation16 + $0x8d8] ss:$24 sps:$4 sm:$0xff]  }
 0x6f8   :  { %7331 = vmatpush1.bf16.msra.mxu0 %v9962_v51  ;;  %7454 = vmatpush1.bf16.msra.mxu1 %v9965_v53  ;;  %v10028_v53 = vld [vmem:[#allocation16 + $0x10] ss:$24 sps:$4 sm:$0xff]  }
 0x6f9   :  { %7332 = vmatprep.subr.bf16.mxu0 %v9970_v27  ;;  %7455 = vmatprep.subr.bf16.mxu1 %v9973_v18  ;;  %v10033_v18 = vld [vmem:[#allocation16 + $0x44] ss:$24 sps:$4 sm:$0xff]  }
 0x6fa   :  { %v10976_v61 = vpop.f32.mrb[24].mxu1 }
 0x6fb   :  { %v5461_v0 = vpop.f32.mrb[25].mxu1  ;;  %v8686_v42 = vadd.f32 %v10976_v61, %v4489_v37  ;;  %v10042_v61 = vld [vmem:[#allocation16 + $0xd4] ss:$24 sps:$4 sm:$0xff]   ;;  %v10088_v37 = vld [vmem:[#allocation16 + $0x3d0] ss:$24 sps:$4 sm:$0xff]  }
 0x6fc   :  { %v8687_v1 = vadd.f32 %v5461_v0, %v4493_v50  ;;  %v5463_v4 = vpop.f32.mrb[26].mxu1  ;;  %7333 = vmatpush1.bf16.msra.mxu0 %v9968_v58  ;;  %7456 = vmatpush1.bf16.msra.mxu1 %v9971_v59  ;;  %v10031_v50 = vld [vmem:[#allocation16 + $0x40] ss:$24 sps:$4 sm:$0xff]   ;;  %v10036_v58 = vld [vmem:[#allocation16 + $0x74] ss:$24 sps:$4 sm:$0xff]  }
 0x6fd   :  { %v5464_v8 = vpop.f32.mrb[27].mxu1  ;;  %7334 = vmatprep.subr.bf16.mxu0 %v9976_v43  ;;  %7457 = vmatprep.subr.bf16.mxu1 %v9979_v60  ;;  %v5470_v51 = vmax.f32 %v8686_v42, 0.0  ;;  %v10034_v59 = vld [vmem:[#allocation16 + $0x70] ss:$24 sps:$4 sm:$0xff]   ;;  %v10039_v43 = vld [vmem:[#allocation16 + $0xa4] ss:$24 sps:$4 sm:$0xff]  }
 0x6fe   :  { %v5471_v12 = vmax.f32 %v8687_v1, 0.0  ;;  %v10037_v60 = vld [vmem:[#allocation16 + $0xa0] ss:$24 sps:$4 sm:$0xff]   ;;  %v10040_v0 = vld [vmem:[#allocation16 + $0xd0] ss:$24 sps:$4 sm:$0xff]  }
 0x6ff   :  { %v10985_v27 = vpack.c.bf16 %v5470_v51, %v5470_v51  ;;  %v10045_v1 = vld [vmem:[#allocation16 + $0x104] ss:$24 sps:$4 sm:$0xff]   ;;  %v10043_v4 = vld [vmem:[#allocation16 + $0x100] ss:$24 sps:$4 sm:$0xff]   ;;  %v10102_v42 = vld [vmem:[#allocation16 + $0x494] ss:$24 sps:$4 sm:$0xff]  }
 0x700   :  { %v10978_v23 = vpack.c.bf16 %v5471_v12, %v5471_v12  ;;  %7335 = vmatpush1.bf16.msra.mxu0 %v9974_v9  ;;  %7458 = vmatpush1.bf16.msra.mxu1 %v9977_v7  ;;  %v10048_v9 = vld [vmem:[#allocation16 + $0x134] ss:$24 sps:$4 sm:$0xff]   ;;  %v10051_v7 = vld [vmem:[#allocation16 + $0x164] ss:$24 sps:$4 sm:$0xff]   ;;  %v10049_v8 = vld [vmem:[#allocation16 + $0x160] ss:$24 sps:$4 sm:$0xff]  }
 0x701   :  { %7336 = vmatprep.subr.bf16.mxu0 %v9982_v16  ;;  %7459 = vmatprep.subr.bf16.mxu1 %v9985_v11  ;;  %v10054_v16 = vld [vmem:[#allocation16 + $0x194] ss:$24 sps:$4 sm:$0xff]   ;;  %v10052_v11 = vld [vmem:[#allocation16 + $0x190] ss:$24 sps:$4 sm:$0xff]   ;;  %v10057_v12 = vld [vmem:[#allocation16 + $0x1c4] ss:$24 sps:$4 sm:$0xff]  }
 0x702   :  { %7352 = vmatprep.mubr.bf16.mxu0 %v10978_v23  ;;  %7475 = vmatprep.mubr.bf16.mxu1 %v10978_v23  ;;  %v10106_v51 = vld [vmem:[#allocation16 + $0x4f0] ss:$24 sps:$4 sm:$0xff]  }
 0x704   :  { %7337 = vmatpush1.bf16.msra.mxu0 %v9980_v14  ;;  %7460 = vmatpush1.bf16.msra.mxu1 %v9983_v15  ;;  %v10055_v14 = vld [vmem:[#allocation16 + $0x1c0] ss:$24 sps:$4 sm:$0xff]   ;;  %v10060_v15 = vld [vmem:[#allocation16 + $0x1f4] ss:$24 sps:$4 sm:$0xff]  }
 0x705   :  { %7338 = vmatprep.subr.bf16.mxu0 %v9988_v2  ;;  %7461 = vmatprep.subr.bf16.mxu1 %v9991_v19  ;;  %v10058_v2 = vld [vmem:[#allocation16 + $0x1f0] ss:$24 sps:$4 sm:$0xff]   ;;  %v10063_v19 = vld [vmem:[#allocation16 + $0x224] ss:$24 sps:$4 sm:$0xff]  }
 0x708   :  { %7339 = vmatpush1.bf16.msra.mxu0 %v9986_v17  ;;  %7462 = vmatpush1.bf16.msra.mxu1 %v9989_v54  ;;  %v10061_v17 = vld [vmem:[#allocation16 + $0x220] ss:$24 sps:$4 sm:$0xff]   ;;  %v10066_v54 = vld [vmem:[#allocation16 + $0x254] ss:$24 sps:$4 sm:$0xff]  }
 0x709   :  { %7340 = vmatprep.subr.bf16.mxu0 %v9994_v21  ;;  %7463 = vmatprep.subr.bf16.mxu1 %v9997_v22  ;;  %v10064_v21 = vld [vmem:[#allocation16 + $0x250] ss:$24 sps:$4 sm:$0xff]   ;;  %v10069_v22 = vld [vmem:[#allocation16 + $0x284] ss:$24 sps:$4 sm:$0xff]  }
 0x70c   :  { %7341 = vmatpush1.bf16.msra.mxu0 %v9992_v24  ;;  %7464 = vmatpush1.bf16.msra.mxu1 %v9995_v25  ;;  %v10067_v24 = vld [vmem:[#allocation16 + $0x280] ss:$24 sps:$4 sm:$0xff]   ;;  %v10072_v25 = vld [vmem:[#allocation16 + $0x2b4] ss:$24 sps:$4 sm:$0xff]  }
 0x70d   :  { %7342 = vmatprep.subr.bf16.mxu0 %v10000_v26  ;;  %7465 = vmatprep.subr.bf16.mxu1 %v10003_v28  ;;  %v10070_v26 = vld [vmem:[#allocation16 + $0x2b0] ss:$24 sps:$4 sm:$0xff]   ;;  %v10075_v28 = vld [vmem:[#allocation16 + $0x2e4] ss:$24 sps:$4 sm:$0xff]  }
 0x710   :  { %7343 = vmatpush1.bf16.msra.mxu0 %v9998_v52  ;;  %7466 = vmatpush1.bf16.msra.mxu1 %v10001_v29  ;;  %v10073_v52 = vld [vmem:[#allocation16 + $0x2e0] ss:$24 sps:$4 sm:$0xff]   ;;  %v10078_v29 = vld [vmem:[#allocation16 + $0x314] ss:$24 sps:$4 sm:$0xff]  }
 0x711   :  { %7344 = vmatprep.subr.bf16.mxu0 %v10006_v57  ;;  %7467 = vmatprep.subr.bf16.mxu1 %v10009_v31  ;;  %v10076_v57 = vld [vmem:[#allocation16 + $0x310] ss:$24 sps:$4 sm:$0xff]   ;;  %v10081_v31 = vld [vmem:[#allocation16 + $0x344] ss:$24 sps:$4 sm:$0xff]  }
 0x714   :  { %7345 = vmatpush1.bf16.msra.mxu0 %v10004_v32  ;;  %7468 = vmatpush1.bf16.msra.mxu1 %v10007_v33  ;;  %v10079_v32 = vld [vmem:[#allocation16 + $0x340] ss:$24 sps:$4 sm:$0xff]   ;;  %v10084_v33 = vld [vmem:[#allocation16 + $0x374] ss:$24 sps:$4 sm:$0xff]  }
 0x715   :  { %7346 = vmatprep.subr.bf16.mxu0 %v10012_v20  ;;  %7469 = vmatprep.subr.bf16.mxu1 %v10015_v34  ;;  %v10082_v20 = vld [vmem:[#allocation16 + $0x370] ss:$24 sps:$4 sm:$0xff]   ;;  %v10087_v34 = vld [vmem:[#allocation16 + $0x3a4] ss:$24 sps:$4 sm:$0xff]  }
 0x718   :  { %7347 = vmatpush1.bf16.msra.mxu0 %v10010_v35  ;;  %7470 = vmatpush1.bf16.msra.mxu1 %v10013_v36  ;;  %v10085_v35 = vld [vmem:[#allocation16 + $0x3a0] ss:$24 sps:$4 sm:$0xff]   ;;  %v10090_v36 = vld [vmem:[#allocation16 + $0x3d4] ss:$24 sps:$4 sm:$0xff]  }
 0x719   :  { %7348 = vmatprep.subr.bf16.mxu0 %v10018_v38  ;;  %7471 = vmatprep.subr.bf16.mxu1 %v10021_v39  ;;  %v10093_v38 = vld [vmem:[#allocation16 + $0x404] ss:$24 sps:$4 sm:$0xff]   ;;  %v10096_v39 = vld [vmem:[#allocation16 + $0x434] ss:$24 sps:$4 sm:$0xff]  }
 0x71c   :  { %7349 = vmatpush1.bf16.msra.mxu0 %v10016_v40  ;;  %7472 = vmatpush1.bf16.msra.mxu1 %v10019_v41  ;;  %v10099_v40 = vld [vmem:[#allocation16 + $0x464] ss:$24 sps:$4 sm:$0xff]   ;;  %v10097_v41 = vld [vmem:[#allocation16 + $0x460] ss:$24 sps:$4 sm:$0xff]  }
 0x71d   :  { %7350 = vmatprep.subr.bf16.mxu0 %v10024_v44  ;;  %7473 = vmatprep.subr.bf16.mxu1 %v10027_v45  ;;  %v10100_v44 = vld [vmem:[#allocation16 + $0x490] ss:$24 sps:$4 sm:$0xff]   ;;  %v10105_v45 = vld [vmem:[#allocation16 + $0x4c4] ss:$24 sps:$4 sm:$0xff]  }
 0x720   :  { %7351 = vmatpush1.bf16.msra.mxu0 %v10022_v47  ;;  %7474 = vmatpush1.bf16.msra.mxu1 %v10025_v48  ;;  %v10103_v47 = vld [vmem:[#allocation16 + $0x4c0] ss:$24 sps:$4 sm:$0xff]   ;;  %v10108_v48 = vld [vmem:[#allocation16 + $0x4f4] ss:$24 sps:$4 sm:$0xff]  }
 0x721   :  { %7484 = vmatprep.subr.bf16.mxu0 %v10030_v3  ;;  %v10111_v3 = vld [vmem:[#allocation16 + $0x524] ss:$24 sps:$4 sm:$0xff]  }
 0x723   :  { %7353 = vmatmul.mubr.bf16.vlgmr.msra.gmra.mrb[28].mxu0 %v10985_v27  ;;  %7476 = vmatmul.mubr.bf16.vlgmr.msra.gmra.mrb[28].mxu1 %v10985_v27 }
 0x724   :  { %7485 = vmatpush1.bf16.msra.mxu0 %v10028_v53  ;;  %7516 = vmatprep.mubr.bf16.mxu0 %v10955_v10  ;;  %v10046_v10 = vld [vmem:[#allocation16 + $0x130] ss:$24 sps:$4 sm:$0xff]   ;;  %v10109_v53 = vld [vmem:[#allocation16 + $0x520] ss:$24 sps:$4 sm:$0xff]  }
 0x725   :  { %7486 = vmatprep.subr.bf16.mxu0 %v10033_v18  ;;  %v10114_v18 = vld [vmem:[#allocation16 + $0x554] ss:$24 sps:$4 sm:$0xff]  }
 0x728   :  { %7487 = vmatpush1.bf16.msra.mxu0 %v10031_v50  ;;  %v10112_v50 = vld [vmem:[#allocation16 + $0x550] ss:$24 sps:$4 sm:$0xff]  }
 0x729   :  { %7488 = vmatprep.subr.bf16.mxu0 %v10036_v58  ;;  %v10117_v58 = vld [vmem:[#allocation16 + $0x584] ss:$24 sps:$4 sm:$0xff]  }
 0x72c   :  { %7489 = vmatpush1.bf16.msra.mxu0 %v10034_v59  ;;  %v10115_v59 = vld [vmem:[#allocation16 + $0x580] ss:$24 sps:$4 sm:$0xff]  }
 0x72d   :  { %7490 = vmatprep.subr.bf16.mxu0 %v10039_v43  ;;  %v10120_v43 = vld [vmem:[#allocation16 + $0x5b4] ss:$24 sps:$4 sm:$0xff]  }
 0x730   :  { %7491 = vmatpush1.bf16.msra.mxu0 %v10037_v60  ;;  %v10118_v60 = vld [vmem:[#allocation16 + $0x5b0] ss:$24 sps:$4 sm:$0xff]  }
 0x731   :  { %7492 = vmatprep.subr.bf16.mxu0 %v10042_v61  ;;  %v10123_v61 = vld [vmem:[#allocation16 + $0x5e4] ss:$24 sps:$4 sm:$0xff]  }
 0x734   :  { %7493 = vmatpush1.bf16.msra.mxu0 %v10040_v0  ;;  %v10121_v0 = vld [vmem:[#allocation16 + $0x5e0] ss:$24 sps:$4 sm:$0xff]  }
 0x735   :  { %7494 = vmatprep.subr.bf16.mxu0 %v10045_v1  ;;  %v10126_v1 = vld [vmem:[#allocation16 + $0x614] ss:$24 sps:$4 sm:$0xff]  }
 0x738   :  { %7495 = vmatpush1.bf16.msra.mxu0 %v10043_v4  ;;  %v10124_v4 = vld [vmem:[#allocation16 + $0x610] ss:$24 sps:$4 sm:$0xff]  }
 0x739   :  { %7496 = vmatprep.subr.bf16.mxu0 %v10048_v9  ;;  %v10129_v9 = vld [vmem:[#allocation16 + $0x644] ss:$24 sps:$4 sm:$0xff]  }
 0x73c   :  { %7497 = vmatpush1.bf16.msra.mxu0 %v10046_v10  ;;  %v10127_v10 = vld [vmem:[#allocation16 + $0x640] ss:$24 sps:$4 sm:$0xff]  }
 0x73d   :  { %7498 = vmatprep.subr.bf16.mxu0 %v10051_v7  ;;  %v10132_v7 = vld [vmem:[#allocation16 + $0x674] ss:$24 sps:$4 sm:$0xff]  }
 0x740   :  { %7499 = vmatpush1.bf16.msra.mxu0 %v10049_v8  ;;  %v10130_v8 = vld [vmem:[#allocation16 + $0x670] ss:$24 sps:$4 sm:$0xff]  }
 0x741   :  { %7500 = vmatprep.subr.bf16.mxu0 %v10054_v16  ;;  %v10135_v16 = vld [vmem:[#allocation16 + $0x6a4] ss:$24 sps:$4 sm:$0xff]  }
 0x744   :  { %7501 = vmatpush1.bf16.msra.mxu0 %v10052_v11  ;;  %v10133_v11 = vld [vmem:[#allocation16 + $0x6a0] ss:$24 sps:$4 sm:$0xff]  }
 0x745   :  { %7502 = vmatprep.subr.bf16.mxu0 %v10057_v12  ;;  %v10138_v12 = vld [vmem:[#allocation16 + $0x6d4] ss:$24 sps:$4 sm:$0xff]  }
 0x748   :  { %7503 = vmatpush1.bf16.msra.mxu0 %v10055_v14  ;;  %v10136_v14 = vld [vmem:[#allocation16 + $0x6d0] ss:$24 sps:$4 sm:$0xff]  }
 0x749   :  { %7504 = vmatprep.subr.bf16.mxu0 %v10060_v15  ;;  %v10141_v15 = vld [vmem:[#allocation16 + $0x704] ss:$24 sps:$4 sm:$0xff]  }
 0x74c   :  { %7505 = vmatpush1.bf16.msra.mxu0 %v10058_v2  ;;  %v10144_v2 = vld [vmem:[#allocation16 + $0x734] ss:$24 sps:$4 sm:$0xff]  }
 0x74d   :  { %7506 = vmatprep.subr.bf16.mxu0 %v10063_v19  ;;  %v10147_v19 = vld [vmem:[#allocation16 + $0x764] ss:$24 sps:$4 sm:$0xff]  }
 0x750   :  { %7507 = vmatpush1.bf16.msra.mxu0 %v10061_v17  ;;  %v10145_v17 = vld [vmem:[#allocation16 + $0x760] ss:$24 sps:$4 sm:$0xff]  }
 0x751   :  { %7508 = vmatprep.subr.bf16.mxu0 %v10066_v54  ;;  %v10150_v54 = vld [vmem:[#allocation16 + $0x794] ss:$24 sps:$4 sm:$0xff]  }
 0x754   :  { %7509 = vmatpush1.bf16.msra.mxu0 %v10064_v21  ;;  %v10148_v21 = vld [vmem:[#allocation16 + $0x790] ss:$24 sps:$4 sm:$0xff]  }
 0x755   :  { %7510 = vmatprep.subr.bf16.mxu0 %v10069_v22  ;;  %v10153_v22 = vld [vmem:[#allocation16 + $0x7c4] ss:$24 sps:$4 sm:$0xff]  }
 0x758   :  { %7511 = vmatpush1.bf16.msra.mxu0 %v10067_v24  ;;  %v10151_v24 = vld [vmem:[#allocation16 + $0x7c0] ss:$24 sps:$4 sm:$0xff]  }
 0x759   :  { %7512 = vmatprep.subr.bf16.mxu0 %v10072_v25  ;;  %v10156_v25 = vld [vmem:[#allocation16 + $0x7f4] ss:$24 sps:$4 sm:$0xff]  }
 0x75c   :  { %7513 = vmatpush1.bf16.msra.mxu0 %v10070_v26  ;;  %v10154_v26 = vld [vmem:[#allocation16 + $0x7f0] ss:$24 sps:$4 sm:$0xff]  }
 0x75d   :  { %7514 = vmatprep.subr.bf16.mxu0 %v10075_v28  ;;  %v10159_v28 = vld [vmem:[#allocation16 + $0x824] ss:$24 sps:$4 sm:$0xff]  }
 0x760   :  { %7515 = vmatpush1.bf16.msra.mxu0 %v10073_v52  ;;  %v10157_v52 = vld [vmem:[#allocation16 + $0x820] ss:$24 sps:$4 sm:$0xff]  }
 0x761   :  { %7525 = vmatprep.subr.bf16.mxu0 %v10078_v29  ;;  %v10162_v29 = vld [vmem:[#allocation16 + $0x854] ss:$24 sps:$4 sm:$0xff]  }
 0x763   :  { %7517 = vmatmul.mubr.bf16.vlgmr.msra.gmra.mrb[32].mxu0 %v10957_v13  ;;  %v10091_v13 = vld [vmem:[#allocation16 + $0x400] ss:$24 sps:$4 sm:$0xff]  }
 0x764   :  { %7526 = vmatpush1.bf16.msra.mxu0 %v10076_v57  ;;  %7557 = vmatprep.mubr.bf16.mxu0 %v10961_v63  ;;  %v10094_v63 = vld [vmem:[#allocation16 + $0x430] ss:$24 sps:$4 sm:$0xff]  }
 0x765   :  { %7527 = vmatprep.subr.bf16.mxu0 %v10081_v31  ;;  %v10160_v57 = vld [vmem:[#allocation16 + $0x850] ss:$24 sps:$4 sm:$0xff]   ;;  %v10165_v31 = vld [vmem:[#allocation16 + $0x884] ss:$24 sps:$4 sm:$0xff]  }
 0x768   :  { %7528 = vmatpush1.bf16.msra.mxu0 %v10079_v32  ;;  %v10163_v32 = vld [vmem:[#allocation16 + $0x880] ss:$24 sps:$4 sm:$0xff]  }
 0x769   :  { %7529 = vmatprep.subr.bf16.mxu0 %v10084_v33  ;;  %v10168_v33 = vld [vmem:[#allocation16 + $0x8b4] ss:$24 sps:$4 sm:$0xff]  }
 0x76c   :  { %7530 = vmatpush1.bf16.msra.mxu0 %v10082_v20  ;;  %v10166_v20 = vld [vmem:[#allocation16 + $0x8b0] ss:$24 sps:$4 sm:$0xff]  }
 0x76d   :  { %7531 = vmatprep.subr.bf16.mxu0 %v10087_v34  ;;  %v10171_v34 = vld [vmem:[#allocation16 + $0x8e4] ss:$24 sps:$4 sm:$0xff]  }
 0x770   :  { %7532 = vmatpush1.bf16.msra.mxu0 %v10085_v35  ;;  %v10169_v35 = vld [vmem:[#allocation16 + $0x8e0] ss:$24 sps:$4 sm:$0xff]  }
 0x771   :  { %7533 = vmatprep.subr.bf16.mxu0 %v10090_v36  ;;  %v5766_v36 = vld [vmem:[#allocation18] sm:$0x3f] }
 0x774   :  { %7534 = vmatpush1.bf16.msra.mxu0 %v10088_v37  ;;  %v5771_v37 = vrot.slane %v5766_v36, %v10717_v55 }
 0x775   :  { %7535 = vmatprep.subr.bf16.mxu0 %v10093_v38  ;;  %v5779_v38 = vrot.slane %v5766_v36, %v10729_v5 }
 0x778   :  { %7536 = vmatpush1.bf16.msra.mxu0 %v10091_v13  ;;  %v5775_v13 = vrot.slane %v5766_v36, %v10720_v56 }
 0x779   :  { %7537 = vmatprep.subr.bf16.mxu0 %v10096_v39  ;;  %v5783_v39 = vrot.slane %v5766_v36, %v10732_v6  ;;  %v5787_v6 = vrot.slane %v5766_v36, %v10745_v62 }
 0x77c   :  { %7538 = vmatpush1.bf16.msra.mxu0 %v10094_v63 }
 0x77d   :  { %7539 = vmatprep.subr.bf16.mxu0 %v10099_v40 }
 0x780   :  { %7540 = vmatpush1.bf16.msra.mxu0 %v10097_v41 }
 0x781   :  { %7541 = vmatprep.subr.bf16.mxu0 %v10102_v42 }
 0x784   :  { %7542 = vmatpush1.bf16.msra.mxu0 %v10100_v44 }
 0x785   :  { %7543 = vmatprep.subr.bf16.mxu0 %v10105_v45 }
 0x788   :  { %7544 = vmatpush1.bf16.msra.mxu0 %v10103_v47 }
 0x789   :  { %7545 = vmatprep.subr.bf16.mxu0 %v10108_v48 }
 0x78c   :  { %7546 = vmatpush1.bf16.msra.mxu0 %v10106_v51 }
 0x78d   :  { %7547 = vmatprep.subr.bf16.mxu0 %v10111_v3 }
 0x790   :  { %7548 = vmatpush1.bf16.msra.mxu0 %v10109_v53 }
 0x791   :  { %7549 = vmatprep.subr.bf16.mxu0 %v10114_v18 }
 0x794   :  { %7550 = vmatpush1.bf16.msra.mxu0 %v10112_v50 }
 0x795   :  { %7551 = vmatprep.subr.bf16.mxu0 %v10117_v58  ;;  %v5791_v58 = vrot.slane %v5766_v36, %v10748_v46 }
 0x798   :  { %7552 = vmatpush1.bf16.msra.mxu0 %v10115_v59 }
 0x799   :  { %7553 = vmatprep.subr.bf16.mxu0 %v10120_v43 }
 0x79c   :  { %7554 = vmatpush1.bf16.msra.mxu0 %v10118_v60 }
 0x79d   :  { %7555 = vmatprep.subr.bf16.mxu0 %v10123_v61 }
 0x7a0   :  { %7556 = vmatpush1.bf16.msra.mxu0 %v10121_v0 }
 0x7a1   :  { %7566 = vmatprep.subr.bf16.mxu0 %v10126_v1 }
 0x7a3   :  { %7558 = vmatmul.mubr.bf16.vlgmr.msra.gmra.mrb[32].mxu0 %v10970_v30  ;;  %v10139_v30 = vld [vmem:[#allocation16 + $0x700] ss:$24 sps:$4 sm:$0xff]  }
 0x7a4   :  { %7567 = vmatpush1.bf16.msra.mxu0 %v10124_v4  ;;  %7598 = vmatprep.mubr.bf16.mxu0 %v10978_v23  ;;  %v10142_v23 = vld [vmem:[#allocation16 + $0x730] ss:$24 sps:$4 sm:$0xff]  }
 0x7a5   :  { %7568 = vmatprep.subr.bf16.mxu0 %v10129_v9 }
 0x7a8   :  { %7569 = vmatpush1.bf16.msra.mxu0 %v10127_v10 }
 0x7a9   :  { %7570 = vmatprep.subr.bf16.mxu0 %v10132_v7 }
 0x7ac   :  { %7571 = vmatpush1.bf16.msra.mxu0 %v10130_v8 }
 0x7ad   :  { %7572 = vmatprep.subr.bf16.mxu0 %v10135_v16 }
 0x7b0   :  { %7573 = vmatpush1.bf16.msra.mxu0 %v10133_v11 }
 0x7b1   :  { %7574 = vmatprep.subr.bf16.mxu0 %v10138_v12 }
 0x7b4   :  { %7575 = vmatpush1.bf16.msra.mxu0 %v10136_v14 }
 0x7b5   :  { %7576 = vmatprep.subr.bf16.mxu0 %v10141_v15 }
 0x7b8   :  { %7577 = vmatpush1.bf16.msra.mxu0 %v10139_v30 }
 0x7b9   :  { %7578 = vmatprep.subr.bf16.mxu0 %v10144_v2 }
 0x7bc   :  { %7579 = vmatpush1.bf16.msra.mxu0 %v10142_v23 }
 0x7bd   :  { %7580 = vmatprep.subr.bf16.mxu0 %v10147_v19 }
 0x7c0   :  { %7581 = vmatpush1.bf16.msra.mxu0 %v10145_v17 }
 0x7c1   :  { %7582 = vmatprep.subr.bf16.mxu0 %v10150_v54 }
 0x7c4   :  { %7583 = vmatpush1.bf16.msra.mxu0 %v10148_v21 }
 0x7c5   :  { %7584 = vmatprep.subr.bf16.mxu0 %v10153_v22 }
 0x7c8   :  { %7585 = vmatpush1.bf16.msra.mxu0 %v10151_v24 }
 0x7c9   :  { %7586 = vmatprep.subr.bf16.mxu0 %v10156_v25 }
 0x7cc   :  { %7587 = vmatpush1.bf16.msra.mxu0 %v10154_v26 }
 0x7cd   :  { %7588 = vmatprep.subr.bf16.mxu0 %v10159_v28 }
 0x7d0   :  { %7589 = vmatpush1.bf16.msra.mxu0 %v10157_v52 }
 0x7d1   :  { %7590 = vmatprep.subr.bf16.mxu0 %v10162_v29 }
 0x7d4   :  { %7591 = vmatpush1.bf16.msra.mxu0 %v10160_v57 }
 0x7d5   :  { %7592 = vmatprep.subr.bf16.mxu0 %v10165_v31 }
 0x7d8   :  { %7593 = vmatpush1.bf16.msra.mxu0 %v10163_v32 }
 0x7d9   :  { %7594 = vmatprep.subr.bf16.mxu0 %v10168_v33 }
 0x7dc   :  { %7595 = vmatpush1.bf16.msra.mxu0 %v10166_v20 }
 0x7dd   :  { %7596 = vmatprep.subr.bf16.mxu0 %v10171_v34 }
 0x7e0   :  { %7597 = vmatpush1.bf16.msra.mxu0 %v10169_v35 }
 0x7e3   :  { %7599 = vmatmul.mubr.bf16.vlgmr.msra.gmra.mrb[32].mxu0 %v10985_v27 }
 0x7f6   :  { %v7354_v63 = vpop.f32.mrb[28].mxu0  ;;  %v7477_v40 = vpop.f32.mrb[28].mxu1 }
 0x7f7   :  { %v8688_v41 = vadd.f32 %v7354_v63, %v5771_v37  ;;  %v8690_v42 = vadd.f32 %v7477_v40, %v5779_v38  ;;  %v7356_v44 = vpop.f32.mrb[29].mxu0  ;;  %v7479_v45 = vpop.f32.mrb[29].mxu1 }
 0x7f8   :  { %v8689_v47 = vadd.f32 %v7356_v44, %v5775_v13  ;;  %v8691_v48 = vadd.f32 %v7479_v45, %v5783_v39  ;;  %v7358_v51 = vpop.f32.mrb[30].mxu0  ;;  %v7481_v3 = vpop.f32.mrb[30].mxu1 }
 0x7f9   :  { %v7359_v27 = vpop.f32.mrb[31].mxu0  ;;  %v7482_v53 = vpop.f32.mrb[31].mxu1 }
 0x7fa   :  { %v7613_v18 = vcombine.low %v8688_v41, %v8689_v47  ;;  %v7614_v55 = vcombine.low %v8690_v42, %v8691_v48 }
 0x7fc   :  { %v7621_v5 = vrot.slane %v7613_v18, %v10664_v49  ;;  %v7628_v56 = vrot.slane %v7614_v55, %v10664_v49 }
 0x7fe   :  { %v7629_v50 = vcombine.low %v7621_v5, %v7628_v56 }
 0x800   :  { %7640 = vst [vmem:[%s11022_s13] sm:$0xff] %v7629_v50 }
 0x8b6   :  { %v7600_v59 = vpop.f32.mrb[32].mxu0 }
 0x8b7   :  { %v8692_v43 = vadd.f32 %v7600_v59, %v5787_v6  ;;  %v7602_v60 = vpop.f32.mrb[33].mxu0 }
 0x8b8   :  { %v8693_v61 = vadd.f32 %v7602_v60, %v5791_v58  ;;  %v7604_v0 = vpop.f32.mrb[34].mxu0 }
 0x8b9   :  { %v7605_v1 = vpop.f32.mrb[35].mxu0 }
 0x8ba   :  { %v7630_v4 = vcombine.low %v8692_v43, %v8693_v61 }
 0x8bc   :  { %8603 = vst.sshfl [vmem:[%s11022_s13 + $0x8] sm:$0x33 pattern:$0x76325410] %v7630_v4 }
 0x8bd   :  { %7646 = vsyncpa [#allocation3], 1 }
 0x8be   :  { %7647 = vsyncpa [#allocation5], 1 }
 0x8bf   :  { %7648 = vsyncpa [#allocation8], 1 }
 0x8c0   :  { %7649 = vsyncpa [#allocation11], 1 }
 0x8c1   :  { %7650 = vsyncpa [#allocation14], 1 }
 0x8c2   :  { %7651 = vsyncpa [#allocation17], 1 }

</bundles_post_ra>
